<compile_context>
chip_gen: v7x
topology: tpu7x:2x2x1
jax: 0.10.0
libtpu: 0.0.40
codegen_flags: <defaults>
</compile_context>

<pallas_src>
import jax
import jax.numpy as jnp
from jax.experimental import pallas as pl
from jax.experimental.pallas import tpu as pltpu

# ---------------- configuration (small shapes, consistent with the module) ---
IMG = 84                      # img_size=(84, 84)
PATCH = 14                    # patch_size=14
IN_CH = 3                     # in_channels=3
EMBED = 128                   # module uses 512 — scaled down for a small run
HEADS = 4                     # num_heads=4
MLP_HID = int(2.0 * EMBED)    # mlp_ratio=2.0
NUM_CLASSES = 128             # module uses 512 — scaled down
FRAME_HISTORY = 8             # module uses 32 (frame_history / window_size)
N_SPATIAL_BLOCKS = 2
N_TEMPORAL_BLOCKS = 2

GRID_P = IMG // PATCH                 # 6
N_PATCH = GRID_P * GRID_P             # 36 patches per frame
PATCH_DIM = IN_CH * PATCH * PATCH     # 588
PATCH_DIM_PAD = 640                   # 588 zero-padded to a multiple of 128
HEAD_DIM = EMBED // HEADS             # 32
SM_SCALE = 1.0 / (HEAD_DIM ** 0.5)

BLOCK_KEYS = ("ln1_g", "ln1_b", "wqkv", "bqkv", "wo", "bo",
              "ln2_g", "ln2_b", "w1", "b1", "w2", "b2")


# ------------------------- in-kernel building blocks -------------------------
def _mm(a, b):
    """MXU matmul, bf16 operands, f32 accumulation."""
    return jnp.dot(a.astype(jnp.bfloat16), b.astype(jnp.bfloat16),
                   preferred_element_type=jnp.float32)


def _mm_nt(a, b):
    """a @ b.T without materialising a transpose (bf16 operands, f32 acc)."""
    return jax.lax.dot_general(
        a.astype(jnp.bfloat16), b.astype(jnp.bfloat16),
        (((1,), (1,)), ((), ())), preferred_element_type=jnp.float32)


def _layernorm(x, g, b, eps=1e-5):
    mu = jnp.mean(x, axis=-1, keepdims=True)
    var = jnp.mean((x - mu) ** 2, axis=-1, keepdims=True)
    return (x - mu) * jax.lax.rsqrt(var + eps) * g + b


def _run_blocks(x, refs, n_blocks):
    """Pre-norm transformer blocks, fully in-register. x: [T, EMBED] f32."""
    (ln1_g, ln1_b, wqkv, bqkv, wo, bo, ln2_g, ln2_b, w1, b1, w2, b2) = refs
    for blk in range(n_blocks):
        # ---- multi-head self-attention -------------------------------------
        h = _layernorm(x, ln1_g[blk], ln1_b[blk])
        qkv = _mm(h, wqkv[blk]) + bqkv[blk]               # [T, 3*EMBED]
        heads = []
        for hd in range(HEADS):                           # static lane slices
            q = qkv[:, hd * HEAD_DIM:(hd + 1) * HEAD_DIM]
            k = qkv[:, EMBED + hd * HEAD_DIM:EMBED + (hd + 1) * HEAD_DIM]
            v = qkv[:, 2 * EMBED + hd * HEAD_DIM:2 * EMBED + (hd + 1) * HEAD_DIM]
            s = _mm_nt(q, k) * SM_SCALE                   # [T, T] f32
            s = s - jnp.max(s, axis=-1, keepdims=True)
            p = jnp.exp(s)
            p = p * pl.reciprocal(jnp.sum(p, axis=-1, keepdims=True), approx=True)
            heads.append(_mm(p, v))                       # [T, HEAD_DIM]
        attn = jnp.concatenate(heads, axis=-1)            # [T, EMBED] lane-dense
        x = x + _mm(attn, wo[blk]) + bo[blk]
        # ---- MLP ------------------------------------------------------------
        h = _layernorm(x, ln2_g[blk], ln2_b[blk])
        h = _mm(h, w1[blk]) + b1[blk]
        h = jax.nn.gelu(h)                                # tanh approx (see TODO)
        x = x + _mm(h, w2[blk]) + b2[blk]
    return x


# ------------------------------ fused kernels --------------------------------
def _spatial_kernel(x_ref, pw_ref, pb_ref, pos_ref,
                    ln1_g, ln1_b, wqkv, bqkv, wo, bo, ln2_g, ln2_b, w1, b1, w2, b2,
                    o_ref):
    """Patch-embed + spatial transformer blocks + spatial mean-pool, one frame."""
    x = x_ref[0]                                          # [N_PATCH, PATCH_DIM_PAD]
    x = _mm(x, pw_ref[...]) + pb_ref[...]                 # patch embedding
    x = x + pos_ref[...]
    x = _run_blocks(
        x, (ln1_g, ln1_b, wqkv, bqkv, wo, bo, ln2_g, ln2_b, w1, b1, w2, b2),
        N_SPATIAL_BLOCKS)
    o_ref[0] = jnp.mean(x, axis=0, keepdims=True)         # [1, EMBED]


def _temporal_kernel(win_ref, pos_ref,
                     ln1_g, ln1_b, wqkv, bqkv, wo, bo, ln2_g, ln2_b, w1, b1, w2, b2,
                     hw_ref, hb_ref, o_ref):
    """Temporal transformer blocks over the frame window + classification head."""
    x = win_ref[0] + pos_ref[...]                         # [FRAME_HISTORY, EMBED]
    x = _run_blocks(
        x, (ln1_g, ln1_b, wqkv, bqkv, wo, bo, ln2_g, ln2_b, w1, b1, w2, b2),
        N_TEMPORAL_BLOCKS)
    pooled = jnp.mean(x, axis=0, keepdims=True)           # [1, EMBED]
    o_ref[0] = _mm(pooled, hw_ref[...]) + hb_ref[...]     # [1, NUM_CLASSES]


# ------------------------------ host-side glue --------------------------------
def _rep_spec(shape):
    """Whole-array block replicated across the grid."""
    zeros = (0,) * len(shape)
    return pl.BlockSpec(shape, lambda i, z=zeros: z)


def spatial_features(params, obs):
    """obs: [B, 3, 84, 84] raw pixels -> pooled spatial tokens [B, EMBED]."""
    B = obs.shape[0]
    # patchify (channel-major flatten, matches Conv2d(3, D, 14, 14) weights)
    x = obs.reshape(B, IN_CH, GRID_P, PATCH, GRID_P, PATCH)
    x = x.transpose(0, 2, 4, 1, 3, 5).reshape(B, N_PATCH, PATCH_DIM)
    x = jnp.pad(x, ((0, 0), (0, 0), (0, PATCH_DIM_PAD - PATCH_DIM)))
    # fold the wrapper's obs/255 normalisation into the patch-embed weight
    patch_w = params["patch_w"] * (1.0 / 255.0)
    blocks = [params["spatial_blocks"][k] for k in BLOCK_KEYS]

    out = pl.pallas_call(
        _spatial_kernel,
        grid=(B,),
        in_specs=[pl.BlockSpec((1, N_PATCH, PATCH_DIM_PAD), lambda i: (i, 0, 0)),
                  _rep_spec(patch_w.shape),
                  _rep_spec(params["patch_b"].shape),
                  _rep_spec(params["pos_spatial"].shape)]
                 + [_rep_spec(a.shape) for a in blocks],
        out_specs=pl.BlockSpec((1, 1, EMBED), lambda i: (i, 0, 0)),
        out_shape=jax.ShapeDtypeStruct((B, 1, EMBED), jnp.float32),
        compiler_params=pltpu.CompilerParams(dimension_semantics=("parallel",)),
    )(x, patch_w, params["patch_b"], params["pos_spatial"], *blocks)
    return out[:, 0, :]


def temporal_head(params, windows):
    """windows: [B, FRAME_HISTORY, EMBED] pooled spatial tokens -> [B, NUM_CLASSES]."""
    B = windows.shape[0]
    blocks = [params["temporal_blocks"][k] for k in BLOCK_KEYS]
    out = pl.pallas_call(
        _temporal_kernel,
        grid=(B,),
        in_specs=[pl.BlockSpec((1, FRAME_HISTORY, EMBED), lambda i: (i, 0, 0)),
                  _rep_spec(params["pos_temporal"].shape)]
                 + [_rep_spec(a.shape) for a in blocks]
                 + [_rep_spec(params["head_w"].shape),
                    _rep_spec(params["head_b"].shape)],
        out_specs=pl.BlockSpec((1, 1, NUM_CLASSES), lambda i: (i, 0, 0)),
        out_shape=jax.ShapeDtypeStruct((B, 1, NUM_CLASSES), jnp.float32),
        compiler_params=pltpu.CompilerParams(dimension_semantics=("parallel",)),
    )(windows, params["pos_temporal"], *blocks, params["head_w"], params["head_b"])
    return out[:, 0, :]


@jax.jit
def vit_feature_wrapper_forward(params, obs, feat_buffer):
    """Mirrors ViTFeatureWrapper.forward for batched obs.

    feat_buffer holds the CACHED pooled spatial features of the frames in the
    rolling window ([FRAME_HISTORY, EMBED], oldest first).  Each new obs frame
    runs only the spatial stack once; each env step re-runs only the temporal
    stack + head on its window.  Returns (features [B, NUM_CLASSES], buffer).
    """
    B = obs.shape[0]
    new_feats = spatial_features(params, obs)             # [B, EMBED]
    windows, buf = [], feat_buffer
    for i in range(B):                                     # B is static
        buf = jnp.concatenate([buf[1:], new_feats[i:i + 1]], axis=0)
        windows.append(buf)
    windows = jnp.stack(windows, axis=0)                   # [B, F, EMBED]
    feats = temporal_head(params, windows)                 # [B, NUM_CLASSES]
    return feats, buf


def init_feature_buffer(params):
    """Buffer starts full of zero frames -> cache the zero-frame spatial feature."""
    zero_frame = jnp.zeros((1, IN_CH, IMG, IMG), jnp.float32)
    feat0 = spatial_features(params, zero_frame)           # [1, EMBED]
    return jnp.tile(feat0, (FRAME_HISTORY, 1))             # [F, EMBED]


# ------------------------------ parameters ------------------------------------
def init_params(key):
    keys = iter(jax.random.split(key, 32))

    def dense(shape):
        return 0.02 * jax.random.normal(next(keys), shape, jnp.float32)

    def stack(n):
        return dict(
            ln1_g=jnp.ones((n, 1, EMBED), jnp.float32),
            ln1_b=jnp.zeros((n, 1, EMBED), jnp.float32),
            wqkv=dense((n, EMBED, 3 * EMBED)),
            bqkv=jnp.zeros((n, 1, 3 * EMBED), jnp.float32),
            wo=dense((n, EMBED, EMBED)),
            bo=jnp.zeros((n, 1, EMBED), jnp.float32),
            ln2_g=jnp.ones((n, 1, EMBED), jnp.float32),
            ln2_b=jnp.zeros((n, 1, EMBED), jnp.float32),
            w1=dense((n, EMBED, MLP_HID)),
            b1=jnp.zeros((n, 1, MLP_HID), jnp.float32),
            w2=dense((n, MLP_HID, EMBED)),
            b2=jnp.zeros((n, 1, EMBED), jnp.float32),
        )

    patch_w = dense((PATCH_DIM, EMBED))
    # zero-pad the 588-wide contraction dim to 640 (multiple of 128) for aligned loads
    patch_w = jnp.pad(patch_w, ((0, PATCH_DIM_PAD - PATCH_DIM), (0, 0)))

    return dict(
        patch_w=patch_w,
        patch_b=jnp.zeros((1, EMBED), jnp.float32),
        pos_spatial=0.02 * jax.random.normal(next(keys), (N_PATCH, EMBED), jnp.float32),
        pos_temporal=0.02 * jax.random.normal(next(keys), (FRAME_HISTORY, EMBED), jnp.float32),
        spatial_blocks=stack(N_SPATIAL_BLOCKS),
        temporal_blocks=stack(N_TEMPORAL_BLOCKS),
        head_w=dense((EMBED, NUM_CLASSES)),
        head_b=jnp.zeros((1, NUM_CLASSES), jnp.float32),
    )


# --------------------------------- main ----------------------------------------
if __name__ == "__main__":
    params = init_params(jax.random.PRNGKey(42))

    # obs: batch of raw screens, NCHW, values in [0, 255) (already 84x84)
    obs = jax.random.uniform(jax.random.PRNGKey(0), (2, IN_CH, IMG, IMG),
                             jnp.float32, 0.0, 255.0)

    feat_buffer = init_feature_buffer(params)      # rolling window of zero frames
    feats, feat_buffer = vit_feature_wrapper_forward(params, obs, feat_buffer)
    feats = jax.block_until_ready(feats)

    assert feats.shape == (2, NUM_CLASSES), feats.shape
    assert jnp.all(jnp.isfinite(feats))
    print("KERNEL_OK")
</pallas_src>

<mosaic_0001>
module attributes {stable_mosaic.version = 11 : i64} {
  func.func @_spatial_kernel(%arg0: i32, %arg1: memref<1x36x640xf32, #tpu.memory_space<vmem>>, %arg2: memref<640x128xf32, #tpu.memory_space<vmem>>, %arg3: memref<1x128xf32, #tpu.memory_space<vmem>>, %arg4: memref<36x128xf32, #tpu.memory_space<vmem>>, %arg5: memref<2x1x128xf32, #tpu.memory_space<vmem>>, %arg6: memref<2x1x128xf32, #tpu.memory_space<vmem>>, %arg7: memref<2x128x384xf32, #tpu.memory_space<vmem>>, %arg8: memref<2x1x384xf32, #tpu.memory_space<vmem>>, %arg9: memref<2x128x128xf32, #tpu.memory_space<vmem>>, %arg10: memref<2x1x128xf32, #tpu.memory_space<vmem>>, %arg11: memref<2x1x128xf32, #tpu.memory_space<vmem>>, %arg12: memref<2x1x128xf32, #tpu.memory_space<vmem>>, %arg13: memref<2x128x256xf32, #tpu.memory_space<vmem>>, %arg14: memref<2x1x256xf32, #tpu.memory_space<vmem>>, %arg15: memref<2x256x128xf32, #tpu.memory_space<vmem>>, %arg16: memref<2x1x128xf32, #tpu.memory_space<vmem>>, %arg17: memref<1x1x128xf32, #tpu.memory_space<vmem>>) attributes {dimension_semantics = [#tpu.dimension_semantics<parallel>], iteration_bounds = array<i64: 1>, scalar_prefetch = 0 : i64, scratch_operands = 0 : i64, tpu.core_type = #tpu.core_type<tc>, window_params = [{transform_indices = @transform_0, window_bounds = array<i64: 1, 36, 640>}, {pipeline_mode = #tpu.pipeline_mode<synchronous>, transform_indices = @transform_1, window_bounds = array<i64: 640, 128>}, {pipeline_mode = #tpu.pipeline_mode<synchronous>, transform_indices = @transform_2, window_bounds = array<i64: 1, 128>}, {pipeline_mode = #tpu.pipeline_mode<synchronous>, transform_indices = @transform_3, window_bounds = array<i64: 36, 128>}, {pipeline_mode = #tpu.pipeline_mode<synchronous>, transform_indices = @transform_4, window_bounds = array<i64: 2, 1, 128>}, {pipeline_mode = #tpu.pipeline_mode<synchronous>, transform_indices = @transform_5, window_bounds = array<i64: 2, 1, 128>}, {pipeline_mode = #tpu.pipeline_mode<synchronous>, transform_indices = @transform_6, window_bounds = array<i64: 2, 128, 384>}, {pipeline_mode = #tpu.pipeline_mode<synchronous>, transform_indices = @transform_7, window_bounds = array<i64: 2, 1, 384>}, {pipeline_mode = #tpu.pipeline_mode<synchronous>, transform_indices = @transform_8, window_bounds = array<i64: 2, 128, 128>}, {pipeline_mode = #tpu.pipeline_mode<synchronous>, transform_indices = @transform_9, window_bounds = array<i64: 2, 1, 128>}, {pipeline_mode = #tpu.pipeline_mode<synchronous>, transform_indices = @transform_10, window_bounds = array<i64: 2, 1, 128>}, {pipeline_mode = #tpu.pipeline_mode<synchronous>, transform_indices = @transform_11, window_bounds = array<i64: 2, 1, 128>}, {pipeline_mode = #tpu.pipeline_mode<synchronous>, transform_indices = @transform_12, window_bounds = array<i64: 2, 128, 256>}, {pipeline_mode = #tpu.pipeline_mode<synchronous>, transform_indices = @transform_13, window_bounds = array<i64: 2, 1, 256>}, {pipeline_mode = #tpu.pipeline_mode<synchronous>, transform_indices = @transform_14, window_bounds = array<i64: 2, 256, 128>}, {pipeline_mode = #tpu.pipeline_mode<synchronous>, transform_indices = @transform_15, window_bounds = array<i64: 2, 1, 128>}, {transform_indices = @transform_16, window_bounds = array<i64: 1, 1, 128>}]} {
    %c0 = arith.constant 0 : index
    %c0_0 = arith.constant 0 : index
    %c0_1 = arith.constant 0 : index
    %0 = vector.load %arg1[%c0, %c0_0, %c0_1] : memref<1x36x640xf32, #tpu.memory_space<vmem>>, vector<1x36x640xf32>
    %1 = vector.shape_cast %0 : vector<1x36x640xf32> to vector<36x640xf32>
    %c0_2 = arith.constant 0 : index
    %c0_3 = arith.constant 0 : index
    %2 = vector.load %arg2[%c0_2, %c0_3] : memref<640x128xf32, #tpu.memory_space<vmem>>, vector<640x128xf32>
    %3 = arith.truncf %1 : vector<36x640xf32> to vector<36x640xbf16>
    %4 = arith.truncf %2 : vector<640x128xf32> to vector<640x128xbf16>
    %cst = arith.constant dense<0.000000e+00> : vector<36x128xf32>
    %5 = tpu.matmul %3, %4, %cst {dimension_numbers = #tpu.dot_dimension_numbers<[1], [0], [0], [1], [0, 0, 1, 1], [], []>} : vector<36x640xbf16>, vector<640x128xbf16>, vector<36x128xf32> -> vector<36x128xf32>
    %c0_4 = arith.constant 0 : index
    %c0_5 = arith.constant 0 : index
    %6 = vector.load %arg3[%c0_4, %c0_5] : memref<1x128xf32, #tpu.memory_space<vmem>>, vector<1x128xf32>
    %7 = vector.broadcast %6 : vector<1x128xf32> to vector<36x128xf32>
    %8 = arith.addf %5, %7 : vector<36x128xf32>
    %c0_6 = arith.constant 0 : index
    %c0_7 = arith.constant 0 : index
    %9 = vector.load %arg4[%c0_6, %c0_7] : memref<36x128xf32, #tpu.memory_space<vmem>>, vector<36x128xf32>
    %10 = arith.addf %8, %9 : vector<36x128xf32>
    %c0_8 = arith.constant 0 : index
    %c0_9 = arith.constant 0 : index
    %c0_10 = arith.constant 0 : index
    %11 = vector.load %arg5[%c0_8, %c0_9, %c0_10] : memref<2x1x128xf32, #tpu.memory_space<vmem>>, vector<1x1x128xf32>
    %12 = vector.shape_cast %11 : vector<1x1x128xf32> to vector<1x128xf32>
    %c0_11 = arith.constant 0 : index
    %c0_12 = arith.constant 0 : index
    %c0_13 = arith.constant 0 : index
    %13 = vector.load %arg6[%c0_11, %c0_12, %c0_13] : memref<2x1x128xf32, #tpu.memory_space<vmem>>, vector<1x1x128xf32>
    %14 = vector.shape_cast %13 : vector<1x1x128xf32> to vector<1x128xf32>
    %cst_14 = arith.constant dense<0.000000e+00> : vector<36xf32>
    %15 = vector.multi_reduction <add>, %10, %cst_14 [1] : vector<36x128xf32> to vector<36xf32>
    %16 = vector.shape_cast %15 : vector<36xf32> to vector<36x1xf32>
    %cst_15 = arith.constant 1.280000e+02 : f32
    %17 = vector.broadcast %cst_15 : f32 to vector<36x1xf32>
    %18 = arith.divf %16, %17 : vector<36x1xf32>
    %19 = vector.broadcast %18 : vector<36x1xf32> to vector<36x128xf32>
    %20 = arith.subf %10, %19 : vector<36x128xf32>
    %21 = arith.mulf %20, %20 : vector<36x128xf32>
    %cst_16 = arith.constant dense<0.000000e+00> : vector<36xf32>
    %22 = vector.multi_reduction <add>, %21, %cst_16 [1] : vector<36x128xf32> to vector<36xf32>
    %23 = vector.shape_cast %22 : vector<36xf32> to vector<36x1xf32>
    %cst_17 = arith.constant 1.280000e+02 : f32
    %24 = vector.broadcast %cst_17 : f32 to vector<36x1xf32>
    %25 = arith.divf %23, %24 : vector<36x1xf32>
    %26 = vector.broadcast %18 : vector<36x1xf32> to vector<36x128xf32>
    %27 = arith.subf %10, %26 : vector<36x128xf32>
    %cst_18 = arith.constant 9.99999974E-6 : f32
    %28 = vector.broadcast %cst_18 : f32 to vector<36x1xf32>
    %29 = arith.addf %25, %28 : vector<36x1xf32>
    %30 = math.rsqrt %29 : vector<36x1xf32>
    %31 = vector.broadcast %30 : vector<36x1xf32> to vector<36x128xf32>
    %32 = arith.mulf %27, %31 : vector<36x128xf32>
    %33 = vector.broadcast %12 : vector<1x128xf32> to vector<36x128xf32>
    %34 = arith.mulf %32, %33 : vector<36x128xf32>
    %35 = vector.broadcast %14 : vector<1x128xf32> to vector<36x128xf32>
    %36 = arith.addf %34, %35 : vector<36x128xf32>
    %c0_19 = arith.constant 0 : index
    %c0_20 = arith.constant 0 : index
    %c0_21 = arith.constant 0 : index
    %37 = vector.load %arg7[%c0_19, %c0_20, %c0_21] : memref<2x128x384xf32, #tpu.memory_space<vmem>>, vector<1x128x384xf32>
    %38 = vector.shape_cast %37 : vector<1x128x384xf32> to vector<128x384xf32>
    %39 = arith.truncf %36 : vector<36x128xf32> to vector<36x128xbf16>
    %40 = arith.truncf %38 : vector<128x384xf32> to vector<128x384xbf16>
    %cst_22 = arith.constant dense<0.000000e+00> : vector<36x384xf32>
    %41 = tpu.matmul %39, %40, %cst_22 {dimension_numbers = #tpu.dot_dimension_numbers<[1], [0], [0], [1], [0, 0, 1, 1], [], []>} : vector<36x128xbf16>, vector<128x384xbf16>, vector<36x384xf32> -> vector<36x384xf32>
    %c0_23 = arith.constant 0 : index
    %c0_24 = arith.constant 0 : index
    %c0_25 = arith.constant 0 : index
    %42 = vector.load %arg8[%c0_23, %c0_24, %c0_25] : memref<2x1x384xf32, #tpu.memory_space<vmem>>, vector<1x1x384xf32>
    %43 = vector.shape_cast %42 : vector<1x1x384xf32> to vector<1x384xf32>
    %44 = vector.broadcast %43 : vector<1x384xf32> to vector<36x384xf32>
    %45 = arith.addf %41, %44 : vector<36x384xf32>
    %46 = vector.extract_strided_slice %45 {offsets = [0, 0], sizes = [36, 32], strides = [1, 1]} : vector<36x384xf32> to vector<36x32xf32>
    %47 = vector.extract_strided_slice %45 {offsets = [0, 128], sizes = [36, 32], strides = [1, 1]} : vector<36x384xf32> to vector<36x32xf32>
    %48 = vector.extract_strided_slice %45 {offsets = [0, 256], sizes = [36, 32], strides = [1, 1]} : vector<36x384xf32> to vector<36x32xf32>
    %49 = arith.truncf %46 : vector<36x32xf32> to vector<36x32xbf16>
    %50 = arith.truncf %47 : vector<36x32xf32> to vector<36x32xbf16>
    %cst_26 = arith.constant dense<0.000000e+00> : vector<36x36xf32>
    %51 = tpu.matmul %49, %50, %cst_26 {dimension_numbers = #tpu.dot_dimension_numbers<[1], [1], [0], [0], [0, 0, 1, 0], [], []>} : vector<36x32xbf16>, vector<36x32xbf16>, vector<36x36xf32> -> vector<36x36xf32>
    %cst_27 = arith.constant 0.176776692 : f32
    %52 = vector.broadcast %cst_27 : f32 to vector<36x36xf32>
    %53 = arith.mulf %51, %52 : vector<36x36xf32>
    %cst_28 = arith.constant dense<0xFF800000> : vector<36xf32>
    %54 = vector.multi_reduction <maximumf>, %53, %cst_28 [1] : vector<36x36xf32> to vector<36xf32>
    %55 = vector.shape_cast %54 : vector<36xf32> to vector<36x1xf32>
    %56 = vector.broadcast %55 : vector<36x1xf32> to vector<36x36xf32>
    %57 = arith.subf %53, %56 : vector<36x36xf32>
    %58 = math.exp %57 : vector<36x36xf32>
    %cst_29 = arith.constant dense<0.000000e+00> : vector<36xf32>
    %59 = vector.multi_reduction <add>, %58, %cst_29 [1] : vector<36x36xf32> to vector<36xf32>
    %60 = vector.shape_cast %59 : vector<36xf32> to vector<36x1xf32>
    %61 = tpu.reciprocal %60 {approx = true} : vector<36x1xf32> -> vector<36x1xf32>
    %62 = vector.broadcast %61 : vector<36x1xf32> to vector<36x36xf32>
    %63 = arith.mulf %58, %62 : vector<36x36xf32>
    %64 = arith.truncf %63 : vector<36x36xf32> to vector<36x36xbf16>
    %65 = arith.truncf %48 : vector<36x32xf32> to vector<36x32xbf16>
    %cst_30 = arith.constant dense<0.000000e+00> : vector<36x32xf32>
    %66 = tpu.matmul %64, %65, %cst_30 {dimension_numbers = #tpu.dot_dimension_numbers<[1], [0], [0], [1], [0, 0, 1, 1], [], []>} : vector<36x36xbf16>, vector<36x32xbf16>, vector<36x32xf32> -> vector<36x32xf32>
    %67 = vector.extract_strided_slice %45 {offsets = [0, 32], sizes = [36, 32], strides = [1, 1]} : vector<36x384xf32> to vector<36x32xf32>
    %68 = vector.extract_strided_slice %45 {offsets = [0, 160], sizes = [36, 32], strides = [1, 1]} : vector<36x384xf32> to vector<36x32xf32>
    %69 = vector.extract_strided_slice %45 {offsets = [0, 288], sizes = [36, 32], strides = [1, 1]} : vector<36x384xf32> to vector<36x32xf32>
    %70 = arith.truncf %67 : vector<36x32xf32> to vector<36x32xbf16>
    %71 = arith.truncf %68 : vector<36x32xf32> to vector<36x32xbf16>
    %cst_31 = arith.constant dense<0.000000e+00> : vector<36x36xf32>
    %72 = tpu.matmul %70, %71, %cst_31 {dimension_numbers = #tpu.dot_dimension_numbers<[1], [1], [0], [0], [0, 0, 1, 0], [], []>} : vector<36x32xbf16>, vector<36x32xbf16>, vector<36x36xf32> -> vector<36x36xf32>
    %cst_32 = arith.constant 0.176776692 : f32
    %73 = vector.broadcast %cst_32 : f32 to vector<36x36xf32>
    %74 = arith.mulf %72, %73 : vector<36x36xf32>
    %cst_33 = arith.constant dense<0xFF800000> : vector<36xf32>
    %75 = vector.multi_reduction <maximumf>, %74, %cst_33 [1] : vector<36x36xf32> to vector<36xf32>
    %76 = vector.shape_cast %75 : vector<36xf32> to vector<36x1xf32>
    %77 = vector.broadcast %76 : vector<36x1xf32> to vector<36x36xf32>
    %78 = arith.subf %74, %77 : vector<36x36xf32>
    %79 = math.exp %78 : vector<36x36xf32>
    %cst_34 = arith.constant dense<0.000000e+00> : vector<36xf32>
    %80 = vector.multi_reduction <add>, %79, %cst_34 [1] : vector<36x36xf32> to vector<36xf32>
    %81 = vector.shape_cast %80 : vector<36xf32> to vector<36x1xf32>
    %82 = tpu.reciprocal %81 {approx = true} : vector<36x1xf32> -> vector<36x1xf32>
    %83 = vector.broadcast %82 : vector<36x1xf32> to vector<36x36xf32>
    %84 = arith.mulf %79, %83 : vector<36x36xf32>
    %85 = arith.truncf %84 : vector<36x36xf32> to vector<36x36xbf16>
    %86 = arith.truncf %69 : vector<36x32xf32> to vector<36x32xbf16>
    %cst_35 = arith.constant dense<0.000000e+00> : vector<36x32xf32>
    %87 = tpu.matmul %85, %86, %cst_35 {dimension_numbers = #tpu.dot_dimension_numbers<[1], [0], [0], [1], [0, 0, 1, 1], [], []>} : vector<36x36xbf16>, vector<36x32xbf16>, vector<36x32xf32> -> vector<36x32xf32>
    %88 = vector.extract_strided_slice %45 {offsets = [0, 64], sizes = [36, 32], strides = [1, 1]} : vector<36x384xf32> to vector<36x32xf32>
    %89 = vector.extract_strided_slice %45 {offsets = [0, 192], sizes = [36, 32], strides = [1, 1]} : vector<36x384xf32> to vector<36x32xf32>
    %90 = vector.extract_strided_slice %45 {offsets = [0, 320], sizes = [36, 32], strides = [1, 1]} : vector<36x384xf32> to vector<36x32xf32>
    %91 = arith.truncf %88 : vector<36x32xf32> to vector<36x32xbf16>
    %92 = arith.truncf %89 : vector<36x32xf32> to vector<36x32xbf16>
    %cst_36 = arith.constant dense<0.000000e+00> : vector<36x36xf32>
    %93 = tpu.matmul %91, %92, %cst_36 {dimension_numbers = #tpu.dot_dimension_numbers<[1], [1], [0], [0], [0, 0, 1, 0], [], []>} : vector<36x32xbf16>, vector<36x32xbf16>, vector<36x36xf32> -> vector<36x36xf32>
    %cst_37 = arith.constant 0.176776692 : f32
    %94 = vector.broadcast %cst_37 : f32 to vector<36x36xf32>
    %95 = arith.mulf %93, %94 : vector<36x36xf32>
    %cst_38 = arith.constant dense<0xFF800000> : vector<36xf32>
    %96 = vector.multi_reduction <maximumf>, %95, %cst_38 [1] : vector<36x36xf32> to vector<36xf32>
    %97 = vector.shape_cast %96 : vector<36xf32> to vector<36x1xf32>
    %98 = vector.broadcast %97 : vector<36x1xf32> to vector<36x36xf32>
    %99 = arith.subf %95, %98 : vector<36x36xf32>
    %100 = math.exp %99 : vector<36x36xf32>
    %cst_39 = arith.constant dense<0.000000e+00> : vector<36xf32>
    %101 = vector.multi_reduction <add>, %100, %cst_39 [1] : vector<36x36xf32> to vector<36xf32>
    %102 = vector.shape_cast %101 : vector<36xf32> to vector<36x1xf32>
    %103 = tpu.reciprocal %102 {approx = true} : vector<36x1xf32> -> vector<36x1xf32>
    %104 = vector.broadcast %103 : vector<36x1xf32> to vector<36x36xf32>
    %105 = arith.mulf %100, %104 : vector<36x36xf32>
    %106 = arith.truncf %105 : vector<36x36xf32> to vector<36x36xbf16>
    %107 = arith.truncf %90 : vector<36x32xf32> to vector<36x32xbf16>
    %cst_40 = arith.constant dense<0.000000e+00> : vector<36x32xf32>
    %108 = tpu.matmul %106, %107, %cst_40 {dimension_numbers = #tpu.dot_dimension_numbers<[1], [0], [0], [1], [0, 0, 1, 1], [], []>} : vector<36x36xbf16>, vector<36x32xbf16>, vector<36x32xf32> -> vector<36x32xf32>
    %109 = vector.extract_strided_slice %45 {offsets = [0, 96], sizes = [36, 32], strides = [1, 1]} : vector<36x384xf32> to vector<36x32xf32>
    %110 = vector.extract_strided_slice %45 {offsets = [0, 224], sizes = [36, 32], strides = [1, 1]} : vector<36x384xf32> to vector<36x32xf32>
    %111 = vector.extract_strided_slice %45 {offsets = [0, 352], sizes = [36, 32], strides = [1, 1]} : vector<36x384xf32> to vector<36x32xf32>
    %112 = arith.truncf %109 : vector<36x32xf32> to vector<36x32xbf16>
    %113 = arith.truncf %110 : vector<36x32xf32> to vector<36x32xbf16>
    %cst_41 = arith.constant dense<0.000000e+00> : vector<36x36xf32>
    %114 = tpu.matmul %112, %113, %cst_41 {dimension_numbers = #tpu.dot_dimension_numbers<[1], [1], [0], [0], [0, 0, 1, 0], [], []>} : vector<36x32xbf16>, vector<36x32xbf16>, vector<36x36xf32> -> vector<36x36xf32>
    %cst_42 = arith.constant 0.176776692 : f32
    %115 = vector.broadcast %cst_42 : f32 to vector<36x36xf32>
    %116 = arith.mulf %114, %115 : vector<36x36xf32>
    %cst_43 = arith.constant dense<0xFF800000> : vector<36xf32>
    %117 = vector.multi_reduction <maximumf>, %116, %cst_43 [1] : vector<36x36xf32> to vector<36xf32>
    %118 = vector.shape_cast %117 : vector<36xf32> to vector<36x1xf32>
    %119 = vector.broadcast %118 : vector<36x1xf32> to vector<36x36xf32>
    %120 = arith.subf %116, %119 : vector<36x36xf32>
    %121 = math.exp %120 : vector<36x36xf32>
    %cst_44 = arith.constant dense<0.000000e+00> : vector<36xf32>
    %122 = vector.multi_reduction <add>, %121, %cst_44 [1] : vector<36x36xf32> to vector<36xf32>
    %123 = vector.shape_cast %122 : vector<36xf32> to vector<36x1xf32>
    %124 = tpu.reciprocal %123 {approx = true} : vector<36x1xf32> -> vector<36x1xf32>
    %125 = vector.broadcast %124 : vector<36x1xf32> to vector<36x36xf32>
    %126 = arith.mulf %121, %125 : vector<36x36xf32>
    %127 = arith.truncf %126 : vector<36x36xf32> to vector<36x36xbf16>
    %128 = arith.truncf %111 : vector<36x32xf32> to vector<36x32xbf16>
    %cst_45 = arith.constant dense<0.000000e+00> : vector<36x32xf32>
    %129 = tpu.matmul %127, %128, %cst_45 {dimension_numbers = #tpu.dot_dimension_numbers<[1], [0], [0], [1], [0, 0, 1, 1], [], []>} : vector<36x36xbf16>, vector<36x32xbf16>, vector<36x32xf32> -> vector<36x32xf32>
    %130 = tpu.concatenate %66, %87, %108, %129 in 1 : vector<36x32xf32>, vector<36x32xf32>, vector<36x32xf32>, vector<36x32xf32> -> vector<36x128xf32>
    %c0_46 = arith.constant 0 : index
    %c0_47 = arith.constant 0 : index
    %c0_48 = arith.constant 0 : index
    %131 = vector.load %arg9[%c0_46, %c0_47, %c0_48] : memref<2x128x128xf32, #tpu.memory_space<vmem>>, vector<1x128x128xf32>
    %132 = vector.shape_cast %131 : vector<1x128x128xf32> to vector<128x128xf32>
    %133 = arith.truncf %130 : vector<36x128xf32> to vector<36x128xbf16>
    %134 = arith.truncf %132 : vector<128x128xf32> to vector<128x128xbf16>
    %cst_49 = arith.constant dense<0.000000e+00> : vector<36x128xf32>
    %135 = tpu.matmul %133, %134, %cst_49 {dimension_numbers = #tpu.dot_dimension_numbers<[1], [0], [0], [1], [0, 0, 1, 1], [], []>} : vector<36x128xbf16>, vector<128x128xbf16>, vector<36x128xf32> -> vector<36x128xf32>
    %136 = arith.addf %10, %135 : vector<36x128xf32>
    %c0_50 = arith.constant 0 : index
    %c0_51 = arith.constant 0 : index
    %c0_52 = arith.constant 0 : index
    %137 = vector.load %arg10[%c0_50, %c0_51, %c0_52] : memref<2x1x128xf32, #tpu.memory_space<vmem>>, vector<1x1x128xf32>
    %138 = vector.shape_cast %137 : vector<1x1x128xf32> to vector<1x128xf32>
    %139 = vector.broadcast %138 : vector<1x128xf32> to vector<36x128xf32>
    %140 = arith.addf %136, %139 : vector<36x128xf32>
    %c0_53 = arith.constant 0 : index
    %c0_54 = arith.constant 0 : index
    %c0_55 = arith.constant 0 : index
    %141 = vector.load %arg11[%c0_53, %c0_54, %c0_55] : memref<2x1x128xf32, #tpu.memory_space<vmem>>, vector<1x1x128xf32>
    %142 = vector.shape_cast %141 : vector<1x1x128xf32> to vector<1x128xf32>
    %c0_56 = arith.constant 0 : index
    %c0_57 = arith.constant 0 : index
    %c0_58 = arith.constant 0 : index
    %143 = vector.load %arg12[%c0_56, %c0_57, %c0_58] : memref<2x1x128xf32, #tpu.memory_space<vmem>>, vector<1x1x128xf32>
    %144 = vector.shape_cast %143 : vector<1x1x128xf32> to vector<1x128xf32>
    %cst_59 = arith.constant dense<0.000000e+00> : vector<36xf32>
    %145 = vector.multi_reduction <add>, %140, %cst_59 [1] : vector<36x128xf32> to vector<36xf32>
    %146 = vector.shape_cast %145 : vector<36xf32> to vector<36x1xf32>
    %cst_60 = arith.constant 1.280000e+02 : f32
    %147 = vector.broadcast %cst_60 : f32 to vector<36x1xf32>
    %148 = arith.divf %146, %147 : vector<36x1xf32>
    %149 = vector.broadcast %148 : vector<36x1xf32> to vector<36x128xf32>
    %150 = arith.subf %140, %149 : vector<36x128xf32>
    %151 = arith.mulf %150, %150 : vector<36x128xf32>
    %cst_61 = arith.constant dense<0.000000e+00> : vector<36xf32>
    %152 = vector.multi_reduction <add>, %151, %cst_61 [1] : vector<36x128xf32> to vector<36xf32>
    %153 = vector.shape_cast %152 : vector<36xf32> to vector<36x1xf32>
    %cst_62 = arith.constant 1.280000e+02 : f32
    %154 = vector.broadcast %cst_62 : f32 to vector<36x1xf32>
    %155 = arith.divf %153, %154 : vector<36x1xf32>
    %156 = vector.broadcast %148 : vector<36x1xf32> to vector<36x128xf32>
    %157 = arith.subf %140, %156 : vector<36x128xf32>
    %cst_63 = arith.constant 9.99999974E-6 : f32
    %158 = vector.broadcast %cst_63 : f32 to vector<36x1xf32>
    %159 = arith.addf %155, %158 : vector<36x1xf32>
    %160 = math.rsqrt %159 : vector<36x1xf32>
    %161 = vector.broadcast %160 : vector<36x1xf32> to vector<36x128xf32>
    %162 = arith.mulf %157, %161 : vector<36x128xf32>
    %163 = vector.broadcast %142 : vector<1x128xf32> to vector<36x128xf32>
    %164 = arith.mulf %162, %163 : vector<36x128xf32>
    %165 = vector.broadcast %144 : vector<1x128xf32> to vector<36x128xf32>
    %166 = arith.addf %164, %165 : vector<36x128xf32>
    %c0_64 = arith.constant 0 : index
    %c0_65 = arith.constant 0 : index
    %c0_66 = arith.constant 0 : index
    %167 = vector.load %arg13[%c0_64, %c0_65, %c0_66] : memref<2x128x256xf32, #tpu.memory_space<vmem>>, vector<1x128x256xf32>
    %168 = vector.shape_cast %167 : vector<1x128x256xf32> to vector<128x256xf32>
    %169 = arith.truncf %166 : vector<36x128xf32> to vector<36x128xbf16>
    %170 = arith.truncf %168 : vector<128x256xf32> to vector<128x256xbf16>
    %cst_67 = arith.constant dense<0.000000e+00> : vector<36x256xf32>
    %171 = tpu.matmul %169, %170, %cst_67 {dimension_numbers = #tpu.dot_dimension_numbers<[1], [0], [0], [1], [0, 0, 1, 1], [], []>} : vector<36x128xbf16>, vector<128x256xbf16>, vector<36x256xf32> -> vector<36x256xf32>
    %c0_68 = arith.constant 0 : index
    %c0_69 = arith.constant 0 : index
    %c0_70 = arith.constant 0 : index
    %172 = vector.load %arg14[%c0_68, %c0_69, %c0_70] : memref<2x1x256xf32, #tpu.memory_space<vmem>>, vector<1x1x256xf32>
    %173 = vector.shape_cast %172 : vector<1x1x256xf32> to vector<1x256xf32>
    %174 = vector.broadcast %173 : vector<1x256xf32> to vector<36x256xf32>
    %175 = arith.addf %171, %174 : vector<36x256xf32>
    %176 = arith.mulf %175, %175 : vector<36x256xf32>
    %177 = arith.mulf %175, %176 : vector<36x256xf32>
    %cst_71 = arith.constant 4.471500e-02 : f32
    %178 = vector.broadcast %cst_71 : f32 to vector<36x256xf32>
    %179 = arith.mulf %178, %177 : vector<36x256xf32>
    %180 = arith.addf %175, %179 : vector<36x256xf32>
    %cst_72 = arith.constant 0.797884583 : f32
    %181 = vector.broadcast %cst_72 : f32 to vector<36x256xf32>
    %182 = arith.mulf %181, %180 : vector<36x256xf32>
    %183 = math.tanh %182 : vector<36x256xf32>
    %cst_73 = arith.constant 1.000000e+00 : f32
    %184 = vector.broadcast %cst_73 : f32 to vector<36x256xf32>
    %185 = arith.addf %184, %183 : vector<36x256xf32>
    %cst_74 = arith.constant 5.000000e-01 : f32
    %186 = vector.broadcast %cst_74 : f32 to vector<36x256xf32>
    %187 = arith.mulf %186, %185 : vector<36x256xf32>
    %188 = arith.mulf %175, %187 : vector<36x256xf32>
    %c0_75 = arith.constant 0 : index
    %c0_76 = arith.constant 0 : index
    %c0_77 = arith.constant 0 : index
    %189 = vector.load %arg15[%c0_75, %c0_76, %c0_77] : memref<2x256x128xf32, #tpu.memory_space<vmem>>, vector<1x256x128xf32>
    %190 = vector.shape_cast %189 : vector<1x256x128xf32> to vector<256x128xf32>
    %191 = arith.truncf %188 : vector<36x256xf32> to vector<36x256xbf16>
    %192 = arith.truncf %190 : vector<256x128xf32> to vector<256x128xbf16>
    %cst_78 = arith.constant dense<0.000000e+00> : vector<36x128xf32>
    %193 = tpu.matmul %191, %192, %cst_78 {dimension_numbers = #tpu.dot_dimension_numbers<[1], [0], [0], [1], [0, 0, 1, 1], [], []>} : vector<36x256xbf16>, vector<256x128xbf16>, vector<36x128xf32> -> vector<36x128xf32>
    %194 = arith.addf %140, %193 : vector<36x128xf32>
    %c0_79 = arith.constant 0 : index
    %c0_80 = arith.constant 0 : index
    %c0_81 = arith.constant 0 : index
    %195 = vector.load %arg16[%c0_79, %c0_80, %c0_81] : memref<2x1x128xf32, #tpu.memory_space<vmem>>, vector<1x1x128xf32>
    %196 = vector.shape_cast %195 : vector<1x1x128xf32> to vector<1x128xf32>
    %197 = vector.broadcast %196 : vector<1x128xf32> to vector<36x128xf32>
    %198 = arith.addf %194, %197 : vector<36x128xf32>
    %c1 = arith.constant 1 : index
    %c0_82 = arith.constant 0 : index
    %c0_83 = arith.constant 0 : index
    %199 = vector.load %arg5[%c1, %c0_82, %c0_83] : memref<2x1x128xf32, #tpu.memory_space<vmem>>, vector<1x1x128xf32>
    %200 = vector.shape_cast %199 : vector<1x1x128xf32> to vector<1x128xf32>
    %c1_84 = arith.constant 1 : index
    %c0_85 = arith.constant 0 : index
    %c0_86 = arith.constant 0 : index
    %201 = vector.load %arg6[%c1_84, %c0_85, %c0_86] : memref<2x1x128xf32, #tpu.memory_space<vmem>>, vector<1x1x128xf32>
    %202 = vector.shape_cast %201 : vector<1x1x128xf32> to vector<1x128xf32>
    %cst_87 = arith.constant dense<0.000000e+00> : vector<36xf32>
    %203 = vector.multi_reduction <add>, %198, %cst_87 [1] : vector<36x128xf32> to vector<36xf32>
    %204 = vector.shape_cast %203 : vector<36xf32> to vector<36x1xf32>
    %cst_88 = arith.constant 1.280000e+02 : f32
    %205 = vector.broadcast %cst_88 : f32 to vector<36x1xf32>
    %206 = arith.divf %204, %205 : vector<36x1xf32>
    %207 = vector.broadcast %206 : vector<36x1xf32> to vector<36x128xf32>
    %208 = arith.subf %198, %207 : vector<36x128xf32>
    %209 = arith.mulf %208, %208 : vector<36x128xf32>
    %cst_89 = arith.constant dense<0.000000e+00> : vector<36xf32>
    %210 = vector.multi_reduction <add>, %209, %cst_89 [1] : vector<36x128xf32> to vector<36xf32>
    %211 = vector.shape_cast %210 : vector<36xf32> to vector<36x1xf32>
    %cst_90 = arith.constant 1.280000e+02 : f32
    %212 = vector.broadcast %cst_90 : f32 to vector<36x1xf32>
    %213 = arith.divf %211, %212 : vector<36x1xf32>
    %214 = vector.broadcast %206 : vector<36x1xf32> to vector<36x128xf32>
    %215 = arith.subf %198, %214 : vector<36x128xf32>
    %cst_91 = arith.constant 9.99999974E-6 : f32
    %216 = vector.broadcast %cst_91 : f32 to vector<36x1xf32>
    %217 = arith.addf %213, %216 : vector<36x1xf32>
    %218 = math.rsqrt %217 : vector<36x1xf32>
    %219 = vector.broadcast %218 : vector<36x1xf32> to vector<36x128xf32>
    %220 = arith.mulf %215, %219 : vector<36x128xf32>
    %221 = vector.broadcast %200 : vector<1x128xf32> to vector<36x128xf32>
    %222 = arith.mulf %220, %221 : vector<36x128xf32>
    %223 = vector.broadcast %202 : vector<1x128xf32> to vector<36x128xf32>
    %224 = arith.addf %222, %223 : vector<36x128xf32>
    %c1_92 = arith.constant 1 : index
    %c0_93 = arith.constant 0 : index
    %c0_94 = arith.constant 0 : index
    %225 = vector.load %arg7[%c1_92, %c0_93, %c0_94] : memref<2x128x384xf32, #tpu.memory_space<vmem>>, vector<1x128x384xf32>
    %226 = vector.shape_cast %225 : vector<1x128x384xf32> to vector<128x384xf32>
    %227 = arith.truncf %224 : vector<36x128xf32> to vector<36x128xbf16>
    %228 = arith.truncf %226 : vector<128x384xf32> to vector<128x384xbf16>
    %cst_95 = arith.constant dense<0.000000e+00> : vector<36x384xf32>
    %229 = tpu.matmul %227, %228, %cst_95 {dimension_numbers = #tpu.dot_dimension_numbers<[1], [0], [0], [1], [0, 0, 1, 1], [], []>} : vector<36x128xbf16>, vector<128x384xbf16>, vector<36x384xf32> -> vector<36x384xf32>
    %c1_96 = arith.constant 1 : index
    %c0_97 = arith.constant 0 : index
    %c0_98 = arith.constant 0 : index
    %230 = vector.load %arg8[%c1_96, %c0_97, %c0_98] : memref<2x1x384xf32, #tpu.memory_space<vmem>>, vector<1x1x384xf32>
    %231 = vector.shape_cast %230 : vector<1x1x384xf32> to vector<1x384xf32>
    %232 = vector.broadcast %231 : vector<1x384xf32> to vector<36x384xf32>
    %233 = arith.addf %229, %232 : vector<36x384xf32>
    %234 = vector.extract_strided_slice %233 {offsets = [0, 0], sizes = [36, 32], strides = [1, 1]} : vector<36x384xf32> to vector<36x32xf32>
    %235 = vector.extract_strided_slice %233 {offsets = [0, 128], sizes = [36, 32], strides = [1, 1]} : vector<36x384xf32> to vector<36x32xf32>
    %236 = vector.extract_strided_slice %233 {offsets = [0, 256], sizes = [36, 32], strides = [1, 1]} : vector<36x384xf32> to vector<36x32xf32>
    %237 = arith.truncf %234 : vector<36x32xf32> to vector<36x32xbf16>
    %238 = arith.truncf %235 : vector<36x32xf32> to vector<36x32xbf16>
    %cst_99 = arith.constant dense<0.000000e+00> : vector<36x36xf32>
    %239 = tpu.matmul %237, %238, %cst_99 {dimension_numbers = #tpu.dot_dimension_numbers<[1], [1], [0], [0], [0, 0, 1, 0], [], []>} : vector<36x32xbf16>, vector<36x32xbf16>, vector<36x36xf32> -> vector<36x36xf32>
    %cst_100 = arith.constant 0.176776692 : f32
    %240 = vector.broadcast %cst_100 : f32 to vector<36x36xf32>
    %241 = arith.mulf %239, %240 : vector<36x36xf32>
    %cst_101 = arith.constant dense<0xFF800000> : vector<36xf32>
    %242 = vector.multi_reduction <maximumf>, %241, %cst_101 [1] : vector<36x36xf32> to vector<36xf32>
    %243 = vector.shape_cast %242 : vector<36xf32> to vector<36x1xf32>
    %244 = vector.broadcast %243 : vector<36x1xf32> to vector<36x36xf32>
    %245 = arith.subf %241, %244 : vector<36x36xf32>
    %246 = math.exp %245 : vector<36x36xf32>
    %cst_102 = arith.constant dense<0.000000e+00> : vector<36xf32>
    %247 = vector.multi_reduction <add>, %246, %cst_102 [1] : vector<36x36xf32> to vector<36xf32>
    %248 = vector.shape_cast %247 : vector<36xf32> to vector<36x1xf32>
    %249 = tpu.reciprocal %248 {approx = true} : vector<36x1xf32> -> vector<36x1xf32>
    %250 = vector.broadcast %249 : vector<36x1xf32> to vector<36x36xf32>
    %251 = arith.mulf %246, %250 : vector<36x36xf32>
    %252 = arith.truncf %251 : vector<36x36xf32> to vector<36x36xbf16>
    %253 = arith.truncf %236 : vector<36x32xf32> to vector<36x32xbf16>
    %cst_103 = arith.constant dense<0.000000e+00> : vector<36x32xf32>
    %254 = tpu.matmul %252, %253, %cst_103 {dimension_numbers = #tpu.dot_dimension_numbers<[1], [0], [0], [1], [0, 0, 1, 1], [], []>} : vector<36x36xbf16>, vector<36x32xbf16>, vector<36x32xf32> -> vector<36x32xf32>
    %255 = vector.extract_strided_slice %233 {offsets = [0, 32], sizes = [36, 32], strides = [1, 1]} : vector<36x384xf32> to vector<36x32xf32>
    %256 = vector.extract_strided_slice %233 {offsets = [0, 160], sizes = [36, 32], strides = [1, 1]} : vector<36x384xf32> to vector<36x32xf32>
    %257 = vector.extract_strided_slice %233 {offsets = [0, 288], sizes = [36, 32], strides = [1, 1]} : vector<36x384xf32> to vector<36x32xf32>
    %258 = arith.truncf %255 : vector<36x32xf32> to vector<36x32xbf16>
    %259 = arith.truncf %256 : vector<36x32xf32> to vector<36x32xbf16>
    %cst_104 = arith.constant dense<0.000000e+00> : vector<36x36xf32>
    %260 = tpu.matmul %258, %259, %cst_104 {dimension_numbers = #tpu.dot_dimension_numbers<[1], [1], [0], [0], [0, 0, 1, 0], [], []>} : vector<36x32xbf16>, vector<36x32xbf16>, vector<36x36xf32> -> vector<36x36xf32>
    %cst_105 = arith.constant 0.176776692 : f32
    %261 = vector.broadcast %cst_105 : f32 to vector<36x36xf32>
    %262 = arith.mulf %260, %261 : vector<36x36xf32>
    %cst_106 = arith.constant dense<0xFF800000> : vector<36xf32>
    %263 = vector.multi_reduction <maximumf>, %262, %cst_106 [1] : vector<36x36xf32> to vector<36xf32>
    %264 = vector.shape_cast %263 : vector<36xf32> to vector<36x1xf32>
    %265 = vector.broadcast %264 : vector<36x1xf32> to vector<36x36xf32>
    %266 = arith.subf %262, %265 : vector<36x36xf32>
    %267 = math.exp %266 : vector<36x36xf32>
    %cst_107 = arith.constant dense<0.000000e+00> : vector<36xf32>
    %268 = vector.multi_reduction <add>, %267, %cst_107 [1] : vector<36x36xf32> to vector<36xf32>
    %269 = vector.shape_cast %268 : vector<36xf32> to vector<36x1xf32>
    %270 = tpu.reciprocal %269 {approx = true} : vector<36x1xf32> -> vector<36x1xf32>
    %271 = vector.broadcast %270 : vector<36x1xf32> to vector<36x36xf32>
    %272 = arith.mulf %267, %271 : vector<36x36xf32>
    %273 = arith.truncf %272 : vector<36x36xf32> to vector<36x36xbf16>
    %274 = arith.truncf %257 : vector<36x32xf32> to vector<36x32xbf16>
    %cst_108 = arith.constant dense<0.000000e+00> : vector<36x32xf32>
    %275 = tpu.matmul %273, %274, %cst_108 {dimension_numbers = #tpu.dot_dimension_numbers<[1], [0], [0], [1], [0, 0, 1, 1], [], []>} : vector<36x36xbf16>, vector<36x32xbf16>, vector<36x32xf32> -> vector<36x32xf32>
    %276 = vector.extract_strided_slice %233 {offsets = [0, 64], sizes = [36, 32], strides = [1, 1]} : vector<36x384xf32> to vector<36x32xf32>
    %277 = vector.extract_strided_slice %233 {offsets = [0, 192], sizes = [36, 32], strides = [1, 1]} : vector<36x384xf32> to vector<36x32xf32>
    %278 = vector.extract_strided_slice %233 {offsets = [0, 320], sizes = [36, 32], strides = [1, 1]} : vector<36x384xf32> to vector<36x32xf32>
    %279 = arith.truncf %276 : vector<36x32xf32> to vector<36x32xbf16>
    %280 = arith.truncf %277 : vector<36x32xf32> to vector<36x32xbf16>
    %cst_109 = arith.constant dense<0.000000e+00> : vector<36x36xf32>
    %281 = tpu.matmul %279, %280, %cst_109 {dimension_numbers = #tpu.dot_dimension_numbers<[1], [1], [0], [0], [0, 0, 1, 0], [], []>} : vector<36x32xbf16>, vector<36x32xbf16>, vector<36x36xf32> -> vector<36x36xf32>
    %cst_110 = arith.constant 0.176776692 : f32
    %282 = vector.broadcast %cst_110 : f32 to vector<36x36xf32>
    %283 = arith.mulf %281, %282 : vector<36x36xf32>
    %cst_111 = arith.constant dense<0xFF800000> : vector<36xf32>
    %284 = vector.multi_reduction <maximumf>, %283, %cst_111 [1] : vector<36x36xf32> to vector<36xf32>
    %285 = vector.shape_cast %284 : vector<36xf32> to vector<36x1xf32>
    %286 = vector.broadcast %285 : vector<36x1xf32> to vector<36x36xf32>
    %287 = arith.subf %283, %286 : vector<36x36xf32>
    %288 = math.exp %287 : vector<36x36xf32>
    %cst_112 = arith.constant dense<0.000000e+00> : vector<36xf32>
    %289 = vector.multi_reduction <add>, %288, %cst_112 [1] : vector<36x36xf32> to vector<36xf32>
    %290 = vector.shape_cast %289 : vector<36xf32> to vector<36x1xf32>
    %291 = tpu.reciprocal %290 {approx = true} : vector<36x1xf32> -> vector<36x1xf32>
    %292 = vector.broadcast %291 : vector<36x1xf32> to vector<36x36xf32>
    %293 = arith.mulf %288, %292 : vector<36x36xf32>
    %294 = arith.truncf %293 : vector<36x36xf32> to vector<36x36xbf16>
    %295 = arith.truncf %278 : vector<36x32xf32> to vector<36x32xbf16>
    %cst_113 = arith.constant dense<0.000000e+00> : vector<36x32xf32>
    %296 = tpu.matmul %294, %295, %cst_113 {dimension_numbers = #tpu.dot_dimension_numbers<[1], [0], [0], [1], [0, 0, 1, 1], [], []>} : vector<36x36xbf16>, vector<36x32xbf16>, vector<36x32xf32> -> vector<36x32xf32>
    %297 = vector.extract_strided_slice %233 {offsets = [0, 96], sizes = [36, 32], strides = [1, 1]} : vector<36x384xf32> to vector<36x32xf32>
    %298 = vector.extract_strided_slice %233 {offsets = [0, 224], sizes = [36, 32], strides = [1, 1]} : vector<36x384xf32> to vector<36x32xf32>
    %299 = vector.extract_strided_slice %233 {offsets = [0, 352], sizes = [36, 32], strides = [1, 1]} : vector<36x384xf32> to vector<36x32xf32>
    %300 = arith.truncf %297 : vector<36x32xf32> to vector<36x32xbf16>
    %301 = arith.truncf %298 : vector<36x32xf32> to vector<36x32xbf16>
    %cst_114 = arith.constant dense<0.000000e+00> : vector<36x36xf32>
    %302 = tpu.matmul %300, %301, %cst_114 {dimension_numbers = #tpu.dot_dimension_numbers<[1], [1], [0], [0], [0, 0, 1, 0], [], []>} : vector<36x32xbf16>, vector<36x32xbf16>, vector<36x36xf32> -> vector<36x36xf32>
    %cst_115 = arith.constant 0.176776692 : f32
    %303 = vector.broadcast %cst_115 : f32 to vector<36x36xf32>
    %304 = arith.mulf %302, %303 : vector<36x36xf32>
    %cst_116 = arith.constant dense<0xFF800000> : vector<36xf32>
    %305 = vector.multi_reduction <maximumf>, %304, %cst_116 [1] : vector<36x36xf32> to vector<36xf32>
    %306 = vector.shape_cast %305 : vector<36xf32> to vector<36x1xf32>
    %307 = vector.broadcast %306 : vector<36x1xf32> to vector<36x36xf32>
    %308 = arith.subf %304, %307 : vector<36x36xf32>
    %309 = math.exp %308 : vector<36x36xf32>
    %cst_117 = arith.constant dense<0.000000e+00> : vector<36xf32>
    %310 = vector.multi_reduction <add>, %309, %cst_117 [1] : vector<36x36xf32> to vector<36xf32>
    %311 = vector.shape_cast %310 : vector<36xf32> to vector<36x1xf32>
    %312 = tpu.reciprocal %311 {approx = true} : vector<36x1xf32> -> vector<36x1xf32>
    %313 = vector.broadcast %312 : vector<36x1xf32> to vector<36x36xf32>
    %314 = arith.mulf %309, %313 : vector<36x36xf32>
    %315 = arith.truncf %314 : vector<36x36xf32> to vector<36x36xbf16>
    %316 = arith.truncf %299 : vector<36x32xf32> to vector<36x32xbf16>
    %cst_118 = arith.constant dense<0.000000e+00> : vector<36x32xf32>
    %317 = tpu.matmul %315, %316, %cst_118 {dimension_numbers = #tpu.dot_dimension_numbers<[1], [0], [0], [1], [0, 0, 1, 1], [], []>} : vector<36x36xbf16>, vector<36x32xbf16>, vector<36x32xf32> -> vector<36x32xf32>
    %318 = tpu.concatenate %254, %275, %296, %317 in 1 : vector<36x32xf32>, vector<36x32xf32>, vector<36x32xf32>, vector<36x32xf32> -> vector<36x128xf32>
    %c1_119 = arith.constant 1 : index
    %c0_120 = arith.constant 0 : index
    %c0_121 = arith.constant 0 : index
    %319 = vector.load %arg9[%c1_119, %c0_120, %c0_121] : memref<2x128x128xf32, #tpu.memory_space<vmem>>, vector<1x128x128xf32>
    %320 = vector.shape_cast %319 : vector<1x128x128xf32> to vector<128x128xf32>
    %321 = arith.truncf %318 : vector<36x128xf32> to vector<36x128xbf16>
    %322 = arith.truncf %320 : vector<128x128xf32> to vector<128x128xbf16>
    %cst_122 = arith.constant dense<0.000000e+00> : vector<36x128xf32>
    %323 = tpu.matmul %321, %322, %cst_122 {dimension_numbers = #tpu.dot_dimension_numbers<[1], [0], [0], [1], [0, 0, 1, 1], [], []>} : vector<36x128xbf16>, vector<128x128xbf16>, vector<36x128xf32> -> vector<36x128xf32>
    %324 = arith.addf %198, %323 : vector<36x128xf32>
    %c1_123 = arith.constant 1 : index
    %c0_124 = arith.constant 0 : index
    %c0_125 = arith.constant 0 : index
    %325 = vector.load %arg10[%c1_123, %c0_124, %c0_125] : memref<2x1x128xf32, #tpu.memory_space<vmem>>, vector<1x1x128xf32>
    %326 = vector.shape_cast %325 : vector<1x1x128xf32> to vector<1x128xf32>
    %327 = vector.broadcast %326 : vector<1x128xf32> to vector<36x128xf32>
    %328 = arith.addf %324, %327 : vector<36x128xf32>
    %c1_126 = arith.constant 1 : index
    %c0_127 = arith.constant 0 : index
    %c0_128 = arith.constant 0 : index
    %329 = vector.load %arg11[%c1_126, %c0_127, %c0_128] : memref<2x1x128xf32, #tpu.memory_space<vmem>>, vector<1x1x128xf32>
    %330 = vector.shape_cast %329 : vector<1x1x128xf32> to vector<1x128xf32>
    %c1_129 = arith.constant 1 : index
    %c0_130 = arith.constant 0 : index
    %c0_131 = arith.constant 0 : index
    %331 = vector.load %arg12[%c1_129, %c0_130, %c0_131] : memref<2x1x128xf32, #tpu.memory_space<vmem>>, vector<1x1x128xf32>
    %332 = vector.shape_cast %331 : vector<1x1x128xf32> to vector<1x128xf32>
    %cst_132 = arith.constant dense<0.000000e+00> : vector<36xf32>
    %333 = vector.multi_reduction <add>, %328, %cst_132 [1] : vector<36x128xf32> to vector<36xf32>
    %334 = vector.shape_cast %333 : vector<36xf32> to vector<36x1xf32>
    %cst_133 = arith.constant 1.280000e+02 : f32
    %335 = vector.broadcast %cst_133 : f32 to vector<36x1xf32>
    %336 = arith.divf %334, %335 : vector<36x1xf32>
    %337 = vector.broadcast %336 : vector<36x1xf32> to vector<36x128xf32>
    %338 = arith.subf %328, %337 : vector<36x128xf32>
    %339 = arith.mulf %338, %338 : vector<36x128xf32>
    %cst_134 = arith.constant dense<0.000000e+00> : vector<36xf32>
    %340 = vector.multi_reduction <add>, %339, %cst_134 [1] : vector<36x128xf32> to vector<36xf32>
    %341 = vector.shape_cast %340 : vector<36xf32> to vector<36x1xf32>
    %cst_135 = arith.constant 1.280000e+02 : f32
    %342 = vector.broadcast %cst_135 : f32 to vector<36x1xf32>
    %343 = arith.divf %341, %342 : vector<36x1xf32>
    %344 = vector.broadcast %336 : vector<36x1xf32> to vector<36x128xf32>
    %345 = arith.subf %328, %344 : vector<36x128xf32>
    %cst_136 = arith.constant 9.99999974E-6 : f32
    %346 = vector.broadcast %cst_136 : f32 to vector<36x1xf32>
    %347 = arith.addf %343, %346 : vector<36x1xf32>
    %348 = math.rsqrt %347 : vector<36x1xf32>
    %349 = vector.broadcast %348 : vector<36x1xf32> to vector<36x128xf32>
    %350 = arith.mulf %345, %349 : vector<36x128xf32>
    %351 = vector.broadcast %330 : vector<1x128xf32> to vector<36x128xf32>
    %352 = arith.mulf %350, %351 : vector<36x128xf32>
    %353 = vector.broadcast %332 : vector<1x128xf32> to vector<36x128xf32>
    %354 = arith.addf %352, %353 : vector<36x128xf32>
    %c1_137 = arith.constant 1 : index
    %c0_138 = arith.constant 0 : index
    %c0_139 = arith.constant 0 : index
    %355 = vector.load %arg13[%c1_137, %c0_138, %c0_139] : memref<2x128x256xf32, #tpu.memory_space<vmem>>, vector<1x128x256xf32>
    %356 = vector.shape_cast %355 : vector<1x128x256xf32> to vector<128x256xf32>
    %357 = arith.truncf %354 : vector<36x128xf32> to vector<36x128xbf16>
    %358 = arith.truncf %356 : vector<128x256xf32> to vector<128x256xbf16>
    %cst_140 = arith.constant dense<0.000000e+00> : vector<36x256xf32>
    %359 = tpu.matmul %357, %358, %cst_140 {dimension_numbers = #tpu.dot_dimension_numbers<[1], [0], [0], [1], [0, 0, 1, 1], [], []>} : vector<36x128xbf16>, vector<128x256xbf16>, vector<36x256xf32> -> vector<36x256xf32>
    %c1_141 = arith.constant 1 : index
    %c0_142 = arith.constant 0 : index
    %c0_143 = arith.constant 0 : index
    %360 = vector.load %arg14[%c1_141, %c0_142, %c0_143] : memref<2x1x256xf32, #tpu.memory_space<vmem>>, vector<1x1x256xf32>
    %361 = vector.shape_cast %360 : vector<1x1x256xf32> to vector<1x256xf32>
    %362 = vector.broadcast %361 : vector<1x256xf32> to vector<36x256xf32>
    %363 = arith.addf %359, %362 : vector<36x256xf32>
    %364 = arith.mulf %363, %363 : vector<36x256xf32>
    %365 = arith.mulf %363, %364 : vector<36x256xf32>
    %cst_144 = arith.constant 4.471500e-02 : f32
    %366 = vector.broadcast %cst_144 : f32 to vector<36x256xf32>
    %367 = arith.mulf %366, %365 : vector<36x256xf32>
    %368 = arith.addf %363, %367 : vector<36x256xf32>
    %cst_145 = arith.constant 0.797884583 : f32
    %369 = vector.broadcast %cst_145 : f32 to vector<36x256xf32>
    %370 = arith.mulf %369, %368 : vector<36x256xf32>
    %371 = math.tanh %370 : vector<36x256xf32>
    %cst_146 = arith.constant 1.000000e+00 : f32
    %372 = vector.broadcast %cst_146 : f32 to vector<36x256xf32>
    %373 = arith.addf %372, %371 : vector<36x256xf32>
    %cst_147 = arith.constant 5.000000e-01 : f32
    %374 = vector.broadcast %cst_147 : f32 to vector<36x256xf32>
    %375 = arith.mulf %374, %373 : vector<36x256xf32>
    %376 = arith.mulf %363, %375 : vector<36x256xf32>
    %c1_148 = arith.constant 1 : index
    %c0_149 = arith.constant 0 : index
    %c0_150 = arith.constant 0 : index
    %377 = vector.load %arg15[%c1_148, %c0_149, %c0_150] : memref<2x256x128xf32, #tpu.memory_space<vmem>>, vector<1x256x128xf32>
    %378 = vector.shape_cast %377 : vector<1x256x128xf32> to vector<256x128xf32>
    %379 = arith.truncf %376 : vector<36x256xf32> to vector<36x256xbf16>
    %380 = arith.truncf %378 : vector<256x128xf32> to vector<256x128xbf16>
    %cst_151 = arith.constant dense<0.000000e+00> : vector<36x128xf32>
    %381 = tpu.matmul %379, %380, %cst_151 {dimension_numbers = #tpu.dot_dimension_numbers<[1], [0], [0], [1], [0, 0, 1, 1], [], []>} : vector<36x256xbf16>, vector<256x128xbf16>, vector<36x128xf32> -> vector<36x128xf32>
    %382 = arith.addf %328, %381 : vector<36x128xf32>
    %c1_152 = arith.constant 1 : index
    %c0_153 = arith.constant 0 : index
    %c0_154 = arith.constant 0 : index
    %383 = vector.load %arg16[%c1_152, %c0_153, %c0_154] : memref<2x1x128xf32, #tpu.memory_space<vmem>>, vector<1x1x128xf32>
    %384 = vector.shape_cast %383 : vector<1x1x128xf32> to vector<1x128xf32>
    %385 = vector.broadcast %384 : vector<1x128xf32> to vector<36x128xf32>
    %386 = arith.addf %382, %385 : vector<36x128xf32>
    %cst_155 = arith.constant dense<0.000000e+00> : vector<128xf32>
    %387 = vector.multi_reduction <add>, %386, %cst_155 [0] : vector<36x128xf32> to vector<128xf32>
    %388 = vector.shape_cast %387 : vector<128xf32> to vector<1x128xf32>
    %cst_156 = arith.constant 3.600000e+01 : f32
    %389 = vector.broadcast %cst_156 : f32 to vector<1x128xf32>
    %390 = arith.divf %388, %389 : vector<1x128xf32>
    %c0_157 = arith.constant 0 : index
    %c0_158 = arith.constant 0 : index
    %c0_159 = arith.constant 0 : index
    %391 = vector.load %arg17[%c0_157, %c0_158, %c0_159] : memref<1x1x128xf32, #tpu.memory_space<vmem>>, vector<1x1x128xf32>
    %392 = vector.shape_cast %391 : vector<1x1x128xf32> to vector<1x128xf32>
    %393 = vector.shape_cast %390 : vector<1x128xf32> to vector<1x1x128xf32>
    tpu.vector_store %arg17[%c0_157, %c0_158, %c0_159], %393 {strides = array<i32>} : memref<1x1x128xf32, #tpu.memory_space<vmem>>, vector<1x1x128xf32>,
    return
  }
  func.func @transform_0(%arg0: i32) -> (i32, i32, i32) {
    %c0_i32 = arith.constant 0 : i32
    %c0_i32_0 = arith.constant 0 : i32
    %c0_i32_1 = arith.constant 0 : i32
    return %arg0, %c0_i32, %c0_i32_0 : i32, i32, i32
  }
  func.func @transform_1(%arg0: i32) -> (i32, i32) {
    %c0_i32 = arith.constant 0 : i32
    %c0_i32_0 = arith.constant 0 : i32
    %c0_i32_1 = arith.constant 0 : i32
    return %c0_i32, %c0_i32_0 : i32, i32
  }
  func.func @transform_2(%arg0: i32) -> (i32, i32) {
    %c0_i32 = arith.constant 0 : i32
    %c0_i32_0 = arith.constant 0 : i32
    %c0_i32_1 = arith.constant 0 : i32
    return %c0_i32, %c0_i32_0 : i32, i32
  }
  func.func @transform_3(%arg0: i32) -> (i32, i32) {
    %c0_i32 = arith.constant 0 : i32
    %c0_i32_0 = arith.constant 0 : i32
    %c0_i32_1 = arith.constant 0 : i32
    return %c0_i32, %c0_i32_0 : i32, i32
  }
  func.func @transform_4(%arg0: i32) -> (i32, i32, i32) {
    %c0_i32 = arith.constant 0 : i32
    %c0_i32_0 = arith.constant 0 : i32
    %c0_i32_1 = arith.constant 0 : i32
    %c0_i32_2 = arith.constant 0 : i32
    return %c0_i32, %c0_i32_0, %c0_i32_1 : i32, i32, i32
  }
  func.func @transform_5(%arg0: i32) -> (i32, i32, i32) {
    %c0_i32 = arith.constant 0 : i32
    %c0_i32_0 = arith.constant 0 : i32
    %c0_i32_1 = arith.constant 0 : i32
    %c0_i32_2 = arith.constant 0 : i32
    return %c0_i32, %c0_i32_0, %c0_i32_1 : i32, i32, i32
  }
  func.func @transform_6(%arg0: i32) -> (i32, i32, i32) {
    %c0_i32 = arith.constant 0 : i32
    %c0_i32_0 = arith.constant 0 : i32
    %c0_i32_1 = arith.constant 0 : i32
    %c0_i32_2 = arith.constant 0 : i32
    return %c0_i32, %c0_i32_0, %c0_i32_1 : i32, i32, i32
  }
  func.func @transform_7(%arg0: i32) -> (i32, i32, i32) {
    %c0_i32 = arith.constant 0 : i32
    %c0_i32_0 = arith.constant 0 : i32
    %c0_i32_1 = arith.constant 0 : i32
    %c0_i32_2 = arith.constant 0 : i32
    return %c0_i32, %c0_i32_0, %c0_i32_1 : i32, i32, i32
  }
  func.func @transform_8(%arg0: i32) -> (i32, i32, i32) {
    %c0_i32 = arith.constant 0 : i32
    %c0_i32_0 = arith.constant 0 : i32
    %c0_i32_1 = arith.constant 0 : i32
    %c0_i32_2 = arith.constant 0 : i32
    return %c0_i32, %c0_i32_0, %c0_i32_1 : i32, i32, i32
  }
  func.func @transform_9(%arg0: i32) -> (i32, i32, i32) {
    %c0_i32 = arith.constant 0 : i32
    %c0_i32_0 = arith.constant 0 : i32
    %c0_i32_1 = arith.constant 0 : i32
    %c0_i32_2 = arith.constant 0 : i32
    return %c0_i32, %c0_i32_0, %c0_i32_1 : i32, i32, i32
  }
  func.func @transform_10(%arg0: i32) -> (i32, i32, i32) {
    %c0_i32 = arith.constant 0 : i32
    %c0_i32_0 = arith.constant 0 : i32
    %c0_i32_1 = arith.constant 0 : i32
    %c0_i32_2 = arith.constant 0 : i32
    return %c0_i32, %c0_i32_0, %c0_i32_1 : i32, i32, i32
  }
  func.func @transform_11(%arg0: i32) -> (i32, i32, i32) {
    %c0_i32 = arith.constant 0 : i32
    %c0_i32_0 = arith.constant 0 : i32
    %c0_i32_1 = arith.constant 0 : i32
    %c0_i32_2 = arith.constant 0 : i32
    return %c0_i32, %c0_i32_0, %c0_i32_1 : i32, i32, i32
  }
  func.func @transform_12(%arg0: i32) -> (i32, i32, i32) {
    %c0_i32 = arith.constant 0 : i32
    %c0_i32_0 = arith.constant 0 : i32
    %c0_i32_1 = arith.constant 0 : i32
    %c0_i32_2 = arith.constant 0 : i32
    return %c0_i32, %c0_i32_0, %c0_i32_1 : i32, i32, i32
  }
  func.func @transform_13(%arg0: i32) -> (i32, i32, i32) {
    %c0_i32 = arith.constant 0 : i32
    %c0_i32_0 = arith.constant 0 : i32
    %c0_i32_1 = arith.constant 0 : i32
    %c0_i32_2 = arith.constant 0 : i32
    return %c0_i32, %c0_i32_0, %c0_i32_1 : i32, i32, i32
  }
  func.func @transform_14(%arg0: i32) -> (i32, i32, i32) {
    %c0_i32 = arith.constant 0 : i32
    %c0_i32_0 = arith.constant 0 : i32
    %c0_i32_1 = arith.constant 0 : i32
    %c0_i32_2 = arith.constant 0 : i32
    return %c0_i32, %c0_i32_0, %c0_i32_1 : i32, i32, i32
  }
  func.func @transform_15(%arg0: i32) -> (i32, i32, i32) {
    %c0_i32 = arith.constant 0 : i32
    %c0_i32_0 = arith.constant 0 : i32
    %c0_i32_1 = arith.constant 0 : i32
    %c0_i32_2 = arith.constant 0 : i32
    return %c0_i32, %c0_i32_0, %c0_i32_1 : i32, i32, i32
  }
  func.func @transform_16(%arg0: i32) -> (i32, i32, i32) {
    %c0_i32 = arith.constant 0 : i32
    %c0_i32_0 = arith.constant 0 : i32
    %c0_i32_1 = arith.constant 0 : i32
    return %arg0, %c0_i32, %c0_i32_0 : i32, i32, i32
  }
}

</mosaic_0001>

<bundles_post_ra>
// kernel: tpu_custom_call.1
= control target key start
LH: loop header
LB: loop body
LE: loop exit
PB: predicated region body
PF: predicated region fallthrough
CT: control target
= control target key end

     0   :  { %s7019_s0 = inlined_call_operand.vmem [shape: f32[1,36,640], index: 0, kind: input, shape index: {}]   ;;  %s7020_s1 = inlined_call_operand.hbm [shape: f32[640,128], index: 1, kind: input, shape index: {}]   ;;  %s7021_s2 = inlined_call_operand.vmem [shape: f32[1,128], index: 2, kind: input, shape index: {}]   ;;  %s7022_s3 = inlined_call_operand.vmem [shape: f32[36,128], index: 3, kind: input, shape index: {}]   ;;  %s7023_s4 = inlined_call_operand.vmem [shape: f32[2,1,128], index: 4, kind: input, shape index: {}]   ;;  %s7024_s5 = inlined_call_operand.vmem [shape: f32[2,1,128], index: 5, kind: input, shape index: {}]   ;;  %s7025_s6 = inlined_call_operand.hbm [shape: f32[2,128,384], index: 6, kind: input, shape index: {}]   ;;  %s7026_s7 = inlined_call_operand.vmem [shape: f32[2,1,384], index: 7, kind: input, shape index: {}]   ;;  %s7027_s8 = inlined_call_operand.vmem [shape: f32[2,128,128], index: 8, kind: input, shape index: {}]   ;;  %s7028_s9 = inlined_call_operand.vmem [shape: f32[2,1,128], index: 9, kind: input, shape index: {}]   ;;  %s7029_s10 = inlined_call_operand.vmem [shape: f32[2,1,128], index: 10, kind: input, shape index: {}]   ;;  %s7030_s11 = inlined_call_operand.vmem [shape: f32[2,1,128], index: 11, kind: input, shape index: {}]   ;;  %s7031_s12 = inlined_call_operand.hbm [shape: f32[2,128,256], index: 12, kind: input, shape index: {}]   ;;  %s7032_s13 = inlined_call_operand.vmem [shape: f32[2,1,256], index: 13, kind: input, shape index: {}]   ;;  %s7033_s14 = inlined_call_operand.hbm [shape: f32[2,256,128], index: 14, kind: input, shape index: {}]   ;;  %s7034_s15 = inlined_call_operand.vmem [shape: f32[2,1,128], index: 15, kind: input, shape index: {}]   ;;  %s7035_s16 = inlined_call_operand.hbm [shape: f32[1,1,128], index: 16, kind: output, shape index: {}]  }
   0x1   :  { %7037 = sst [smem:[#allocation15_spill]] %s7019_s0 }
   0x2   :  { %21 = vsyncpa [#allocation3], 0 }
   0x3   :  { %22 = vsyncpa [#allocation6], 0 }
   0x4   :  { %23 = vsyncpa [#allocation9], 0 }
   0x5   :  { %24 = vsyncpa [#allocation4], 0  ;;  %s5311_s21 = smov [#allocation5]   ;;  %s5193_s25 = scalar_lea.hbm %s7025_s6, 12288 }
   0x6   :  { %s52_s22 = sshll.u32 %s5311_s21, 4  ;;  %p5194_p0 = scmp.ne.s32.totalorder %s7025_s6, %s5193_s25  ;;  %s53_s22 = int_to_ptr.vmem [resolvable:$true] %s52_s22 }
   0x7   :  { %p5197_p1 = scmp.lt.u32.totalorder %s5193_s25, %s7025_s6 }
   0x9   :  { %p5199_p2 = pnand %p5197_p1, %p5194_p0 }
   0xb   :  { %5202 = shalt.err (!%p5199_p2)
}
   0xc   :  { %s5203_s30 = scalar_lea.vmem %s53_s22, 12288  ;;  %p5208_p4 = scmp.lt.s32.totalorder %s53_s22, %s53_s22 }
   0xd   :  { %p5204_p3 = scmp.ne.s32.totalorder %s53_s22, %s5203_s30  ;;  %p5209_p5 = scmp.lt.s32.totalorder %s5203_s30, %s5203_s30 }
   0xf   :  { %p5210_p6 = por %p5209_p5, %p5208_p4 }
  0x11   :  { %p5211_p7 = pnand %p5210_p6, %p5204_p3 }
  0x13   :  { %5214 = shalt.err (!%p5211_p7)
}
  0x14   :  { %s5312_s0 = smov 384   ;;  %s5313_s17 = smov 24  }
  0x15   :  { %58 = dma.hbm_to_vmem [thread:$0]  %s7025_s6, 12288, %s53_s22, [#allocation6], %s5312_s0, %s5312_s0, %s5313_s17  }
  0x16   :  { %s5314_s20 = smov [#allocation2]   ;;  %s5215_s25 = scalar_lea.hbm %s7020_s1, 10240 }
  0x17   :  { %s32_s21 = sshll.u32 %s5314_s20, 4  ;;  %p5216_p8 = scmp.ne.s32.totalorder %s7020_s1, %s5215_s25  ;;  %s33_s21 = int_to_ptr.vmem [resolvable:$true] %s32_s21 }
  0x18   :  { %p5219_p9 = scmp.lt.u32.totalorder %s5215_s25, %s7020_s1 }
  0x1a   :  { %p5221_p10 = pnand %p5219_p9, %p5216_p8 }
  0x1c   :  { %5224 = shalt.err (!%p5221_p10)
}
  0x1d   :  { %s5225_s30 = scalar_lea.vmem %s33_s21, 10240  ;;  %p5230_p12 = scmp.lt.s32.totalorder %s33_s21, %s33_s21 }
  0x1e   :  { %p5226_p11 = scmp.ne.s32.totalorder %s33_s21, %s5225_s30  ;;  %p5231_p13 = scmp.lt.s32.totalorder %s5225_s30, %s5225_s30 }
  0x20   :  { %p5232_p0 = por %p5231_p13, %p5230_p12 }
  0x22   :  { %p5233_p1 = pnand %p5232_p0, %p5226_p11 }
  0x24   :  { %5236 = shalt.err (!%p5233_p1)
}
  0x25   :  { %s5315_s6 = smov 128   ;;  %s5316_s22 = smov 8  }
  0x26   :  { %38 = dma.hbm_to_vmem [thread:$0]  %s7020_s1, 10240, %s33_s21, [#allocation3], %s5315_s6, %s5315_s6, %s5316_s22  }
  0x27   :  { %s5317_s18 = smov [#allocation7]   ;;  %s5237_s24 = scalar_lea.hbm %s7031_s12, 8192 }
  0x28   :  { %s74_s19 = sshll.u32 %s5317_s18, 4  ;;  %p5238_p2 = scmp.ne.s32.totalorder %s7031_s12, %s5237_s24  ;;  %s75_s19 = int_to_ptr.vmem [resolvable:$true] %s74_s19 }
  0x29   :  { %p5241_p3 = scmp.lt.u32.totalorder %s5237_s24, %s7031_s12 }
  0x2b   :  { %p5243_p4 = pnand %p5241_p3, %p5238_p2 }
  0x2d   :  { %5246 = shalt.err (!%p5243_p4)
}
  0x2e   :  { %s5247_s29 = scalar_lea.vmem %s75_s19, 8192  ;;  %p5252_p6 = scmp.lt.s32.totalorder %s75_s19, %s75_s19 }
  0x2f   :  { %p5248_p5 = scmp.ne.s32.totalorder %s75_s19, %s5247_s29  ;;  %p5253_p7 = scmp.lt.s32.totalorder %s5247_s29, %s5247_s29 }
  0x31   :  { %p5254_p8 = por %p5253_p7, %p5252_p6 }
  0x33   :  { %p5255_p9 = pnand %p5254_p8, %p5248_p5 }
  0x35   :  { %5258 = shalt.err (!%p5255_p9)
}
  0x36   :  { %s5318_s1 = smov 256   ;;  %s5319_s21 = smov 16  }
  0x37   :  { %80 = dma.hbm_to_vmem [thread:$0]  %s7031_s12, 8192, %s75_s19, [#allocation6], %s5318_s1, %s5318_s1, %s5319_s21  }
  0x38   :  { %s5320_s17 = smov [#allocation8]   ;;  %s5259_s24 = scalar_lea.hbm %s7033_s14, 8192 }
  0x39   :  { %s88_s18 = sshll.u32 %s5320_s17, 4  ;;  %p5260_p10 = scmp.ne.s32.totalorder %s7033_s14, %s5259_s24  ;;  %s89_s18 = int_to_ptr.vmem [resolvable:$true] %s88_s18 }
  0x3a   :  { %p5263_p11 = scmp.lt.u32.totalorder %s5259_s24, %s7033_s14 }
  0x3c   :  { %p5265_p12 = pnand %p5263_p11, %p5260_p10 }
  0x3e   :  { %5268 = shalt.err (!%p5265_p12)
}
  0x3f   :  { %s5269_s29 = scalar_lea.vmem %s89_s18, 8192  ;;  %p5274_p0 = scmp.lt.s32.totalorder %s89_s18, %s89_s18 }
  0x40   :  { %p5270_p13 = scmp.ne.s32.totalorder %s89_s18, %s5269_s29  ;;  %p5275_p1 = scmp.lt.s32.totalorder %s5269_s29, %s5269_s29 }
  0x42   :  { %p5276_p2 = por %p5275_p1, %p5274_p0 }
  0x44   :  { %p5277_p3 = pnand %p5276_p2, %p5270_p13 }
  0x46   :  { %5280 = shalt.err (!%p5277_p3)
}
  0x47   :  { %94 = dma.hbm_to_vmem [thread:$0]  %s7033_s14, 8192, %s89_s18, [#allocation9], %s5315_s6, %s5315_s6, %s5316_s22  }
  0x48   :  { %5303 = dma.done.wait [#allocation3], 10240  }
  0x49   :  { %5304 = vsyncadd [#allocation3], 4294957056 }
  0x4a   :  { %5305 = dma.done.wait [#allocation6], 20480  }
  0x4b   :  { %5306 = vsyncadd [#allocation6], 4294946816 }
  0x4c   :  { %5307 = dma.done.wait [#allocation9], 8192  }
  0x4d   :  { %5308 = vsyncadd [#allocation9], 4294959104  ;;  %v151_v0 = vld [vmem:[#allocation2 + $0x80] sm:$0xff]  ;;  %v152_v1 = vld [vmem:[#allocation2 + $0x88] sm:$0xff]  ;;  %s7038_s22 = sld [smem:[#allocation15_spill]]  ;;  %vm5322_vm0 = vmmov 0  }
  0x4e   :  { %v135_v2 = vld [vmem:[#allocation2] sm:$0xff]  ;;  %v238_v3 = vpack.c.bf16 %v152_v1, %v151_v0  ;;  %v136_v4 = vld [vmem:[#allocation2 + $0x8] sm:$0xff]  ;;  %v153_v11 = vld [vmem:[#allocation2 + $0x90] sm:$0xff]  ;;  %vm465_vm1 = vcmask 1043456   ;;  %vm753_vm2 = vcmask 261120   ;;  %s5324_s25 = smov 96  }
  0x4f   :  { %v183_v5 = vld [vmem:[#allocation2 + $0x180] sm:$0xff]  ;;  %v184_v6 = vld [vmem:[#allocation2 + $0x188] sm:$0xff]  ;;  %v230_v7 = vpack.c.bf16 %v136_v4, %v135_v2  ;;  %v154_v13 = vld [vmem:[#allocation2 + $0x98] sm:$0xff]  ;;  %s5325_s26 = smov 64   ;;  %s5326_s27 = smov 32   ;;  %vm905_vm3 = vcmask 1041408  }
  0x50   :  { %v254_v8 = vpack.c.bf16 %v184_v6, %v183_v5  ;;  %v167_v9 = vld [vmem:[#allocation2 + $0x100] sm:$0xff]  ;;  %v168_v10 = vld [vmem:[#allocation2 + $0x108] sm:$0xff]  ;;  %4161 = vmatprep.subr.bf16.mxu0 %v238_v3  ;;  %v137_v14 = vld [vmem:[#allocation2 + $0x10] sm:$0xff]  ;;  %v239_v16 = vpack.c.bf16 %v154_v13, %v153_v11  ;;  %vm833_vm4 = vcmask 293888   ;;  %vm846_vm5 = vcmask 289792  }
  0x51   :  { %v246_v12 = vpack.c.bf16 %v168_v10, %v167_v9  ;;  %v138_v15 = vld [vmem:[#allocation2 + $0x18] sm:$0xff]  ;;  %4162 = vmatpush3.bf16.msra.mxu0 %v230_v7  ;;  %v185_v18 = vld [vmem:[#allocation2 + $0x190] sm:$0xff]  ;;  %v155_v23 = vld [vmem:[#allocation2 + $0xa0] sm:$0xff]  ;;  %vm1714_vm6 = vcmask 523264   ;;  %vm1720_vm7 = vcmask 785408  }
  0x52   :  { %4195 = vmatprep.subr.bf16.mxu1 %v254_v8  ;;  %v231_v17 = vpack.c.bf16 %v138_v15, %v137_v14  ;;  %v186_v19 = vld [vmem:[#allocation2 + $0x198] sm:$0xff]  ;;  %v169_v20 = vld [vmem:[#allocation2 + $0x110] sm:$0xff]  ;;  %v156_v24 = vld [vmem:[#allocation2 + $0xa8] sm:$0xff]  ;;  %4163 = vmatprep.subr.bf16.mxu0 %v239_v16 }
  0x53   :  { %4196 = vmatpush3.bf16.msra.mxu1 %v246_v12  ;;  %v255_v21 = vpack.c.bf16 %v186_v19, %v185_v18  ;;  %v170_v22 = vld [vmem:[#allocation2 + $0x118] sm:$0xff]  ;;  %v240_v26 = vpack.c.bf16 %v156_v24, %v155_v23  ;;  %v139_v27 = vld [vmem:[#allocation2 + $0x20] sm:$0xff]  ;;  %v140_v28 = vld [vmem:[#allocation2 + $0x28] sm:$0xff] }
  0x54   :  { %v247_v25 = vpack.c.bf16 %v170_v22, %v169_v20  ;;  %v187_v29 = vld [vmem:[#allocation2 + $0x1a0] sm:$0xff]  ;;  %v188_v30 = vld [vmem:[#allocation2 + $0x1a8] sm:$0xff]  ;;  %v232_v33 = vpack.c.bf16 %v140_v28, %v139_v27  ;;  %v157_v35 = vld [vmem:[#allocation2 + $0xb0] sm:$0xff] }
  0x55   :  { %4197 = vmatprep.subr.bf16.mxu1 %v255_v21  ;;  %v171_v31 = vld [vmem:[#allocation2 + $0x120] sm:$0xff]  ;;  %v172_v32 = vld [vmem:[#allocation2 + $0x128] sm:$0xff]  ;;  %4164 = vmatpush3.bf16.msra.mxu0 %v231_v17  ;;  %v256_v34 = vpack.c.bf16 %v188_v30, %v187_v29  ;;  %v158_v36 = vld [vmem:[#allocation2 + $0xb8] sm:$0xff] }
  0x56   :  { %v141_v37 = vld [vmem:[#allocation2 + $0x30] sm:$0xff]  ;;  %4165 = vmatprep.subr.bf16.mxu0 %v240_v26  ;;  %v248_v38 = vpack.c.bf16 %v172_v32, %v171_v31  ;;  %v241_v39 = vpack.c.bf16 %v158_v36, %v157_v35  ;;  %v142_v40 = vld [vmem:[#allocation2 + $0x38] sm:$0xff]  ;;  %v159_v46 = vld [vmem:[#allocation2 + $0xc0] sm:$0xff] }
  0x57   :  { %4198 = vmatpush3.bf16.msra.mxu1 %v247_v25  ;;  %v189_v41 = vld [vmem:[#allocation2 + $0x1b0] sm:$0xff]  ;;  %v190_v42 = vld [vmem:[#allocation2 + $0x1b8] sm:$0xff]  ;;  %v160_v47 = vld [vmem:[#allocation2 + $0xc8] sm:$0xff]  ;;  %v233_v48 = vpack.c.bf16 %v142_v40, %v141_v37 }
  0x58   :  { %4199 = vmatprep.subr.bf16.mxu1 %v256_v34  ;;  %v257_v43 = vpack.c.bf16 %v190_v42, %v189_v41  ;;  %v173_v44 = vld [vmem:[#allocation2 + $0x130] sm:$0xff]  ;;  %v174_v45 = vld [vmem:[#allocation2 + $0x138] sm:$0xff]  ;;  %v191_v49 = vld [vmem:[#allocation2 + $0x1c0] sm:$0xff]  ;;  %v242_v52 = vpack.c.bf16 %v160_v47, %v159_v46 }
  0x59   :  { %4166 = vmatpush3.bf16.msra.mxu0 %v232_v33  ;;  %v192_v50 = vld [vmem:[#allocation2 + $0x1c8] sm:$0xff]  ;;  %v249_v51 = vpack.c.bf16 %v174_v45, %v173_v44  ;;  %v143_v53 = vld [vmem:[#allocation2 + $0x40] sm:$0xff]  ;;  %v161_v58 = vld [vmem:[#allocation2 + $0xd0] sm:$0xff] }
  0x5a   :  { %4167 = vmatprep.subr.bf16.mxu0 %v241_v39  ;;  %v144_v54 = vld [vmem:[#allocation2 + $0x48] sm:$0xff]  ;;  %v175_v55 = vld [vmem:[#allocation2 + $0x140] sm:$0xff]  ;;  %v258_v56 = vpack.c.bf16 %v192_v50, %v191_v49  ;;  %v162_v59 = vld [vmem:[#allocation2 + $0xd8] sm:$0xff] }
  0x5b   :  { %4200 = vmatpush3.bf16.msra.mxu1 %v248_v38  ;;  %v176_v57 = vld [vmem:[#allocation2 + $0x148] sm:$0xff]  ;;  %v193_v60 = vld [vmem:[#allocation2 + $0x1d0] sm:$0xff]  ;;  %v194_v61 = vld [vmem:[#allocation2 + $0x1d8] sm:$0xff]  ;;  %v234_v62 = vpack.c.bf16 %v144_v54, %v143_v53  ;;  %v243_v0 = vpack.c.bf16 %v162_v59, %v161_v58 }
  0x5c   :  { %4201 = vmatprep.subr.bf16.mxu1 %v257_v43  ;;  %v250_v63 = vpack.c.bf16 %v176_v57, %v175_v55  ;;  %v145_v1 = vld [vmem:[#allocation2 + $0x50] sm:$0xff]  ;;  %v146_v2 = vld [vmem:[#allocation2 + $0x58] sm:$0xff]  ;;  %v259_v4 = vpack.c.bf16 %v194_v61, %v193_v60  ;;  %v163_v6 = vld [vmem:[#allocation2 + $0xe0] sm:$0xff] }
  0x5d   :  { %4168 = vmatpush3.bf16.msra.mxu0 %v233_v48  ;;  %v177_v3 = vld [vmem:[#allocation2 + $0x150] sm:$0xff]  ;;  %v178_v5 = vld [vmem:[#allocation2 + $0x158] sm:$0xff]  ;;  %v164_v7 = vld [vmem:[#allocation2 + $0xe8] sm:$0xff]  ;;  %v235_v10 = vpack.c.bf16 %v146_v2, %v145_v1 }
  0x5e   :  { %4169 = vmatprep.subr.bf16.mxu0 %v242_v52  ;;  %v195_v8 = vld [vmem:[#allocation2 + $0x1e0] sm:$0xff]  ;;  %v196_v9 = vld [vmem:[#allocation2 + $0x1e8] sm:$0xff]  ;;  %v251_v14 = vpack.c.bf16 %v178_v5, %v177_v3  ;;  %v244_v15 = vpack.c.bf16 %v164_v7, %v163_v6  ;;  %v116_v18 = vld [vmem:[%s7038_s22 + $0x30] sm:$0xff] }
  0x5f   :  { %4202 = vmatpush3.bf16.msra.mxu1 %v249_v51  ;;  %v147_v11 = vld [vmem:[#allocation2 + $0x60] sm:$0xff]  ;;  %v148_v12 = vld [vmem:[#allocation2 + $0x68] sm:$0xff]  ;;  %v260_v19 = vpack.c.bf16 %v196_v9, %v195_v8  ;;  %v165_v20 = vld [vmem:[#allocation2 + $0xf0] sm:$0xff]  ;;  %v5321_v51 = vmov 0.0  }
  0x60   :  { %4203 = vmatprep.subr.bf16.mxu1 %v258_v56  ;;  %v111_v13 = vld [vmem:[%s7038_s22 + $0x8] sm:$0xff]  ;;  %v179_v16 = vld [vmem:[#allocation2 + $0x160] sm:$0xff]  ;;  %v166_v21 = vld [vmem:[#allocation2 + $0xf8] sm:$0xff]  ;;  %v236_v27 = vpack.c.bf16 %v148_v12, %v147_v11 }
  0x61   :  { %4170 = vmatpush3.bf16.msra.mxu0 %v234_v62  ;;  %v180_v17 = vld [vmem:[#allocation2 + $0x168] sm:$0xff]  ;;  %v216_v22 = vpack.c.bf16 %v116_v18, %v111_v13  ;;  %v113_v23 = vld [vmem:[%s7038_s22 + $0x18] sm:$0xff]  ;;  %v197_v24 = vld [vmem:[#allocation2 + $0x1f0] sm:$0xff]  ;;  %v245_v30 = vpack.c.bf16 %v166_v21, %v165_v20 }
  0x62   :  { %4171 = vmatprep.subr.bf16.mxu0 %v243_v0  ;;  %v198_v25 = vld [vmem:[#allocation2 + $0x1f8] sm:$0xff]  ;;  %v118_v26 = vld [vmem:[%s7038_s22 + $0x40] sm:$0xff]  ;;  %v252_v29 = vpack.c.bf16 %v180_v17, %v179_v16  ;;  %v149_v31 = vld [vmem:[#allocation2 + $0x70] sm:$0xff] }
  0x63   :  { %4204 = vmatpush3.bf16.msra.mxu1 %v250_v63  ;;  %309 = vmatprep.mubr.bf16.mxu0 %v216_v22  ;;  %v218_v28 = vpack.c.bf16 %v118_v26, %v113_v23  ;;  %v150_v32 = vld [vmem:[#allocation2 + $0x78] sm:$0xff]  ;;  %v261_v33 = vpack.c.bf16 %v198_v25, %v197_v24  ;;  %v181_v34 = vld [vmem:[#allocation2 + $0x170] sm:$0xff]  ;;  %v110_v37 = vld [vmem:[%s7038_s22] sm:$0xff] }
  0x64   :  { %4205 = vmatprep.subr.bf16.mxu1 %v259_v4  ;;  %v182_v35 = vld [vmem:[#allocation2 + $0x178] sm:$0xff]  ;;  %v237_v36 = vpack.c.bf16 %v150_v32, %v149_v31  ;;  %v115_v38 = vld [vmem:[%s7038_s22 + $0x28] sm:$0xff]  ;;  %v199_v39 = vld [vmem:[#allocation2 + $0x200] sm:$0xff] }
  0x65   :  { %4172 = vmatpush3.bf16.msra.mxu0 %v235_v10  ;;  %365 = vmatprep.mubr.bf16.mxu1 %v218_v28  ;;  %v253_v40 = vpack.c.bf16 %v182_v35, %v181_v34  ;;  %v200_v41 = vld [vmem:[#allocation2 + $0x208] sm:$0xff]  ;;  %v112_v42 = vld [vmem:[%s7038_s22 + $0x10] sm:$0xff]  ;;  %v117_v43 = vld [vmem:[%s7038_s22 + $0x38] sm:$0xff]  ;;  %v215_v46 = vpack.c.bf16 %v115_v38, %v110_v37 }
  0x66   :  { %4173 = vmatprep.subr.bf16.mxu0 %v244_v15  ;;  %v121_v44 = vld [vmem:[%s7038_s22 + $0x58] sm:$0xff]  ;;  %v126_v45 = vld [vmem:[%s7038_s22 + $0x80] sm:$0xff]  ;;  %v123_v47 = vld [vmem:[%s7038_s22 + $0x68] sm:$0xff]  ;;  %v262_v49 = vpack.c.bf16 %v200_v41, %v199_v39  ;;  %v217_v50 = vpack.c.bf16 %v117_v43, %v112_v42 }
  0x67   :  { %4206 = vmatpush3.bf16.msra.mxu1 %v251_v14  ;;  %v128_v48 = vld [vmem:[%s7038_s22 + $0x90] sm:$0xff]  ;;  %v202_v53 = vld [vmem:[#allocation2 + $0x218] sm:$0xff]  ;;  %v221_v54 = vpack.c.bf16 %v126_v45, %v121_v44  ;;  %v203_v57 = vld [vmem:[#allocation2 + $0x220] sm:$0xff] }
  0x68   :  { %4207 = vmatprep.subr.bf16.mxu1 %v260_v19  ;;  %v201_v52 = vld [vmem:[#allocation2 + $0x210] sm:$0xff]  ;;  %v223_v55 = vpack.c.bf16 %v128_v48, %v123_v47  ;;  %v125_v59 = vld [vmem:[%s7038_s22 + $0x78] sm:$0xff]  ;;  %v204_v60 = vld [vmem:[#allocation2 + $0x228] sm:$0xff] }
  0x69   :  { %4174 = vmatpush3.bf16.msra.mxu0 %v236_v27  ;;  %v263_v56 = vpack.c.bf16 %v202_v53, %v201_v52  ;;  %v120_v58 = vld [vmem:[%s7038_s22 + $0x50] sm:$0xff]  ;;  %v122_v61 = vld [vmem:[%s7038_s22 + $0x60] sm:$0xff]  ;;  %v127_v62 = vld [vmem:[%s7038_s22 + $0x88] sm:$0xff]  ;;  %v264_v2 = vpack.c.bf16 %v204_v60, %v203_v57 }
  0x6a   :  { %4175 = vmatprep.subr.bf16.mxu0 %v245_v30  ;;  %v131_v63 = vld [vmem:[%s7038_s22 + $0xa8] sm:$0xf]  ;;  %v220_v0 = vpack.c.bf16 %v125_v59, %v120_v58  ;;  %v133_v1 = vld [vmem:[%s7038_s22 + $0xb8] sm:$0xf]  ;;  %v222_v3 = vpack.c.bf16 %v127_v62, %v122_v61  ;;  %v205_v4 = vld [vmem:[#allocation2 + $0x230] sm:$0xff] }
  0x6b   :  { %4208 = vmatpush3.bf16.msra.mxu1 %v252_v29  ;;  %v206_v5 = vld [vmem:[#allocation2 + $0x238] sm:$0xff]  ;;  %v226_v6 = vpack.c.bf16 %v131_v63, %v131_v63  ;;  %v228_v7 = vpack.c.bf16 %v133_v1, %v133_v1  ;;  %v130_v9 = vld [vmem:[%s7038_s22 + $0xa0] sm:$0xf]  ;;  %v208_v11 = vld [vmem:[#allocation2 + $0x248] sm:$0xff] }
  0x6c   :  { %4209 = vmatprep.subr.bf16.mxu1 %v261_v33  ;;  %v265_v8 = vpack.c.bf16 %v206_v5, %v205_v4  ;;  %v207_v10 = vld [vmem:[#allocation2 + $0x240] sm:$0xff]  ;;  %v132_v12 = vld [vmem:[%s7038_s22 + $0xb0] sm:$0xf]  ;;  %v225_v13 = vpack.c.bf16 %v130_v9, %v130_v9  ;;  %v210_v17 = vld [vmem:[#allocation2 + $0x258] sm:$0xff] }
  0x6d   :  { %4176 = vmatpush3.bf16.msra.mxu0 %v237_v36  ;;  %v266_v14 = vpack.c.bf16 %v208_v11, %v207_v10  ;;  %v227_v15 = vpack.c.bf16 %v132_v12, %v132_v12  ;;  %v209_v16 = vld [vmem:[#allocation2 + $0x250] sm:$0xff]  ;;  %v211_v19 = vld [vmem:[#allocation2 + $0x260] sm:$0xff]  ;;  %v212_v20 = vld [vmem:[#allocation2 + $0x268] sm:$0xff] }
  0x6e   :  { %4448 = vmatprep.subr.bf16.mxu0 %v5321_v51  ;;  %v267_v18 = vpack.c.bf16 %v210_v17, %v209_v16  ;;  %v268_v21 = vpack.c.bf16 %v212_v20, %v211_v19  ;;  %v213_v22 = vld [vmem:[#allocation2 + $0x270] sm:$0xff]  ;;  %v214_v23 = vld [vmem:[#allocation2 + $0x278] sm:$0xff]  ;;  %v114_v25 = vld [vmem:[%s7038_s22 + $0x20] sm:$0xff] }
  0x6f   :  { %4210 = vmatpush3.bf16.msra.mxu1 %v253_v40  ;;  %v269_v24 = vpack.c.bf16 %v214_v23, %v213_v22  ;;  %v119_v26 = vld [vmem:[%s7038_s22 + $0x48] sm:$0xff]  ;;  %v124_v28 = vld [vmem:[%s7038_s22 + $0x70] sm:$0xff]  ;;  %v129_v29 = vld [vmem:[%s7038_s22 + $0x98] sm:$0xff] }
  0x70   :  { %310 = vmatmul.mubr.bf16.vlgmr.msra.gmra.mrb[0].mxu0 %v215_v46  ;;  %v219_v27 = vpack.c.bf16 %v119_v26, %v114_v25  ;;  %v224_v30 = vpack.c.bf16 %v129_v29, %v124_v28  ;;  %v134_v31 = vld [vmem:[%s7038_s22 + $0xc0] sm:$0xf]  ;;  %v446_v23 = vld [vmem:[%s7022_s3 + $0x8] sm:$0xff]  ;;  %v447_v26 = vld [vmem:[%s7022_s3 + $0x10] sm:$0xff] }
  0x71   :  { %4449 = vmatpush3.bf16.msra.mxu0 %v262_v49  ;;  %317 = vmatprep.mubr.bf16.mxu0 %v221_v54  ;;  %v229_v32 = vpack.c.bf16 %v134_v31, %v134_v31  ;;  %v4076_v34 = vld [vmem:[%s7021_s2] ss:$0 sm:$0xff] }
  0x72   :  { %366 = vmatmul.mubr.bf16.vlgmr.msra.gmra.mrb[0].mxu1 %v217_v50  ;;  %4450 = vmatprep.subr.bf16.mxu0 %v5321_v51  ;;  %v445_v16 = vld [vmem:[%s7022_s3] sm:$0xff] }
  0x73   :  { %373 = vmatprep.mubr.bf16.mxu1 %v223_v55 }
  0x75   :  { %4451 = vmatpush3.bf16.msra.mxu0 %v263_v56 }
  0x76   :  { %4452 = vmatprep.subr.bf16.mxu0 %v5321_v51 }
  0x78   :  { %318 = vmatmul.mubr.bf16.gmra.mrb[4].mxu0 %v220_v0 }
  0x79   :  { %4453 = vmatpush3.bf16.msra.mxu0 %v264_v2  ;;  %325 = vmatprep.mubr.bf16.mxu0 %v226_v6 }
  0x7a   :  { %374 = vmatmul.mubr.bf16.gmra.mrb[4].mxu1 %v222_v3  ;;  %4454 = vmatprep.subr.bf16.mxu0 %v5321_v51 }
  0x7b   :  { %381 = vmatprep.mubr.bf16.mxu1 %v228_v7 }
  0x7d   :  { %4455 = vmatpush3.bf16.msra.mxu0 %v265_v8 }
  0x7e   :  { %4456 = vmatprep.subr.bf16.mxu0 %v5321_v51 }
  0x80   :  { %326 = vmatmul.mubr.bf16.gmra.mrb[8].mxu0 %v225_v13 }
  0x81   :  { %4457 = vmatpush3.bf16.msra.mxu0 %v266_v14  ;;  %4464 = vmatprep.mubr.msk.bf16.mxu0 %vm5322_vm0, %v5321_v51 }
  0x82   :  { %382 = vmatmul.mubr.bf16.gmra.mrb[8].mxu1 %v227_v15  ;;  %4458 = vmatprep.subr.bf16.mxu0 %v5321_v51 }
  0x85   :  { %4459 = vmatpush3.bf16.msra.mxu0 %v267_v18 }
  0x86   :  { %4460 = vmatprep.subr.bf16.mxu0 %v5321_v51 }
  0x89   :  { %4461 = vmatpush3.bf16.msra.mxu0 %v268_v21 }
  0x8a   :  { %4462 = vmatprep.subr.bf16.mxu0 %v5321_v51 }
  0x8d   :  { %4463 = vmatpush3.bf16.msra.mxu0 %v269_v24 }
  0x8e   :  { %4476 = vmatprep.subr.bf16.mxu0 %v5321_v51 }
  0x90   :  { %4465 = vmatmul.mubr.bf16.vlgmr.msra.gmra.mrb[12].mxu0 %v219_v27 }
  0x91   :  { %4468 = vmatprep.mubr.msk.bf16.mxu0 %vm5322_vm0, %v5321_v51 }
  0x98   :  { %4469 = vmatmul.mubr.bf16.gmra.mrb[16].mxu0 %v224_v30 }
  0x99   :  { %4472 = vmatprep.mubr.msk.bf16.mxu0 %vm5322_vm0, %v5321_v51 }
  0xa0   :  { %4473 = vmatmul.mubr.bf16.gmra.mrb[20].mxu0 %v229_v32 }
  0xa1   :  { %4492 = vmatprep.mubr.msk.bf16.mxu0 %vm5322_vm0, %v5321_v51 }
 0x143   :  { %v4177_v33 = vpop.f32.mrb[0].mxu0 }
 0x144   :  { %v4178_v35 = vpop.f32.mrb[1].mxu0 }
 0x145   :  { %v4211_v36 = vpop.f32.mrb[0].mxu1  ;;  %v4179_v37 = vadd.f32 %v4178_v35, %v4177_v33  ;;  %v4180_v38 = vpop.f32.mrb[2].mxu0  ;;  %v448_v33 = vld [vmem:[%s7022_s3 + $0x18] sm:$0xff] }
 0x146   :  { %v4212_v39 = vpop.f32.mrb[1].mxu1  ;;  %v4181_v40 = vpop.f32.mrb[3].mxu0 }
 0x147   :  { %v4213_v41 = vadd.f32 %v4212_v39, %v4211_v36  ;;  %v4214_v42 = vpop.f32.mrb[2].mxu1  ;;  %v312_v43 = vadd.f32 %v4179_v37, %v4076_v34  ;;  %v4182_v44 = vadd.f32 %v4181_v40, %v4180_v38  ;;  %v449_v36 = vld [vmem:[%s7022_s3 + $0x20] sm:$0xf] }
 0x148   :  { %v4215_v45 = vpop.f32.mrb[3].mxu1 }
 0x149   :  { %v4216_v46 = vadd.f32 %v4215_v45, %v4214_v42  ;;  %v315_v47 = vadd.f32 %v4182_v44, %v4076_v34  ;;  %v368_v48 = vadd.f32 %v4213_v41, %v312_v43  ;;  %v539_v43 = vld [vmem:[#allocation5 + $0x8] sm:$0xff]  ;;  %v542_v44 = vld [vmem:[#allocation5 + $0x20] sm:$0xff] }
 0x14a   :  { %v538_v45 = vld [vmem:[#allocation5] sm:$0xff] }
 0x14b   :  { %v4183_v49 = vpop.f32.mrb[4].mxu0  ;;  %v371_v50 = vadd.f32 %v4216_v46, %v315_v47  ;;  %v590_v46 = vpack.c.bf16 %v542_v44, %v539_v43  ;;  %v541_v47 = vld [vmem:[#allocation5 + $0x18] sm:$0xff]  ;;  %v566_v43 = vld [vmem:[#allocation5 + $0xe0] sm:$0xff] }
 0x14c   :  { %v4184_v52 = vpop.f32.mrb[5].mxu0 }
 0x14d   :  { %v4217_v53 = vpop.f32.mrb[4].mxu1  ;;  %v4185_v54 = vadd.f32 %v4184_v52, %v4183_v49  ;;  %v4186_v55 = vpop.f32.mrb[6].mxu0  ;;  %v543_v49 = vld [vmem:[#allocation5 + $0x28] sm:$0xff]  ;;  %630 = vmatprep.subr.bf16.mxu1 %v590_v46  ;;  %v565_v46 = vld [vmem:[#allocation5 + $0xd8] sm:$0xff] }
 0x14e   :  { %v4218_v56 = vpop.f32.mrb[5].mxu1  ;;  %v4187_v57 = vpop.f32.mrb[7].mxu0 }
 0x14f   :  { %v4219_v58 = vadd.f32 %v4218_v56, %v4217_v53  ;;  %v4220_v59 = vpop.f32.mrb[6].mxu1  ;;  %v320_v60 = vadd.f32 %v4185_v54, %v4076_v34  ;;  %v4188_v61 = vadd.f32 %v4187_v57, %v4186_v55  ;;  %v545_v53 = vld [vmem:[#allocation5 + $0x38] sm:$0xff]  ;;  %v548_v54 = vld [vmem:[#allocation5 + $0x50] sm:$0xff] }
 0x150   :  { %v4221_v62 = vpop.f32.mrb[7].mxu1  ;;  %v593_v55 = vpack.c.bf16 %v548_v54, %v545_v53  ;;  %v572_v53 = vld [vmem:[#allocation5 + $0x110] sm:$0xff] }
 0x151   :  { %v4222_v63 = vadd.f32 %v4221_v62, %v4220_v59  ;;  %v323_v0 = vadd.f32 %v4188_v61, %v4076_v34  ;;  %v376_v1 = vadd.f32 %v4219_v58, %v320_v60 }
 0x153   :  { %v4189_v2 = vpop.f32.mrb[8].mxu0  ;;  %v379_v3 = vadd.f32 %v4222_v63, %v323_v0 }
 0x154   :  { %v4190_v4 = vpop.f32.mrb[9].mxu0 }
 0x155   :  { %v4223_v5 = vpop.f32.mrb[8].mxu1  ;;  %v4191_v6 = vadd.f32 %v4190_v4, %v4189_v2  ;;  %v4192_v7 = vpop.f32.mrb[10].mxu0 }
 0x156   :  { %v4224_v8 = vpop.f32.mrb[9].mxu1  ;;  %v4193_v9 = vpop.f32.mrb[11].mxu0 }
 0x157   :  { %v4225_v10 = vadd.f32 %v4224_v8, %v4223_v5  ;;  %v4226_v11 = vpop.f32.mrb[10].mxu1  ;;  %v328_v12 = vadd.f32 %v4191_v6, %v4076_v34 }
 0x158   :  { %v4227_v13 = vpop.f32.mrb[11].mxu1  ;;  %v547_v11 = vld [vmem:[#allocation5 + $0x48] sm:$0xff] }
 0x159   :  { %v384_v14 = vadd.f32 %v4225_v10, %v328_v12  ;;  %v544_v10 = vld [vmem:[#allocation5 + $0x30] sm:$0xff]  ;;  %v546_v12 = vld [vmem:[#allocation5 + $0x40] sm:$0xff] }
 0x15a   :  { %v592_v13 = vpack.c.bf16 %v547_v11, %v544_v10  ;;  %v581_v10 = vld [vmem:[#allocation5 + $0x158] sm:$0xff]  ;;  %v584_v11 = vld [vmem:[#allocation5 + $0x170] sm:$0xff] }
 0x163   :  { %v423_v15 = vpop.f32.mrb[12].mxu0 }
 0x164   :  { %v424_v17 = vadd.f32 %v423_v15, %v368_v48  ;;  %v4466_v18 = vpop.f32.mrb[13].mxu0  ;;  %v540_v48 = vld [vmem:[#allocation5 + $0x10] sm:$0xff] }
 0x165   :  { %v426_v19 = vpop.f32.mrb[14].mxu0  ;;  %v591_v52 = vpack.c.bf16 %v543_v49, %v540_v48  ;;  %v554_v18 = vld [vmem:[#allocation5 + $0x80] sm:$0xff]  ;;  %v567_v49 = vld [vmem:[#allocation5 + $0xe8] sm:$0xff] }
 0x166   :  { %v5565_v20 = vadd.f32 %v445_v16, %v424_v17  ;;  %v427_v21 = vadd.f32 %v426_v19, %v371_v50  ;;  %v4467_v22 = vpop.f32.mrb[15].mxu0  ;;  %v589_v50 = vpack.c.bf16 %v541_v47, %v538_v45  ;;  %v551_v17 = vld [vmem:[#allocation5 + $0x68] sm:$0xff]  ;;  %v562_v45 = vld [vmem:[#allocation5 + $0xc0] sm:$0xff]  ;;  %v564_v47 = vld [vmem:[#allocation5 + $0xd0] sm:$0xff] }
 0x167   :  { %4477 = vmatpush3.bf16.msra.mxu0 %v591_v52  ;;  %v550_v22 = vld [vmem:[#allocation5 + $0x60] sm:$0xff]  ;;  %v601_v48 = vpack.c.bf16 %v565_v46, %v562_v45  ;;  %v569_v52 = vld [vmem:[#allocation5 + $0xf8] sm:$0xff] }
 0x168   :  { %457 = vadd.xlane.f32.xlu0 %v5565_v20  ;;  %v5571_v24 = vadd.f32 %v446_v23, %v427_v21  ;;  %631 = vmatpush1.bf16.msra.mxu1 %v589_v50  ;;  %v596_v21 = vpack.c.bf16 %v554_v18, %v551_v17  ;;  %v553_v23 = vld [vmem:[#allocation5 + $0x78] sm:$0xff]  ;;  %v603_v50 = vpack.c.bf16 %v567_v49, %v564_v47  ;;  %v4078_v47 = vld [vmem:[%s7024_s5] ss:$0 sm:$0xff] }
 0x169   :  { %632 = vmatprep.subr.bf16.mxu1 %v593_v55  ;;  %4478 = vmatprep.subr.bf16.mxu0 %v5321_v51  ;;  %v605_v54 = vpack.c.bf16 %v572_v53, %v569_v52  ;;  %v568_v55 = vld [vmem:[#allocation5 + $0xf0] sm:$0xff]  ;;  %v585_v18 = vld [vmem:[#allocation5 + $0x178] sm:$0xff] }
 0x16b   :  { %v431_v25 = vpop.f32.mrb[16].mxu0 }
 0x16c   :  { %v432_v27 = vadd.f32 %v431_v25, %v376_v1  ;;  %v4470_v28 = vpop.f32.mrb[17].mxu0  ;;  %459 = vadd.xlane.f32.xlu0 %v5571_v24  ;;  %633 = vmatpush1.bf16.msra.mxu1 %v592_v13  ;;  %v552_v25 = vld [vmem:[#allocation5 + $0x70] sm:$0xff] }
 0x16d   :  { %v434_v29 = vpop.f32.mrb[18].mxu0  ;;  %634 = vmatprep.subr.bf16.mxu1 %v596_v21  ;;  %v580_v13 = vld [vmem:[#allocation5 + $0x150] sm:$0xff]  ;;  %v5323_v21 = vmov 0  }
 0x16e   :  { %v5577_v30 = vadd.f32 %v447_v26, %v432_v27  ;;  %v435_v31 = vadd.f32 %v434_v29, %v379_v3  ;;  %v4471_v32 = vpop.f32.mrb[19].mxu0  ;;  %v595_v26 = vpack.c.bf16 %v553_v23, %v550_v22  ;;  %v555_v27 = vld [vmem:[#allocation5 + $0x88] sm:$0xff]  ;;  %662 = vmatprep.mubr.bf16.mxu1 %v5323_v21 }
 0x16f   :  { %v597_v29 = vpack.c.bf16 %v555_v27, %v552_v25  ;;  %v560_v32 = vld [vmem:[#allocation5 + $0xb0] sm:$0xff] }
 0x170   :  { %461 = vadd.xlane.f32.xlu1 %v5577_v30  ;;  %v5583_v34 = vadd.f32 %v448_v33, %v435_v31  ;;  %635 = vmatpush1.bf16.msra.mxu1 %v595_v26  ;;  %v557_v31 = vld [vmem:[#allocation5 + $0x98] sm:$0xff] }
 0x171   :  { %v599_v33 = vpack.c.bf16 %v560_v32, %v557_v31 }
 0x173   :  { %v439_v35 = vpop.f32.mrb[20].mxu0  ;;  %636 = vmatprep.subr.bf16.mxu1 %v599_v33 }
 0x174   :  { %v440_v37 = vadd.f32 %v439_v35, %v384_v14  ;;  %463 = vadd.xlane.f32.xlu1 %v5583_v34  ;;  %v4474_v38 = vpop.f32.mrb[21].mxu0  ;;  %v549_v14 = vld [vmem:[#allocation5 + $0x58] sm:$0xff]  ;;  %v556_v35 = vld [vmem:[#allocation5 + $0x90] sm:$0xff] }
 0x175   :  { %v442_v39 = vpop.f32.mrb[22].mxu0  ;;  %v594_v16 = vpack.c.bf16 %v549_v14, %v546_v12  ;;  %v611_v12 = vpack.c.bf16 %v584_v11, %v581_v10  ;;  %v583_v14 = vld [vmem:[#allocation5 + $0x168] sm:$0xff] }
 0x176   :  { %v5589_v40 = vadd.f32 %v449_v36, %v440_v37  ;;  %v4475_v41 = vpop.f32.mrb[23].mxu0  ;;  %v559_v36 = vld [vmem:[#allocation5 + $0xa8] sm:$0xff]  ;;  %v558_v37 = vld [vmem:[#allocation5 + $0xa0] sm:$0xff]  ;;  %v561_v39 = vld [vmem:[#allocation5 + $0xb8] sm:$0xff]  ;;  %v610_v17 = vpack.c.bf16 %v583_v14, %v580_v13 }
 0x177   :  { %4479 = vmatpush3.bf16.msra.mxu0 %v594_v16  ;;  %v598_v38 = vpack.c.bf16 %v559_v36, %v556_v35  ;;  %v600_v41 = vpack.c.bf16 %v561_v39, %v558_v37  ;;  %v582_v16 = vld [vmem:[#allocation5 + $0x160] sm:$0xff] }
 0x178   :  { %v466_v42 = vsel %vm465_vm1, %v5589_v40, 0.0  ;;  %4480 = vmatprep.subr.bf16.mxu0 %v5321_v51  ;;  %v4077_v39 = vld [vmem:[%s7023_s4] ss:$0 sm:$0xff] }
 0x179   :  { %467 = vadd.xlane.f32.xlu0 %v466_v42  ;;  %637 = vmatpush1.bf16.msra.mxu1 %v598_v38  ;;  %v563_v42 = vld [vmem:[#allocation5 + $0xc8] sm:$0xff] }
 0x17a   :  { %v602_v44 = vpack.c.bf16 %v566_v43, %v563_v42 }
 0x17b   :  { %4481 = vmatpush3.bf16.msra.mxu0 %v597_v29 }
 0x17c   :  { %4482 = vmatprep.subr.bf16.mxu0 %v5321_v51  ;;  %638 = vmatprep.subr.bf16.mxu1 %v602_v44 }
 0x17d   :  { %639 = vmatpush1.bf16.msra.mxu1 %v601_v48 }
 0x17e   :  { %640 = vmatprep.subr.bf16.mxu1 %v605_v54 }
 0x17f   :  { %4483 = vmatpush3.bf16.msra.mxu0 %v600_v41 }
 0x180   :  { %4484 = vmatprep.subr.bf16.mxu0 %v5321_v51 }
 0x183   :  { %4485 = vmatpush3.bf16.msra.mxu0 %v603_v50 }
 0x184   :  { %4486 = vmatprep.subr.bf16.mxu0 %v5321_v51 }
 0x1f5   :  { %v458_v56 = vpop.xlane.xlu0 %457 }
 0x1f6   :  { %v470_v57 = vmul.f32 0.0078125, %v458_v56  ;;  %v571_v56 = vld [vmem:[#allocation5 + $0x108] sm:$0xff] }
 0x1f8   :  { %v5595_v58 = vsub.f32 %v5565_v20, %v470_v57  ;;  %v570_v57 = vld [vmem:[#allocation5 + $0x100] sm:$0xff] }
 0x1f9   :  { %v460_v59 = vpop.xlane.xlu0 %459 }
 0x1fa   :  { %v471_v60 = vmul.f32 0.0078125, %v460_v59  ;;  %v480_v61 = vmul.f32 %v5595_v58, %v5595_v58  ;;  %v604_v59 = vpack.c.bf16 %v571_v56, %v568_v55 }
 0x1fc   :  { %485 = vadd.xlane.f32.xlu1 %v480_v61  ;;  %v5600_v62 = vsub.f32 %v5571_v24, %v471_v60  ;;  %v573_v60 = vld [vmem:[#allocation5 + $0x118] sm:$0xff]  ;;  %641 = vmatpush1.bf16.msra.mxu1 %v604_v59 }
 0x1fd   :  { %v462_v63 = vpop.xlane.xlu1 %461  ;;  %v606_v61 = vpack.c.bf16 %v573_v60, %v570_v57 }
 0x1fe   :  { %v472_v0 = vmul.f32 0.0078125, %v462_v63  ;;  %v481_v1 = vmul.f32 %v5600_v62, %v5600_v62  ;;  %v575_v63 = vld [vmem:[#allocation5 + $0x128] sm:$0xff] }
 0x1ff   :  { %4487 = vmatpush3.bf16.msra.mxu0 %v606_v61 }
 0x200   :  { %487 = vadd.xlane.f32.xlu0 %v481_v1  ;;  %v5605_v2 = vsub.f32 %v5577_v30, %v472_v0  ;;  %v578_v0 = vld [vmem:[#allocation5 + $0x140] sm:$0xff]  ;;  %4488 = vmatprep.subr.bf16.mxu0 %v5321_v51 }
 0x201   :  { %v464_v3 = vpop.xlane.xlu1 %463  ;;  %v608_v1 = vpack.c.bf16 %v578_v0, %v575_v63 }
 0x202   :  { %v473_v4 = vmul.f32 0.0078125, %v464_v3  ;;  %v482_v5 = vmul.f32 %v5605_v2, %v5605_v2  ;;  %v574_v3 = vld [vmem:[#allocation5 + $0x120] sm:$0xff] }
 0x203   :  { %642 = vmatprep.subr.bf16.mxu1 %v608_v1  ;;  %v615_v1 = vlaneseq }
 0x204   :  { %489 = vadd.xlane.f32.xlu1 %v482_v5  ;;  %v5610_v6 = vsub.f32 %v5583_v34, %v473_v4  ;;  %v577_v4 = vld [vmem:[#allocation5 + $0x138] sm:$0xff]  ;;  %v576_v5 = vld [vmem:[#allocation5 + $0x130] sm:$0xff] }
 0x206   :  { %v468_v7 = vpop.xlane.xlu0 %467  ;;  %v483_v8 = vmul.f32 %v5610_v6, %v5610_v6 }
 0x207   :  { %v474_v9 = vmul.f32 0.0078125, %v468_v7  ;;  %v607_v7 = vpack.c.bf16 %v577_v4, %v574_v3 }
 0x208   :  { %491 = vadd.xlane.f32.xlu0 %v483_v8  ;;  %v579_v8 = vld [vmem:[#allocation5 + $0x148] sm:$0xff] }
 0x209   :  { %v5615_v15 = vsub.f32 %v5589_v40, %v474_v9  ;;  %v609_v9 = vpack.c.bf16 %v579_v8, %v576_v5  ;;  %643 = vmatpush1.bf16.msra.mxu1 %v607_v7  ;;  %v613_v5 = vld [vmem:[%s7026_s7] sm:$0x7] }
 0x20a   :  { %644 = vmatprep.subr.bf16.mxu1 %v611_v12 }
 0x20b   :  { %v484_v19 = vmul.f32 %v5615_v15, %v5615_v15  ;;  %4489 = vmatpush3.bf16.msra.mxu0 %v609_v9 }
 0x20c   :  { %4490 = vmatprep.subr.bf16.mxu0 %v5321_v51 }
 0x20d   :  { %v493_v28 = vsel %vm465_vm1, %v484_v19, 0.0  ;;  %v612_v19 = vpack.c.bf16 %v585_v18, %v582_v16  ;;  %645 = vmatpush1.bf16.msra.mxu1 %v610_v17 }
 0x20e   :  { %494 = vadd.xlane.f32.xlu1 %v493_v28  ;;  %4504 = vmatprep.subr.bf16.mxu1 %v5321_v51 }
 0x20f   :  { %4491 = vmatpush3.bf16.msra.mxu0 %v612_v19 }
 0x210   :  { %4540 = vmatprep.subr.bf16.mxu0 %v5321_v51 }
 0x289   :  { %v486_v22 = vpop.xlane.xlu1 %485 }
 0x28a   :  { %v496_v23 = vmul.f32 0.0078125, %v486_v22 }
 0x28c   :  { %v501_v25 = vadd.f32 1e-05, %v496_v23 }
 0x28d   :  { %v488_v26 = vpop.xlane.xlu0 %487 }
 0x28e   :  { %4953 = vrsqrt.f32 %v501_v25  ;;  %v497_v27 = vmul.f32 0.0078125, %v488_v26 }
 0x290   :  { %v502_v28 = vadd.f32 1e-05, %v497_v27 }
 0x291   :  { %v490_v29 = vpop.xlane.xlu1 %489 }
 0x292   :  { %4955 = vrsqrt.f32 %v502_v28  ;;  %v498_v31 = vmul.f32 0.0078125, %v490_v29 }
 0x294   :  { %v503_v32 = vadd.f32 1e-05, %v498_v31 }
 0x295   :  { %v492_v33 = vpop.xlane.xlu0 %491 }
 0x296   :  { %4957 = vrsqrt.f32 %v503_v32  ;;  %v499_v35 = vmul.f32 0.0078125, %v492_v33 }
 0x298   :  { %v4954_v36 = vpop.eup %4953  ;;  %v504_v37 = vadd.f32 1e-05, %v499_v35 }
 0x299   :  { %v511_v38 = vmul.f32 %v4954_v36, %v5595_v58 }
 0x29a   :  { %4959 = vrsqrt.f32 %v504_v37 }
 0x29b   :  { %v495_v41 = vpop.xlane.xlu1 %494  ;;  %v522_v44 = vmul.f32 %v4077_v39, %v511_v38 }
 0x29c   :  { %v4956_v42 = vpop.eup %4955  ;;  %v500_v43 = vmul.f32 0.0078125, %v495_v41 }
 0x29d   :  { %v512_v45 = vmul.f32 %v4956_v42, %v5600_v62  ;;  %v533_v58 = vadd.f32 %v4078_v47, %v522_v44 }
 0x29e   :  { %v505_v46 = vadd.f32 1e-05, %v500_v43 }
 0x29f   :  { %v523_v48 = vmul.f32 %v4077_v39, %v512_v45 }
 0x2a0   :  { %v4958_v49 = vpop.eup %4957  ;;  %4961 = vrsqrt.f32 %v505_v46 }
 0x2a1   :  { %v534_v50 = vadd.f32 %v4078_v47, %v523_v48  ;;  %v513_v52 = vmul.f32 %v4958_v49, %v5605_v2 }
 0x2a3   :  { %v586_v53 = vpack.c.bf16 %v534_v50, %v533_v58  ;;  %v524_v56 = vmul.f32 %v4077_v39, %v513_v52 }
 0x2a4   :  { %v4960_v54 = vpop.eup %4959 }
 0x2a5   :  { %663 = vmatmul.mubr.bf16.vlgmr.msra.gmra.mrb[12].mxu1 %v586_v53  ;;  %4493 = vmatmul.mubr.bf16.vlgmr.msra.gmra.mrb[24].mxu0 %v586_v53  ;;  %v514_v55 = vmul.f32 %v4960_v54, %v5610_v6  ;;  %v535_v57 = vadd.f32 %v4078_v47, %v524_v56 }
 0x2a6   :  { %672 = vmatprep.mubr.bf16.mxu1 %v5323_v21  ;;  %4496 = vmatprep.mubr.msk.bf16.mxu0 %vm5322_vm0, %v5321_v51 }
 0x2a7   :  { %v525_v62 = vmul.f32 %v4077_v39, %v514_v55 }
 0x2a9   :  { %v536_v59 = vadd.f32 %v4078_v47, %v525_v62 }
 0x2aa   :  { %v4962_v60 = vpop.eup %4961 }
 0x2ab   :  { %v587_v61 = vpack.c.bf16 %v536_v59, %v535_v57  ;;  %v515_v63 = vmul.f32 %v4962_v60, %v5615_v15  ;;  %v5650_v15 = vshrl.u32 %v615_v1, 7 }
 0x2ad   :  { %673 = vmatmul.mubr.bf16.gmra.mrb[16].mxu1 %v587_v61  ;;  %4497 = vmatmul.mubr.bf16.gmra.mrb[28].mxu0 %v587_v61  ;;  %v526_v2 = vmul.f32 %v4077_v39, %v515_v63  ;;  %v5653_v3 = vsub.s32 0, %v5650_v15  ;;  %v625_v4 = vsub.s32 2, %v5650_v15  ;;  %v5660_v7 = vsub.s32 1, %v5650_v15 }
 0x2ae   :  { %682 = vmatprep.mubr.bf16.mxu1 %v5323_v21  ;;  %4500 = vmatprep.mubr.msk.bf16.mxu0 %vm5322_vm0, %v5321_v51 }
 0x2af   :  { %v537_v6 = vadd.f32 %v4078_v47, %v526_v2  ;;  %v5663_v8 = vrot.slane %v613_v5, %v5653_v3  ;;  %v5667_v9 = vrot.slane %v613_v5, %v625_v4  ;;  %v622_v12 = vrot.slane %v613_v5, %v5660_v7 }
 0x2b1   :  { %v588_v0 = vpack.c.bf16 %v537_v6, %v537_v6 }
 0x2b5   :  { %683 = vmatmul.mubr.bf16.gmra.mrb[20].mxu1 %v588_v0  ;;  %4501 = vmatmul.mubr.bf16.gmra.mrb[32].mxu0 %v588_v0 }
 0x2b6   :  { %4510 = vmatprep.mubr.msk.bf16.mxu1 %vm5322_vm0, %v5321_v51  ;;  %4546 = vmatprep.mubr.msk.bf16.mxu0 %vm5322_vm0, %v5321_v51 }
 0x378   :  { %v664_v10 = vpop.f32.mrb[12].mxu1  ;;  %v725_v11 = vpop.f32.mrb[24].mxu0 }
 0x379   :  { %v666_v13 = vpop.f32.mrb[13].mxu1  ;;  %v4494_v14 = vpop.f32.mrb[25].mxu0  ;;  %v665_v18 = vadd.f32 %v664_v10, %v5663_v8  ;;  %v726_v19 = vadd.f32 %v725_v11, %v5667_v9 }
 0x37a   :  { %v668_v16 = vpop.f32.mrb[14].mxu1  ;;  %v728_v17 = vpop.f32.mrb[26].mxu0  ;;  %v667_v27 = vadd.f32 %v666_v13, %v622_v12 }
 0x37b   :  { %v669_v22 = vadd.f32 %v668_v16, %v5663_v8  ;;  %v729_v23 = vadd.f32 %v728_v17, %v5667_v9  ;;  %v670_v25 = vpop.f32.mrb[15].mxu1  ;;  %v4495_v26 = vpop.f32.mrb[27].mxu0 }
 0x37c   :  { %v671_v28 = vadd.f32 %v670_v25, %v622_v12 }
 0x37d   :  { %v5674_v29 = vpack.c.bf16 %v669_v22, %v665_v18  ;;  %v5676_v31 = vpack.c.bf16 %v729_v23, %v726_v19 }
 0x37e   :  { %v750_v32 = vpack.c.bf16 %v671_v28, %v667_v27 }
 0x380   :  { %977 = vrot.lane.b32.xlu0 %v750_v32, %s5324_s25  ;;  %v674_v33 = vpop.f32.mrb[16].mxu1  ;;  %v733_v35 = vpop.f32.mrb[28].mxu0  ;;  %v764_v36 = vsel %vm753_vm2, %v750_v32, 0 }
 0x381   :  { %v676_v37 = vpop.f32.mrb[17].mxu1  ;;  %v4498_v38 = vpop.f32.mrb[29].mxu0  ;;  %4505 = vmatpush3.bf16.xpose.msra.mxu1 %v764_v36  ;;  %v675_v42 = vadd.f32 %v674_v33, %v5663_v8  ;;  %v734_v43 = vadd.f32 %v733_v35, %v5667_v9 }
 0x382   :  { %v678_v39 = vpop.f32.mrb[18].mxu1  ;;  %v736_v41 = vpop.f32.mrb[30].mxu0  ;;  %4506 = vmatprep.subr.bf16.mxu1 %v5321_v51  ;;  %v677_v48 = vadd.f32 %v676_v37, %v622_v12 }
 0x383   :  { %v679_v44 = vadd.f32 %v678_v39, %v5663_v8  ;;  %v737_v45 = vadd.f32 %v736_v41, %v5667_v9  ;;  %v680_v46 = vpop.f32.mrb[19].mxu1  ;;  %v4499_v47 = vpop.f32.mrb[31].mxu0 }
 0x384   :  { %v681_v49 = vadd.f32 %v680_v46, %v622_v12  ;;  %1205 = vrot.lane.b32.xlu0 %v750_v32, %s5325_s26 }
 0x385   :  { %v748_v58 = vpack.c.bf16 %v679_v44, %v675_v42  ;;  %v5686_v50 = vpack.c.bf16 %v737_v45, %v734_v43 }
 0x386   :  { %v751_v52 = vpack.c.bf16 %v681_v49, %v677_v48 }
 0x388   :  { %v684_v53 = vpop.f32.mrb[20].mxu1  ;;  %v741_v54 = vpop.f32.mrb[32].mxu0  ;;  %1207 = vrot.lane.b32.xlu0 %v751_v52, %s5325_s26  ;;  %979 = vrot.lane.b32.xlu1 %v751_v52, %s5324_s25  ;;  %v767_v55 = vsel %vm753_vm2, %v751_v52, 0 }
 0x389   :  { %v686_v56 = vpop.f32.mrb[21].mxu1  ;;  %v4502_v62 = vpop.f32.mrb[33].mxu0  ;;  %4507 = vmatpush3.bf16.xpose.msra.mxu1 %v767_v55  ;;  %v685_v0 = vadd.f32 %v684_v53, %v5663_v8  ;;  %v742_v5 = vadd.f32 %v741_v54, %v5667_v9 }
 0x38a   :  { %v687_v57 = vadd.f32 %v686_v56, %v622_v12  ;;  %v688_v59 = vpop.f32.mrb[22].mxu1  ;;  %v744_v60 = vpop.f32.mrb[34].mxu0  ;;  %4508 = vmatprep.subr.bf16.mxu1 %v5321_v51 }
 0x38b   :  { %v689_v61 = vpop.f32.mrb[23].mxu1  ;;  %v4503_v63 = vpop.f32.mrb[35].mxu0  ;;  %v749_v1 = vpack.c.bf16 %v685_v0, %v685_v0  ;;  %v5711_v8 = vpack.c.bf16 %v742_v5, %v742_v5 }
 0x38c   :  { %v752_v2 = vpack.c.bf16 %v687_v57, %v687_v57 }
 0x38d   :  { %v907_v9 = vsel %vm905_vm3, %v5711_v8, 0 }
 0x38e   :  { %1209 = vrot.lane.b32.xlu0 %v752_v2, %s5325_s26  ;;  %981 = vrot.lane.b32.xlu1 %v752_v2, %s5324_s25  ;;  %v770_v6 = vsel %vm753_vm2, %v752_v2, 0 }
 0x391   :  { %4509 = vmatpush3.bf16.xpose.msra.mxu1 %v770_v6 }
 0x392   :  { %1430 = vrot.lane.b32.xlu0 %v750_v32, %s5326_s27  ;;  %968 = vrot.lane.b32.xlu1 %v5674_v29, %s5324_s25 }
 0x393   :  { %4522 = vmatprep.subr.bf16.mxu1 %v5321_v51 }
 0x396   :  { %1432 = vrot.lane.b32.xlu0 %v751_v52, %s5326_s27  ;;  %970 = vrot.lane.b32.xlu1 %v748_v58, %s5324_s25 }
 0x398   :  { %4511 = vmatmul.mubr.msk.bf16.vlgmr.msra.gmra.mrb[24].mxu1 %vm753_vm2, %v5674_v29 }
 0x399   :  { %4523 = vmatpush3.bf16.msra.mxu1 %v5676_v31  ;;  %4514 = vmatprep.mubr.msk.bf16.mxu1 %vm5322_vm0, %v5321_v51 }
 0x39a   :  { %1434 = vrot.lane.b32.xlu0 %v752_v2, %s5326_s27  ;;  %972 = vrot.lane.b32.xlu1 %v749_v1, %s5324_s25 }
 0x39b   :  { %4524 = vmatprep.subr.bf16.mxu1 %v5321_v51 }
 0x39d   :  { %4525 = vmatpush3.bf16.msra.mxu1 %v5686_v50 }
 0x39e   :  { %1426 = vrot.lane.b32.xlu0 %v748_v58, %s5326_s27  ;;  %1199 = vrot.lane.b32.xlu1 %v5674_v29, %s5325_s26 }
 0x39f   :  { %4526 = vmatprep.subr.bf16.mxu1 %v5321_v51 }
 0x3a0   :  { %4515 = vmatmul.mubr.msk.bf16.gmra.mrb[28].mxu1 %vm753_vm2, %v748_v58 }
 0x3a1   :  { %4527 = vmatpush3.bf16.msra.mxu1 %v907_v9  ;;  %4518 = vmatprep.mubr.msk.bf16.mxu1 %vm5322_vm0, %v5321_v51 }
 0x3a2   :  { %1123 = vrot.lane.b32.xlu0 %v5676_v31, %s5324_s25  ;;  %1201 = vrot.lane.b32.xlu1 %v748_v58, %s5325_s26 }
 0x3a3   :  { %4558 = vmatprep.subr.bf16.mxu1 %v5321_v51 }
 0x3a6   :  { %1203 = vrot.lane.b32.xlu1 %v749_v1, %s5325_s26 }
 0x3a8   :  { %4519 = vmatmul.mubr.msk.bf16.gmra.mrb[32].mxu1 %vm753_vm2, %v749_v1 }
 0x3a9   :  { %4528 = vmatprep.mubr.msk.bf16.mxu1 %vm5322_vm0, %v5321_v51 }
 0x3aa   :  { %1424 = vrot.lane.b32.xlu1 %v5674_v29, %s5326_s27 }
 0x3ae   :  { %1428 = vrot.lane.b32.xlu1 %v749_v1, %s5326_s27 }
 0x3b2   :  { %1125 = vrot.lane.b32.xlu1 %v5686_v50, %s5324_s25 }
 0x3f2   :  { %v978_v10 = vpop.permute.xlu0 %977 }
 0x3f3   :  { %v993_v11 = vsel %vm753_vm2, %v978_v10, 0 }
 0x3f4   :  { %4541 = vmatpush3.bf16.xpose.msra.mxu0 %v993_v11 }
 0x3f5   :  { %4542 = vmatprep.subr.bf16.mxu0 %v5321_v51 }
 0x3f6   :  { %v1206_v17 = vpop.permute.xlu0 %1205 }
 0x3f7   :  { %v1221_v19 = vsel %vm753_vm2, %v1206_v17, 0 }
 0x3fa   :  { %v980_v12 = vpop.permute.xlu1 %979  ;;  %v1208_v22 = vpop.permute.xlu0 %1207 }
 0x3fb   :  { %v996_v13 = vsel %vm753_vm2, %v980_v12, 0  ;;  %v1224_v25 = vsel %vm753_vm2, %v1208_v22, 0 }
 0x3fc   :  { %4543 = vmatpush3.bf16.xpose.msra.mxu0 %v996_v13 }
 0x3fd   :  { %4544 = vmatprep.subr.bf16.mxu0 %v5321_v51 }
 0x400   :  { %v982_v14 = vpop.permute.xlu1 %981  ;;  %v1210_v26 = vpop.permute.xlu0 %1209 }
 0x401   :  { %v999_v16 = vsel %vm753_vm2, %v982_v14, 0  ;;  %v1227_v28 = vsel %vm753_vm2, %v1210_v26, 0 }
 0x404   :  { %4545 = vmatpush3.bf16.xpose.msra.mxu0 %v999_v16  ;;  %v969_v18 = vpop.permute.xlu1 %968  ;;  %v1431_v29 = vpop.permute.xlu0 %1430 }
 0x405   :  { %4576 = vmatprep.subr.bf16.mxu0 %v5321_v51  ;;  %v1446_v33 = vsel %vm753_vm2, %v1431_v29, 0 }
 0x408   :  { %v971_v23 = vpop.permute.xlu1 %970  ;;  %v1433_v35 = vpop.permute.xlu0 %1432 }
 0x409   :  { %v1449_v37 = vsel %vm753_vm2, %v1433_v35, 0 }
 0x40b   :  { %4547 = vmatmul.mubr.msk.bf16.vlgmr.msra.gmra.mrb[36].mxu0 %vm753_vm2, %v969_v18 }
 0x40c   :  { %4577 = vmatpush3.bf16.xpose.msra.mxu0 %v1221_v19  ;;  %4550 = vmatprep.mubr.msk.bf16.mxu0 %vm5322_vm0, %v5321_v51  ;;  %v973_v27 = vpop.permute.xlu1 %972  ;;  %v1435_v38 = vpop.permute.xlu0 %1434 }
 0x40d   :  { %4578 = vmatprep.subr.bf16.mxu0 %v5321_v51  ;;  %v1452_v41 = vsel %vm753_vm2, %v1435_v38, 0 }
 0x410   :  { %v1200_v32 = vpop.permute.xlu1 %1199  ;;  %v1427_v43 = vpop.permute.xlu0 %1426 }
 0x413   :  { %4551 = vmatmul.mubr.msk.bf16.gmra.mrb[40].mxu0 %vm753_vm2, %v971_v23 }
 0x414   :  { %4579 = vmatpush3.bf16.xpose.msra.mxu0 %v1224_v25  ;;  %4554 = vmatprep.mubr.msk.bf16.mxu0 %vm5322_vm0, %v5321_v51  ;;  %v1202_v36 = vpop.permute.xlu1 %1201 }
 0x415   :  { %4580 = vmatprep.subr.bf16.mxu0 %v5321_v51 }
 0x418   :  { %v1204_v39 = vpop.permute.xlu1 %1203 }
 0x41b   :  { %4555 = vmatmul.mubr.msk.bf16.gmra.mrb[44].mxu0 %vm753_vm2, %v973_v27 }
 0x41c   :  { %4581 = vmatpush3.bf16.xpose.msra.mxu0 %v1227_v28  ;;  %4582 = vmatprep.mubr.msk.bf16.mxu0 %vm5322_vm0, %v5321_v51  ;;  %v1425_v42 = vpop.permute.xlu1 %1424 }
 0x41d   :  { %4612 = vmatprep.subr.bf16.mxu0 %v5321_v51 }
 0x420   :  { %v1429_v44 = vpop.permute.xlu1 %1428 }
 0x423   :  { %4583 = vmatmul.mubr.msk.bf16.vlgmr.msra.gmra.mrb[48].mxu0 %vm753_vm2, %v1200_v32 }
 0x424   :  { %4613 = vmatpush3.bf16.xpose.msra.mxu0 %v1446_v33  ;;  %4586 = vmatprep.mubr.msk.bf16.mxu0 %vm5322_vm0, %v5321_v51 }
 0x425   :  { %4614 = vmatprep.subr.bf16.mxu0 %v5321_v51 }
 0x42b   :  { %4587 = vmatmul.mubr.msk.bf16.gmra.mrb[52].mxu0 %vm753_vm2, %v1202_v36 }
 0x42c   :  { %4615 = vmatpush3.bf16.xpose.msra.mxu0 %v1449_v37  ;;  %4590 = vmatprep.mubr.msk.bf16.mxu0 %vm5322_vm0, %v5321_v51 }
 0x42d   :  { %4616 = vmatprep.subr.bf16.mxu0 %v5321_v51 }
 0x433   :  { %4591 = vmatmul.mubr.msk.bf16.gmra.mrb[56].mxu0 %vm753_vm2, %v1204_v39 }
 0x434   :  { %4617 = vmatpush3.bf16.xpose.msra.mxu0 %v1452_v41  ;;  %4618 = vmatprep.mubr.msk.bf16.mxu0 %vm5322_vm0, %v5321_v51 }
 0x435   :  { %4648 = vmatprep.subr.bf16.mxu0 %v5321_v51 }
 0x43b   :  { %4619 = vmatmul.mubr.msk.bf16.vlgmr.msra.gmra.mrb[60].mxu0 %vm753_vm2, %v1425_v42 }
 0x43c   :  { %4622 = vmatprep.mubr.msk.bf16.mxu0 %vm5322_vm0, %v5321_v51 }
 0x443   :  { %4623 = vmatmul.mubr.msk.bf16.gmra.mrb[64].mxu0 %vm753_vm2, %v1427_v43  ;;  %v5813_v43 = vpop.permute.xlu0 %1123 }
 0x444   :  { %4626 = vmatprep.mubr.msk.bf16.mxu0 %vm5322_vm0, %v5321_v51 }
 0x44b   :  { %4627 = vmatmul.mubr.msk.bf16.gmra.mrb[68].mxu0 %vm753_vm2, %v1429_v44 }
 0x44c   :  { %4664 = vmatprep.mubr.msk.bf16.mxu0 %vm5322_vm0, %v5321_v51 }
 0x46b   :  { %v806_v45 = vpop.f32.mrb[24].mxu1 }
 0x46c   :  { %v5781_v46 = vmul.f32 0.17677669, %v806_v45  ;;  %v4512_v47 = vpop.f32.mrb[25].mxu1 }
 0x46d   :  { %v809_v48 = vpop.f32.mrb[26].mxu1  ;;  %v5815_v47 = vpop.permute.xlu1 %1125 }
 0x46e   :  { %v5783_v49 = vmul.f32 0.17677669, %v809_v48  ;;  %v4513_v58 = vpop.f32.mrb[27].mxu1  ;;  %v834_v52 = vsel %vm833_vm4, %v5781_v46, -inf }
 0x46f   :  { %835 = vmax.xlane.f32.xlu0 %v834_v52 }
 0x470   :  { %v837_v53 = vsel %vm833_vm4, %v5783_v49, -inf }
 0x471   :  { %838 = vmax.xlane.f32.xlu1 %v837_v53 }
 0x473   :  { %v814_v54 = vpop.f32.mrb[28].mxu1 }
 0x474   :  { %v5789_v55 = vmul.f32 0.17677669, %v814_v54  ;;  %v4516_v56 = vpop.f32.mrb[29].mxu1 }
 0x475   :  { %v817_v62 = vpop.f32.mrb[30].mxu1 }
 0x476   :  { %v5791_v57 = vmul.f32 0.17677669, %v817_v62  ;;  %v4517_v59 = vpop.f32.mrb[31].mxu1  ;;  %v840_v60 = vsel %vm833_vm4, %v5789_v55, -inf }
 0x477   :  { %841 = vmax.xlane.f32.xlu0 %v840_v60 }
 0x478   :  { %v843_v61 = vsel %vm833_vm4, %v5791_v57, -inf }
 0x47b   :  { %844 = vmax.xlane.f32.xlu0 %v843_v61  ;;  %v822_v63 = vpop.f32.mrb[32].mxu1 }
 0x47c   :  { %v5797_v2 = vmul.f32 0.17677669, %v822_v63  ;;  %v4520_v6 = vpop.f32.mrb[33].mxu1 }
 0x47d   :  { %v825_v0 = vpop.f32.mrb[34].mxu1 }
 0x47e   :  { %v4521_v1 = vpop.f32.mrb[35].mxu1  ;;  %v847_v5 = vsel %vm846_vm5, %v5797_v2, -inf }
 0x47f   :  { %848 = vmax.xlane.f32.xlu0 %v847_v5 }
 0x4de   :  { %v1035_v9 = vpop.f32.mrb[36].mxu0 }
 0x4df   :  { %v5801_v10 = vmul.f32 0.17677669, %v1035_v9  ;;  %v4548_v11 = vpop.f32.mrb[37].mxu0 }
 0x4e0   :  { %v1038_v12 = vpop.f32.mrb[38].mxu0 }
 0x4e1   :  { %v5803_v13 = vmul.f32 0.17677669, %v1038_v12  ;;  %v4549_v14 = vpop.f32.mrb[39].mxu0  ;;  %v1062_v16 = vsel %vm833_vm4, %v5801_v10, -inf }
 0x4e2   :  { %1063 = vmax.xlane.f32.xlu1 %v1062_v16 }
 0x4e3   :  { %v1065_v17 = vsel %vm833_vm4, %v5803_v13, -inf }
 0x4e4   :  { %1066 = vmax.xlane.f32.xlu0 %v1065_v17 }
 0x4e6   :  { %v1043_v18 = vpop.f32.mrb[40].mxu0 }
 0x4e7   :  { %v4552_v19 = vpop.f32.mrb[41].mxu0  ;;  %v5818_v60 = vmul.f32 0.17677669, %v1043_v18 }
 0x4e8   :  { %v1046_v22 = vpop.f32.mrb[42].mxu0 }
 0x4e9   :  { %v4553_v23 = vpop.f32.mrb[43].mxu0  ;;  %v5821_v63 = vmul.f32 0.17677669, %v1046_v22  ;;  %v1068_v9 = vsel %vm833_vm4, %v5818_v60, -inf }
 0x4eb   :  { %v1071_v16 = vsel %vm833_vm4, %v5821_v63, -inf }
 0x4ee   :  { %v1051_v25 = vpop.f32.mrb[44].mxu0 }
 0x4ef   :  { %v4556_v26 = vpop.f32.mrb[45].mxu0  ;;  %v5823_v0 = vmul.f32 0.17677669, %v1051_v25 }
 0x4f0   :  { %v1054_v27 = vpop.f32.mrb[46].mxu0 }
 0x4f1   :  { %v4557_v28 = vpop.f32.mrb[47].mxu0  ;;  %v1074_v19 = vsel %vm846_vm5, %v5823_v0, -inf }
 0x4f3   :  { %1348 = vrot.lane.b32.xlu1 %v5676_v31, %s5325_s26 }
 0x4f6   :  { %v1263_v29 = vpop.f32.mrb[48].mxu0 }
 0x4f7   :  { %v4584_v32 = vpop.f32.mrb[49].mxu0  ;;  %v5827_v14 = vmul.f32 0.17677669, %v1263_v29 }
 0x4f8   :  { %v1266_v33 = vpop.f32.mrb[50].mxu0 }
 0x4f9   :  { %v4585_v35 = vpop.f32.mrb[51].mxu0  ;;  %v5832_v18 = vmul.f32 0.17677669, %v1266_v33  ;;  %v1290_v25 = vsel %vm833_vm4, %v5827_v14, -inf }
 0x4fa   :  { %1127 = vrot.lane.b32.xlu0 %v5711_v8, %s5324_s25 }
 0x4fb   :  { %v1293_v28 = vsel %vm833_vm4, %v5832_v18, -inf }
 0x4fc   :  { %v836_v48 = vpop.xlane.xlu0 %835 }
 0x4fd   :  { %v850_v62 = vsub.f32 %v5781_v46, %v836_v48 }
 0x4fe   :  { %v1271_v36 = vpop.f32.mrb[52].mxu0  ;;  %v839_v52 = vpop.xlane.xlu1 %838 }
 0x4ff   :  { %v4588_v37 = vpop.f32.mrb[53].mxu0  ;;  %v851_v61 = vsub.f32 %v5783_v49, %v839_v52  ;;  %v855_v6 = vmul.f32 1.442695, %v850_v62  ;;  %v5837_v23 = vmul.f32 0.17677669, %v1271_v36 }
 0x500   :  { %v1274_v38 = vpop.f32.mrb[54].mxu0 }
 0x501   :  { %v4589_v39 = vpop.f32.mrb[55].mxu0  ;;  %v857_v11 = vmul.f32 1.442695, %v851_v61  ;;  %4963 = vpow2.f32 %v855_v6  ;;  %v5841_v27 = vmul.f32 0.17677669, %v1274_v38  ;;  %v1296_v36 = vsel %vm833_vm4, %v5837_v23, -inf }
 0x503   :  { %4965 = vpow2.f32 %v857_v11  ;;  %v1299_v38 = vsel %vm833_vm4, %v5841_v27, -inf }
 0x504   :  { %v842_v54 = vpop.xlane.xlu0 %841 }
 0x505   :  { %v852_v22 = vsub.f32 %v5789_v55, %v842_v54 }
 0x506   :  { %v1279_v41 = vpop.f32.mrb[56].mxu0 }
 0x507   :  { %v4592_v42 = vpop.f32.mrb[57].mxu0  ;;  %v859_v29 = vmul.f32 1.442695, %v852_v22  ;;  %v5845_v33 = vmul.f32 0.17677669, %v1279_v41 }
 0x508   :  { %v1282_v44 = vpop.f32.mrb[58].mxu0  ;;  %v845_v1 = vpop.xlane.xlu0 %844 }
 0x509   :  { %v4593_v45 = vpop.f32.mrb[59].mxu0  ;;  %v853_v49 = vsub.f32 %v5791_v57, %v845_v1  ;;  %v1302_v41 = vsel %vm846_vm5, %v5845_v33, -inf }
 0x50b   :  { %v861_v26 = vmul.f32 1.442695, %v853_v49  ;;  %v5851_v39 = vpop.eup %4963 }
 0x50c   :  { %v849_v55 = vpop.xlane.xlu0 %848  ;;  %v865_v48 = vsel %vm833_vm4, %v5851_v39, 0.0 }
 0x50d   :  { %4967 = vpow2.f32 %v861_v26  ;;  %v854_v42 = vsub.f32 %v5797_v2, %v849_v55  ;;  %v5856_v44 = vpop.eup %4965 }
 0x50e   :  { %v1488_v58 = vpop.f32.mrb[60].mxu0  ;;  %4969 = vpow2.f32 %v859_v29  ;;  %v868_v54 = vsel %vm833_vm4, %v5856_v44, 0.0 }
 0x50f   :  { %v4620_v53 = vpop.f32.mrb[61].mxu0  ;;  %v5858_v45 = vmul.f32 0.17677669, %v1488_v58  ;;  %v863_v52 = vmul.f32 1.442695, %v854_v42 }
 0x510   :  { %v1491_v56 = vpop.f32.mrb[62].mxu0 }
 0x511   :  { %v4621_v59 = vpop.f32.mrb[63].mxu0  ;;  %v5862_v53 = vmul.f32 0.17677669, %v1491_v56  ;;  %v1515_v2 = vsel %vm833_vm4, %v5858_v45, -inf  ;;  %4971 = vpow2.f32 %v863_v52 }
 0x513   :  { %v1518_v58 = vsel %vm833_vm4, %v5862_v53, -inf }
 0x516   :  { %v1496_v5 = vpop.f32.mrb[64].mxu0 }
 0x517   :  { %1069 = vmax.xlane.f32.xlu1 %v1068_v9  ;;  %v4624_v12 = vpop.f32.mrb[65].mxu0  ;;  %v5868_v62 = vpop.eup %4967  ;;  %v5874_v61 = vmul.f32 0.17677669, %v1496_v5 }
 0x518   :  { %v1499_v46 = vpop.f32.mrb[66].mxu0  ;;  %v5872_v59 = vpop.eup %4969  ;;  %v874_v56 = vsel %vm833_vm4, %v5868_v62, 0.0 }
 0x519   :  { %1072 = vmax.xlane.f32.xlu0 %v1071_v16  ;;  %v4625_v17 = vpop.f32.mrb[67].mxu0  ;;  %v5878_v6 = vmul.f32 0.17677669, %v1499_v46  ;;  %v871_v1 = vsel %vm833_vm4, %v5872_v59, 0.0  ;;  %v1521_v11 = vsel %vm833_vm4, %v5874_v61, -inf }
 0x51b   :  { %1075 = vmax.xlane.f32.xlu1 %v1074_v19  ;;  %v1524_v5 = vsel %vm833_vm4, %v5878_v6, -inf  ;;  %v5888_v12 = vpop.eup %4971 }
 0x51c   :  { %v877_v16 = vsel %vm846_vm5, %v5888_v12, 0.0 }
 0x51d   :  { %1291 = vmax.xlane.f32.xlu0 %v1290_v25 }
 0x51e   :  { %v1504_v57 = vpop.f32.mrb[68].mxu0 }
 0x51f   :  { %1294 = vmax.xlane.f32.xlu1 %v1293_v28  ;;  %v4628_v32 = vpop.f32.mrb[69].mxu0  ;;  %v5882_v9 = vmul.f32 0.17677669, %v1504_v57 }
 0x520   :  { %v1507_v35 = vpop.f32.mrb[70].mxu0 }
 0x521   :  { %1297 = vmax.xlane.f32.xlu0 %v1296_v36  ;;  %v4629_v37 = vpop.f32.mrb[71].mxu0  ;;  %v1527_v46 = vsel %vm846_vm5, %v5882_v9, -inf }
 0x523   :  { %1300 = vmax.xlane.f32.xlu1 %v1299_v38 }
 0x525   :  { %1303 = vmax.xlane.f32.xlu0 %v1302_v41 }
 0x527   :  { %866 = vadd.xlane.f32.xlu1 %v865_v48 }
 0x529   :  { %869 = vadd.xlane.f32.xlu0 %v868_v54 }
 0x52b   :  { %1516 = vmax.xlane.f32.xlu1 %v1515_v2 }
 0x52d   :  { %1519 = vmax.xlane.f32.xlu0 %v1518_v58 }
 0x52f   :  { %875 = vadd.xlane.f32.xlu1 %v874_v56 }
 0x531   :  { %872 = vadd.xlane.f32.xlu0 %v871_v1 }
 0x533   :  { %1522 = vmax.xlane.f32.xlu1 %v1521_v11 }
 0x535   :  { %1525 = vmax.xlane.f32.xlu0 %v1524_v5 }
 0x537   :  { %1528 = vmax.xlane.f32.xlu1 %v1527_v46 }
 0x539   :  { %878 = vadd.xlane.f32.xlu0 %v877_v16 }
 0x56f   :  { %v1064_v49 = vpop.xlane.xlu1 %1063 }
 0x570   :  { %v1077_v17 = vsub.f32 %v5801_v10, %v1064_v49 }
 0x571   :  { %v1067_v19 = vpop.xlane.xlu0 %1066 }
 0x572   :  { %v1082_v22 = vmul.f32 1.442695, %v1077_v17  ;;  %v1078_v25 = vsub.f32 %v5803_v13, %v1067_v19 }
 0x573   :  { %v5904_v10 = vpop.permute.xlu1 %1348 }
 0x574   :  { %4973 = vpow2.f32 %v1082_v22  ;;  %v1084_v26 = vmul.f32 1.442695, %v1078_v25 }
 0x575   :  { %v5906_v55 = vpop.permute.xlu0 %1127 }
 0x576   :  { %4975 = vpow2.f32 %v1084_v26 }
 0x57e   :  { %v5896_v57 = vpop.eup %4973 }
 0x57f   :  { %v1092_v28 = vsel %vm833_vm4, %v5896_v57, 0.0 }
 0x580   :  { %v5900_v29 = vpop.eup %4975  ;;  %1093 = vadd.xlane.f32.xlu1 %v1092_v28 }
 0x581   :  { %v1095_v32 = vsel %vm833_vm4, %v5900_v29, 0.0 }
 0x582   :  { %1096 = vadd.xlane.f32.xlu0 %v1095_v32 }
 0x5a4   :  { %v1070_v13 = vpop.xlane.xlu1 %1069 }
 0x5a5   :  { %v1079_v35 = vsub.f32 %v5818_v60, %v1070_v13 }
 0x5a6   :  { %v1073_v36 = vpop.xlane.xlu0 %1072 }
 0x5a7   :  { %v1086_v37 = vmul.f32 1.442695, %v1079_v35  ;;  %v1080_v38 = vsub.f32 %v5821_v63, %v1073_v36 }
 0x5a8   :  { %v1076_v42 = vpop.xlane.xlu1 %1075 }
 0x5a9   :  { %4977 = vpow2.f32 %v1086_v37  ;;  %v1088_v41 = vmul.f32 1.442695, %v1080_v38  ;;  %v1081_v48 = vsub.f32 %v5823_v0, %v1076_v42 }
 0x5aa   :  { %v1292_v52 = vpop.xlane.xlu0 %1291 }
 0x5ab   :  { %4979 = vpow2.f32 %v1088_v41  ;;  %v1090_v54 = vmul.f32 1.442695, %v1081_v48  ;;  %v1305_v2 = vsub.f32 %v5827_v14, %v1292_v52 }
 0x5ac   :  { %v5912_v58 = vpop.xlane.xlu1 %1294 }
 0x5ad   :  { %4981 = vpow2.f32 %v1090_v54  ;;  %v1310_v56 = vmul.f32 1.442695, %v1305_v2 }
 0x5ae   :  { %v1298_v1 = vpop.xlane.xlu0 %1297 }
 0x5af   :  { %4983 = vpow2.f32 %v1310_v56  ;;  %v1307_v60 = vsub.f32 %v5837_v23, %v1298_v1 }
 0x5b0   :  { %v1301_v11 = vpop.xlane.xlu1 %1300 }
 0x5b1   :  { %v1314_v63 = vmul.f32 1.442695, %v1307_v60  ;;  %v1308_v5 = vsub.f32 %v5841_v27, %v1301_v11 }
 0x5b2   :  { %v1304_v46 = vpop.xlane.xlu0 %1303 }
 0x5b3   :  { %v5916_v16 = vpop.eup %4977  ;;  %4985 = vpow2.f32 %v1314_v63  ;;  %v1316_v0 = vmul.f32 1.442695, %v1308_v5  ;;  %v1309_v49 = vsub.f32 %v5845_v33, %v1304_v46 }
 0x5b4   :  { %v867_v14 = vpop.xlane.xlu1 %866  ;;  %v1098_v17 = vsel %vm833_vm4, %v5916_v16, 0.0 }
 0x5b5   :  { %v5921_v19 = vpop.eup %4979  ;;  %1099 = vadd.xlane.f32.xlu1 %v1098_v17  ;;  %4987 = vrcp.f32 %v867_v14  ;;  %v1318_v25 = vmul.f32 1.442695, %v1309_v49  ;;  %v1306_v49 = vsub.f32 %v5832_v18, %v5912_v58 }
 0x5b6   :  { %v870_v23 = vpop.xlane.xlu0 %869  ;;  %v1101_v22 = vsel %vm833_vm4, %v5921_v19, 0.0  ;;  %4989 = vpow2.f32 %v1316_v0  ;;  %v1141_v0 = vsel %vm905_vm3, %v5906_v55, 0 }
 0x5b7   :  { %v5925_v27 = vpop.eup %4981  ;;  %1102 = vadd.xlane.f32.xlu0 %v1101_v22  ;;  %4991 = vrcp.f32 %v870_v23  ;;  %v1312_v55 = vmul.f32 1.442695, %v1306_v49 }
 0x5b8   :  { %v1517_v26 = vpop.xlane.xlu1 %1516  ;;  %v1104_v33 = vsel %vm846_vm5, %v5925_v27, 0.0  ;;  %4993 = vpow2.f32 %v1318_v25 }
 0x5b9   :  { %v5929_v28 = vpop.eup %4983  ;;  %1105 = vadd.xlane.f32.xlu1 %v1104_v33  ;;  %v1530_v14 = vsub.f32 %v5858_v45, %v1517_v26 }
 0x5ba   :  { %v1520_v32 = vpop.xlane.xlu0 %1519  ;;  %v1320_v35 = vsel %vm833_vm4, %v5929_v28, 0.0 }
 0x5bb   :  { %v1535_v17 = vmul.f32 1.442695, %v1530_v14 }
 0x5bc   :  { %v876_v13 = vpop.xlane.xlu1 %875 }
 0x5bd   :  { %v5933_v36 = vpop.eup %4985  ;;  %1321 = vadd.xlane.f32.xlu1 %v1320_v35  ;;  %4995 = vrcp.f32 %v876_v13 }
 0x5be   :  { %v873_v37 = vpop.xlane.xlu0 %872  ;;  %v1326_v42 = vsel %vm833_vm4, %v5933_v36, 0.0 }
 0x5bf   :  { %v4988_v38 = vpop.eup %4987  ;;  %4997 = vrcp.f32 %v873_v37 }
 0x5c0   :  { %v5937_v41 = vpop.eup %4989  ;;  %v885_v54 = vmul.f32 %v4988_v38, %v5851_v39  ;;  %v1523_v22 = vpop.xlane.xlu1 %1522 }
 0x5c1   :  { %1327 = vadd.xlane.f32.xlu1 %v1326_v42  ;;  %v4992_v48 = vpop.eup %4991  ;;  %v1329_v56 = vsel %vm833_vm4, %v5937_v41, 0.0  ;;  %v1532_v33 = vsub.f32 %v5874_v61, %v1523_v22 }
 0x5c2   :  { %v1526_v52 = vpop.xlane.xlu0 %1525  ;;  %v886_v2 = vmul.f32 %v4992_v48, %v5856_v44  ;;  %v5943_v1 = vpop.eup %4993 }
 0x5c3   :  { %v1332_v5 = vsel %vm846_vm5, %v5943_v1, 0.0  ;;  %v1539_v45 = vmul.f32 1.442695, %v1532_v33  ;;  %v1533_v26 = vsub.f32 %v5878_v6, %v1526_v52 }
 0x5c4   :  { %v890_v60 = vpack.c.bf16 %v886_v2, %v885_v54  ;;  %v1529_v38 = vpop.xlane.xlu1 %1528 }
 0x5c5   :  { %1330 = vadd.xlane.f32.xlu1 %v1329_v56  ;;  %v1534_v48 = vsub.f32 %v5882_v9, %v1529_v38 }
 0x5c6   :  { %v879_v11 = vpop.xlane.xlu0 %878  ;;  %4529 = vmatmul.mubr.msk.bf16.vlgmr.msra.gmra.mrb[36].mxu1 %vm833_vm4, %v890_v60 }
 0x5c7   :  { %v4996_v63 = vpop.eup %4995  ;;  %4559 = vmatpush3.bf16.msra.mxu1 %v5813_v43  ;;  %4999 = vrcp.f32 %v879_v11  ;;  %4532 = vmatprep.mubr.msk.bf16.mxu1 %vm5322_vm0, %v5321_v51  ;;  %v1543_v54 = vmul.f32 1.442695, %v1534_v48 }
 0x5c8   :  { %4560 = vmatprep.subr.bf16.mxu1 %v5321_v51  ;;  %v888_v46 = vmul.f32 %v4996_v63, %v5868_v62  ;;  %5001 = vpow2.f32 %v1312_v55 }
 0x5c9   :  { %1333 = vadd.xlane.f32.xlu1 %v1332_v5  ;;  %v4998_v39 = vpop.eup %4997  ;;  %5003 = vpow2.f32 %v1535_v17 }
 0x5ca   :  { %v887_v44 = vmul.f32 %v4998_v39, %v5872_v59 }
 0x5cb   :  { %4561 = vmatpush3.bf16.msra.mxu1 %v5815_v47 }
 0x5cc   :  { %4562 = vmatprep.subr.bf16.mxu1 %v5321_v51  ;;  %v891_v43 = vpack.c.bf16 %v888_v46, %v887_v44 }
 0x5cd   :  { %1350 = vrot.lane.b32.xlu0 %v5686_v50, %s5325_s26 }
 0x5ce   :  { %4533 = vmatmul.mubr.msk.bf16.gmra.mrb[40].mxu1 %vm833_vm4, %v891_v43 }
 0x5cf   :  { %4563 = vmatpush3.bf16.msra.mxu1 %v1141_v0  ;;  %4536 = vmatprep.mubr.msk.bf16.mxu1 %vm5322_vm0, %v5321_v51 }
 0x5d0   :  { %4594 = vmatprep.subr.bf16.mxu1 %v5321_v51 }
 0x5d1   :  { %v5000_v62 = vpop.eup %4999 }
 0x5d2   :  { %v889_v47 = vmul.f32 %v5000_v62, %v5888_v12  ;;  %v5973_v23 = vpop.eup %5001  ;;  %v1531_v12 = vsub.f32 %v5862_v53, %v1520_v32  ;;  %v1541_v53 = vmul.f32 1.442695, %v1533_v26 }
 0x5d3   :  { %v1323_v18 = vsel %vm833_vm4, %v5973_v23, 0.0  ;;  %v5978_v58 = vpop.eup %5003 }
 0x5d4   :  { %v892_v59 = vpack.c.bf16 %v889_v47, %v889_v47  ;;  %v1537_v25 = vmul.f32 1.442695, %v1531_v12 }
 0x5d6   :  { %4537 = vmatmul.mubr.msk.bf16.gmra.mrb[44].mxu1 %vm833_vm4, %v892_v59  ;;  %5005 = vpow2.f32 %v1537_v25 }
 0x5d7   :  { %4564 = vmatprep.mubr.msk.bf16.mxu1 %vm5322_vm0, %v5321_v51  ;;  %5007 = vpow2.f32 %v1539_v45 }
 0x5d8   :  { %5009 = vpow2.f32 %v1541_v53 }
 0x5da   :  { %1573 = vrot.lane.b32.xlu1 %v5676_v31, %s5326_s27  ;;  %v1545_v31 = vsel %vm833_vm4, %v5978_v58, 0.0 }
 0x5e0   :  { %v5984_v32 = vpop.eup %5005 }
 0x5e1   :  { %v1548_v13 = vsel %vm833_vm4, %v5984_v32, 0.0  ;;  %v5988_v35 = vpop.eup %5007 }
 0x5e2   :  { %v1551_v61 = vsel %vm833_vm4, %v5988_v35, 0.0  ;;  %v5992_v37 = vpop.eup %5009 }
 0x5e3   :  { %v1554_v6 = vsel %vm833_vm4, %v5992_v37, 0.0 }
 0x5ec   :  { %1324 = vadd.xlane.f32.xlu0 %v1323_v18 }
 0x5f0   :  { %1546 = vadd.xlane.f32.xlu0 %v1545_v31 }
 0x5fe   :  { %1549 = vadd.xlane.f32.xlu1 %v1548_v13 }
 0x602   :  { %1552 = vadd.xlane.f32.xlu1 %v1551_v61 }
 0x606   :  { %1352 = vrot.lane.b32.xlu0 %v5711_v8, %s5325_s26  ;;  %1555 = vadd.xlane.f32.xlu1 %v1554_v6 }
 0x60d   :  { %v1094_v42 = vpop.xlane.xlu1 %1093 }
 0x60e   :  { %5011 = vrcp.f32 %v1094_v42 }
 0x60f   :  { %v1097_v52 = vpop.xlane.xlu0 %1096 }
 0x610   :  { %5013 = vrcp.f32 %v1097_v52 }
 0x611   :  { %5015 = vpow2.f32 %v1543_v54 }
 0x617   :  { %1575 = vrot.lane.b32.xlu1 %v5686_v50, %s5326_s27 }
 0x618   :  { %v5012_v2 = vpop.eup %5011 }
 0x619   :  { %v1112_v60 = vmul.f32 %v5012_v2, %v5896_v57 }
 0x61a   :  { %v5014_v56 = vpop.eup %5013 }
 0x61b   :  { %v1113_v11 = vmul.f32 %v5014_v56, %v5900_v29  ;;  %1577 = vrot.lane.b32.xlu1 %v5711_v8, %s5326_s27  ;;  %v6009_v9 = vpop.eup %5015 }
 0x61c   :  { %v1557_v50 = vsel %vm846_vm5, %v6009_v9, 0.0 }
 0x61d   :  { %v1117_v63 = vpack.c.bf16 %v1113_v11, %v1112_v60 }
 0x61f   :  { %4565 = vmatmul.mubr.msk.bf16.vlgmr.msra.gmra.mrb[48].mxu1 %vm833_vm4, %v1117_v63 }
 0x620   :  { %4595 = vmatpush3.bf16.msra.mxu1 %v5904_v10  ;;  %4568 = vmatprep.mubr.msk.bf16.mxu1 %vm5322_vm0, %v5321_v51 }
 0x621   :  { %4596 = vmatprep.subr.bf16.mxu1 %v5321_v51 }
 0x625   :  { %1558 = vadd.xlane.f32.xlu0 %v1557_v50 }
 0x642   :  { %v1100_v57 = vpop.xlane.xlu1 %1099 }
 0x643   :  { %5017 = vrcp.f32 %v1100_v57 }
 0x644   :  { %v1103_v29 = vpop.xlane.xlu0 %1102 }
 0x645   :  { %5019 = vrcp.f32 %v1103_v29 }
 0x646   :  { %v1106_v8 = vpop.xlane.xlu1 %1105 }
 0x647   :  { %5021 = vrcp.f32 %v1106_v8 }
 0x648   :  { %v1351_v5 = vpop.permute.xlu0 %1350 }
 0x649   :  { %4597 = vmatpush3.bf16.msra.mxu1 %v1351_v5 }
 0x64a   :  { %4598 = vmatprep.subr.bf16.mxu1 %v5321_v51  ;;  %v1322_v59 = vpop.xlane.xlu1 %1321 }
 0x64b   :  { %5023 = vrcp.f32 %v1322_v59 }
 0x64d   :  { %v5018_v10 = vpop.eup %5017 }
 0x64e   :  { %v1114_v44 = vmul.f32 %v5018_v10, %v5916_v16  ;;  %v1328_v49 = vpop.xlane.xlu1 %1327 }
 0x64f   :  { %v5020_v39 = vpop.eup %5019 }
 0x650   :  { %v1115_v46 = vmul.f32 %v5020_v39, %v5921_v19 }
 0x651   :  { %v5022_v0 = vpop.eup %5021 }
 0x652   :  { %v1118_v43 = vpack.c.bf16 %v1115_v46, %v1114_v44  ;;  %v1116_v62 = vmul.f32 %v5022_v0, %v5925_v27  ;;  %v1331_v19 = vpop.xlane.xlu1 %1330 }
 0x654   :  { %4569 = vmatmul.mubr.msk.bf16.gmra.mrb[52].mxu1 %vm833_vm4, %v1118_v43  ;;  %v1119_v47 = vpack.c.bf16 %v1116_v62, %v1116_v62 }
 0x655   :  { %4572 = vmatprep.mubr.msk.bf16.mxu1 %vm5322_vm0, %v5321_v51  ;;  %v5024_v12 = vpop.eup %5023 }
 0x656   :  { %v1334_v14 = vpop.xlane.xlu1 %1333  ;;  %v1340_v18 = vmul.f32 %v5024_v12, %v5929_v28  ;;  %v1726_v12 = vld [vmem:[%s7027_s8] sm:$0xff] }
 0x65a   :  { %v1574_v33 = vpop.permute.xlu1 %1573 }
 0x65c   :  { %4573 = vmatmul.mubr.msk.bf16.gmra.mrb[56].mxu1 %vm833_vm4, %v1119_v47 }
 0x65d   :  { %4600 = vmatprep.mubr.msk.bf16.mxu1 %vm5322_vm0, %v5321_v51 }
 0x679   :  { %v1325_v16 = vpop.xlane.xlu0 %1324 }
 0x67a   :  { %5025 = vrcp.f32 %v1325_v16 }
 0x67b   :  { %5027 = vrcp.f32 %v1331_v19 }
 0x67c   :  { %5029 = vrcp.f32 %v1328_v49 }
 0x67d   :  { %v1547_v55 = vpop.xlane.xlu0 %1546  ;;  %5031 = vrcp.f32 %v1334_v14 }
 0x681   :  { %v1353_v17 = vpop.permute.xlu0 %1352 }
 0x682   :  { %v1366_v27 = vsel %vm905_vm3, %v1353_v17, 0 }
 0x683   :  { %4599 = vmatpush3.bf16.msra.mxu1 %v1366_v27 }
 0x684   :  { %v5026_v22 = vpop.eup %5025  ;;  %4630 = vmatprep.subr.bf16.mxu1 %v5321_v51 }
 0x685   :  { %v1341_v25 = vmul.f32 %v5026_v22, %v5973_v23  ;;  %v5028_v45 = vpop.eup %5027 }
 0x686   :  { %v5030_v26 = vpop.eup %5029  ;;  %v1343_v13 = vmul.f32 %v5028_v45, %v5937_v41 }
 0x687   :  { %v1345_v31 = vpack.c.bf16 %v1341_v25, %v1340_v18  ;;  %v1342_v28 = vmul.f32 %v5030_v26, %v5933_v36  ;;  %v5032_v6 = vpop.eup %5031 }
 0x688   :  { %v1344_v42 = vmul.f32 %v5032_v6, %v5943_v1  ;;  %v1730_v6 = vld [vmem:[%s7027_s8 + $0x20] sm:$0xff] }
 0x689   :  { %4601 = vmatmul.mubr.msk.bf16.vlgmr.msra.gmra.mrb[60].mxu1 %vm833_vm4, %v1345_v31  ;;  %v1346_v61 = vpack.c.bf16 %v1343_v13, %v1342_v28  ;;  %v1728_v28 = vld [vmem:[%s7027_s8 + $0x10] sm:$0xff] }
 0x68a   :  { %4631 = vmatpush3.bf16.msra.mxu1 %v1574_v33  ;;  %4604 = vmatprep.mubr.msk.bf16.mxu1 %vm5322_vm0, %v5321_v51  ;;  %v1347_v41 = vpack.c.bf16 %v1344_v42, %v1344_v42 }
 0x68b   :  { %v1550_v53 = vpop.xlane.xlu1 %1549  ;;  %4632 = vmatprep.subr.bf16.mxu1 %v5321_v51 }
 0x68c   :  { %5033 = vrcp.f32 %v1550_v53 }
 0x68d   :  { %5035 = vrcp.f32 %v1547_v55 }
 0x68f   :  { %v1553_v23 = vpop.xlane.xlu1 %1552 }
 0x691   :  { %4605 = vmatmul.mubr.msk.bf16.gmra.mrb[64].mxu1 %vm833_vm4, %v1346_v61 }
 0x692   :  { %4608 = vmatprep.mubr.msk.bf16.mxu1 %vm5322_vm0, %v5321_v51 }
 0x693   :  { %v1556_v38 = vpop.xlane.xlu1 %1555 }
 0x694   :  { %5037 = vrcp.f32 %v1556_v38  ;;  %v1731_v38 = vld [vmem:[%s7027_s8 + $0x28] sm:$0xff] }
 0x695   :  { %5039 = vrcp.f32 %v1553_v23  ;;  %v1729_v23 = vld [vmem:[%s7027_s8 + $0x18] sm:$0xff]  ;;  %v1747_v42 = vpack.c.bf16 %v1731_v38, %v1730_v6 }
 0x696   :  { %v5034_v52 = vpop.eup %5033  ;;  %v1746_v61 = vpack.c.bf16 %v1729_v23, %v1728_v28 }
 0x697   :  { %v1576_v48 = vpop.permute.xlu1 %1575  ;;  %v5036_v36 = vpop.eup %5035  ;;  %v1566_v2 = vmul.f32 %v5034_v52, %v5984_v32 }
 0x698   :  { %4633 = vmatpush3.bf16.msra.mxu1 %v1576_v48  ;;  %v1565_v63 = vmul.f32 %v5036_v36, %v5978_v58  ;;  %v1732_v48 = vld [vmem:[%s7027_s8 + $0x30] sm:$0xff] }
 0x699   :  { %4609 = vmatmul.mubr.msk.bf16.gmra.mrb[68].mxu1 %vm833_vm4, %v1347_v41  ;;  %4634 = vmatprep.subr.bf16.mxu1 %v5321_v51  ;;  %v6040_v54 = vpop.f32.mrb[36].mxu1  ;;  %v1733_v41 = vld [vmem:[%s7027_s8 + $0x38] sm:$0xff] }
 0x69a   :  { %4636 = vmatprep.mubr.msk.bf16.mxu1 %vm5322_vm0, %v5321_v51  ;;  %v4530_v56 = vpop.f32.mrb[37].mxu1  ;;  %v1570_v57 = vpack.c.bf16 %v1566_v2, %v1565_v63  ;;  %v1748_v36 = vpack.c.bf16 %v1733_v41, %v1732_v48 }
 0x69b   :  { %v1578_v1 = vpop.permute.xlu1 %1577  ;;  %v6045_v60 = vpop.f32.mrb[38].mxu1  ;;  %v1734_v56 = vld [vmem:[%s7027_s8 + $0x40] sm:$0xff] }
 0x69c   :  { %v1591_v11 = vsel %vm905_vm3, %v1578_v1, 0  ;;  %v4531_v50 = vpop.f32.mrb[39].mxu1  ;;  %v1735_v1 = vld [vmem:[%s7027_s8 + $0x48] sm:$0xff] }
 0x69d   :  { %4635 = vmatpush3.bf16.msra.mxu1 %v1591_v11 }
 0x69e   :  { %v5038_v29 = vpop.eup %5037 }
 0x69f   :  { %v5040_v8 = vpop.eup %5039  ;;  %v1568_v10 = vmul.f32 %v5038_v29, %v5992_v37  ;;  %v1736_v29 = vld [vmem:[%s7027_s8 + $0x50] sm:$0xff] }
 0x6a0   :  { %v1567_v58 = vmul.f32 %v5040_v8, %v5988_v35  ;;  %v1737_v8 = vld [vmem:[%s7027_s8 + $0x58] sm:$0xff] }
 0x6a1   :  { %4637 = vmatmul.mubr.msk.bf16.vlgmr.msra.gmra.mrb[72].mxu1 %vm833_vm4, %v1570_v57  ;;  %v6050_v5 = vpop.f32.mrb[40].mxu1  ;;  %v1749_v57 = vpack.c.bf16 %v1735_v1, %v1734_v56 }
 0x6a2   :  { %4640 = vmatprep.mubr.msk.bf16.mxu1 %vm5322_vm0, %v5321_v51  ;;  %v4534_v32 = vpop.f32.mrb[41].mxu1  ;;  %v1571_v46 = vpack.c.bf16 %v1568_v10, %v1567_v58  ;;  %v1750_v10 = vpack.c.bf16 %v1737_v8, %v1736_v29  ;;  %v1738_v58 = vld [vmem:[%s7027_s8 + $0x60] sm:$0xff] }
 0x6a3   :  { %v6055_v39 = vpop.f32.mrb[42].mxu1 }
 0x6a4   :  { %v4535_v44 = vpop.f32.mrb[43].mxu1 }
 0x6a9   :  { %4641 = vmatmul.mubr.msk.bf16.gmra.mrb[76].mxu1 %vm833_vm4, %v1571_v46  ;;  %v6059_v43 = vpop.f32.mrb[44].mxu1  ;;  %v1739_v46 = vld [vmem:[%s7027_s8 + $0x68] sm:$0xff] }
 0x6aa   :  { %4644 = vmatprep.mubr.msk.bf16.mxu1 %vm5322_vm0, %v5321_v51  ;;  %v4538_v0 = vpop.f32.mrb[45].mxu1 }
 0x6ab   :  { %v962_v62 = vpop.f32.mrb[46].mxu1 }
 0x6ac   :  { %v4539_v47 = vpop.f32.mrb[47].mxu1 }
 0x6b2   :  { %v1559_v59 = vpop.xlane.xlu0 %1558 }
 0x6b3   :  { %5041 = vrcp.f32 %v1559_v59  ;;  %v1751_v59 = vpack.c.bf16 %v1739_v46, %v1738_v58 }
 0x6bd   :  { %v5042_v49 = vpop.eup %5041 }
 0x6be   :  { %v1569_v37 = vmul.f32 %v5042_v49, %v6009_v9  ;;  %v1727_v9 = vld [vmem:[%s7027_s8 + $0x8] sm:$0xff] }
 0x6bf   :  { %v1745_v27 = vpack.c.bf16 %v1727_v9, %v1726_v12 }
 0x6c0   :  { %v1572_v16 = vpack.c.bf16 %v1569_v37, %v1569_v37 }
 0x6c1   :  { %4649 = vmatpush3.bf16.msra.mxu0 %v1745_v27 }
 0x6c2   :  { %4645 = vmatmul.mubr.msk.bf16.gmra.mrb[80].mxu1 %vm833_vm4, %v1572_v16  ;;  %4650 = vmatprep.subr.bf16.mxu0 %v5321_v51  ;;  %v1740_v16 = vld [vmem:[%s7027_s8 + $0x70] sm:$0xff] }
 0x6c3   :  { %2002 = vmatprep.mubr.bf16.mxu1 %v5323_v21 }
 0x6c5   :  { %4651 = vmatpush3.bf16.msra.mxu0 %v1746_v61 }
 0x6c6   :  { %4652 = vmatprep.subr.bf16.mxu0 %v5321_v51 }
 0x6c9   :  { %4653 = vmatpush3.bf16.msra.mxu0 %v1747_v42 }
 0x6ca   :  { %4654 = vmatprep.subr.bf16.mxu0 %v5321_v51 }
 0x6cd   :  { %4655 = vmatpush3.bf16.msra.mxu0 %v1748_v36 }
 0x6ce   :  { %4656 = vmatprep.subr.bf16.mxu0 %v5321_v51 }
 0x6d1   :  { %4657 = vmatpush3.bf16.msra.mxu0 %v1749_v57 }
 0x6d2   :  { %4658 = vmatprep.subr.bf16.mxu0 %v5321_v51 }
 0x6d5   :  { %4659 = vmatpush3.bf16.msra.mxu0 %v1750_v10 }
 0x6d6   :  { %4660 = vmatprep.subr.bf16.mxu0 %v5321_v51 }
 0x6d9   :  { %4661 = vmatpush3.bf16.msra.mxu0 %v1751_v59 }
 0x6da   :  { %4662 = vmatprep.subr.bf16.mxu0 %v5321_v51 }
 0x6f2   :  { %v1177_v35 = vpop.f32.mrb[48].mxu1 }
 0x6f3   :  { %v4566_v19 = vpop.f32.mrb[49].mxu1 }
 0x6f4   :  { %v1180_v55 = vpop.f32.mrb[50].mxu1 }
 0x6f5   :  { %v4893_v14 = vpack.i.bf16 %v1180_v55, %v1177_v35  ;;  %v4567_v17 = vpop.f32.mrb[51].mxu1  ;;  %v1741_v35 = vld [vmem:[%s7027_s8 + $0x78] sm:$0xff] }
 0x6f6   :  { %v1752_v55 = vpack.c.bf16 %v1741_v35, %v1740_v16 }
 0x6f7   :  { %4894 = vrot.lane.b32.xlu1 %v4893_v14, %s5326_s27 }
 0x6f8   :  { %4663 = vmatpush3.bf16.msra.mxu0 %v1752_v55 }
 0x727   :  { %v1185_v22 = vpop.f32.mrb[52].mxu1 }
 0x728   :  { %v4570_v18 = vpop.f32.mrb[53].mxu1 }
 0x729   :  { %v1188_v25 = vpop.f32.mrb[54].mxu1 }
 0x72a   :  { %v4898_v33 = vpack.i.bf16 %v1188_v25, %v1185_v22  ;;  %v4571_v31 = vpop.f32.mrb[55].mxu1 }
 0x72c   :  { %4899 = vrot.lane.b32.xlu0 %v4898_v33, %s5326_s27 }
 0x72f   :  { %v6075_v45 = vpop.f32.mrb[56].mxu1 }
 0x730   :  { %v4574_v26 = vpop.f32.mrb[57].mxu1 }
 0x731   :  { %v1196_v53 = vpop.f32.mrb[58].mxu1 }
 0x732   :  { %v4575_v13 = vpop.f32.mrb[59].mxu1 }
 0x75c   :  { %v1402_v52 = vpop.f32.mrb[60].mxu1 }
 0x75d   :  { %v4602_v2 = vpop.f32.mrb[61].mxu1 }
 0x75e   :  { %v1405_v11 = vpop.f32.mrb[62].mxu1 }
 0x75f   :  { %v4903_v63 = vpack.i.bf16 %v1405_v11, %v1402_v52  ;;  %v4603_v50 = vpop.f32.mrb[63].mxu1 }
 0x761   :  { %4904 = vrot.lane.b32.xlu1 %v4903_v63, %s5325_s26 }
 0x764   :  { %v1410_v32 = vpop.f32.mrb[64].mxu1 }
 0x765   :  { %v4606_v44 = vpop.f32.mrb[65].mxu1 }
 0x766   :  { %v1413_v0 = vpop.f32.mrb[66].mxu1 }
 0x767   :  { %v4913_v62 = vpack.i.bf16 %v1413_v0, %v1410_v32  ;;  %v4607_v47 = vpop.f32.mrb[67].mxu1 }
 0x769   :  { %v4895_v61 = vpop.permute.xlu1 %4894 }
 0x76a   :  { %v4897_v38 = vunpack.i.h.bf16 %v4895_v61  ;;  %v4896_v42 = vunpack.i.l.bf16 %v4895_v61 }
 0x76c   :  { %v1418_v49 = vpop.f32.mrb[68].mxu1  ;;  %v1709_v36 = vsel %vm753_vm2, %v6040_v54, %v4896_v42 }
 0x76d   :  { %v4610_v37 = vpop.f32.mrb[69].mxu1 }
 0x76e   :  { %v1421_v19 = vpop.f32.mrb[70].mxu1 }
 0x76f   :  { %v4611_v14 = vpop.f32.mrb[71].mxu1 }
 0x774   :  { %v1627_v17 = vpop.f32.mrb[72].mxu1 }
 0x775   :  { %v4638_v12 = vpop.f32.mrb[73].mxu1 }
 0x776   :  { %v1630_v9 = vpop.f32.mrb[74].mxu1 }
 0x777   :  { %v4908_v27 = vpack.i.bf16 %v1630_v9, %v1627_v17  ;;  %v4639_v22 = vpop.f32.mrb[75].mxu1  ;;  %v4103_v9 = vld [vmem:[%s7028_s9] ss:$0 sm:$0xff] }
 0x779   :  { %4909 = vrot.lane.b32.xlu1 %v4908_v27, %s5324_s25 }
 0x77c   :  { %v1635_v18 = vpop.f32.mrb[76].mxu1 }
 0x77d   :  { %4914 = vrot.lane.b32.xlu1 %v4913_v62, %s5325_s26  ;;  %v4642_v25 = vpop.f32.mrb[77].mxu1 }
 0x77e   :  { %v1638_v33 = vpop.f32.mrb[78].mxu1 }
 0x77f   :  { %v4918_v31 = vpack.i.bf16 %v1638_v33, %v1635_v18  ;;  %v4643_v26 = vpop.f32.mrb[79].mxu1 }
 0x781   :  { %4919 = vrot.lane.b32.xlu1 %v4918_v31, %s5324_s25 }
 0x785   :  { %1662 = vrot.lane.b32.xlu1 %v6075_v45, %s5326_s27  ;;  %v1710_v45 = vsel %vm753_vm2, %v6045_v60, %v4897_v38 }
 0x789   :  { %1682 = vrot.lane.b32.xlu1 %v1418_v49, %s5325_s26 }
 0x795   :  { %v1643_v53 = vpop.f32.mrb[80].mxu1 }
 0x796   :  { %1702 = vrot.lane.b32.xlu1 %v1643_v53, %s5324_s25  ;;  %v4646_v13 = vpop.f32.mrb[81].mxu1 }
 0x797   :  { %v1646_v28 = vpop.f32.mrb[82].mxu1 }
 0x798   :  { %v4647_v23 = vpop.f32.mrb[83].mxu1 }
 0x79e   :  { %v4900_v1 = vpop.permute.xlu0 %4899 }
 0x79f   :  { %v4902_v32 = vunpack.i.h.bf16 %v4900_v1  ;;  %v4901_v10 = vunpack.i.l.bf16 %v4900_v1  ;;  %v1912_v1 = vld [vmem:[#allocation7 + $0x28] sm:$0xff] }
 0x7a1   :  { %v1712_v58 = vsel %vm753_vm2, %v6055_v39, %v4902_v32  ;;  %v1711_v46 = vsel %vm753_vm2, %v6050_v5, %v4901_v10 }
 0x7d3   :  { %v4905_v6 = vpop.permute.xlu1 %4904 }
 0x7d4   :  { %v4907_v48 = vunpack.i.h.bf16 %v4905_v6  ;;  %v4906_v41 = vunpack.i.l.bf16 %v4905_v6 }
 0x7d6   :  { %v1716_v11 = vsel %vm1714_vm6, %v1710_v45, %v4907_v48  ;;  %v1715_v63 = vsel %vm1714_vm6, %v1709_v36, %v4906_v41  ;;  %v1910_v45 = vld [vmem:[#allocation7 + $0x18] sm:$0xff]  ;;  %v1907_v36 = vld [vmem:[#allocation7] sm:$0xff] }
 0x7eb   :  { %v4910_v52 = vpop.permute.xlu1 %4909 }
 0x7ec   :  { %v4912_v2 = vunpack.i.h.bf16 %v4910_v52  ;;  %v4911_v56 = vunpack.i.l.bf16 %v4910_v52 }
 0x7ee   :  { %v1722_v50 = vsel %vm1720_vm7, %v1716_v11, %v4912_v2  ;;  %v1721_v57 = vsel %vm1720_vm7, %v1715_v63, %v4911_v56  ;;  %v1909_v56 = vld [vmem:[#allocation7 + $0x10] sm:$0xff]  ;;  %v1914_v11 = vld [vmem:[#allocation7 + $0x38] sm:$0xff] }
 0x7ef   :  { %v1742_v29 = vpack.c.bf16 %v1722_v50, %v1721_v57  ;;  %v4915_v8 = vpop.permute.xlu1 %4914  ;;  %v1942_v63 = vpack.c.bf16 %v1909_v56, %v1907_v36  ;;  %v1945_v50 = vpack.c.bf16 %v1914_v11, %v1912_v1  ;;  %v1911_v57 = vld [vmem:[#allocation7 + $0x20] sm:$0xff]  ;;  %v1932_v56 = vld [vmem:[#allocation7 + $0xc8] sm:$0xff]  ;;  %v1934_v1 = vld [vmem:[#allocation7 + $0xd8] sm:$0xff] }
 0x7f0   :  { %v4917_v44 = vunpack.i.h.bf16 %v4915_v8  ;;  %v4916_v60 = vunpack.i.l.bf16 %v4915_v8  ;;  %v1955_v11 = vpack.c.bf16 %v1934_v1, %v1932_v56  ;;  %v2137_v56 = vld [vmem:[#allocation8 + $0x80] sm:$0xff]  ;;  %v2138_v1 = vld [vmem:[#allocation8 + $0x88] sm:$0xff] }
 0x7f1   :  { %4665 = vmatmul.mubr.bf16.vlgmr.msra.gmra.mrb[72].mxu0 %v1742_v29 }
 0x7f2   :  { %4668 = vmatprep.mubr.msk.bf16.mxu0 %vm5322_vm0, %v5321_v51  ;;  %v1717_v47 = vsel %vm1714_vm6, %v1711_v46, %v4916_v60  ;;  %v1718_v59 = vsel %vm1714_vm6, %v1712_v58, %v4917_v44 }
 0x7f3   :  { %v4920_v54 = vpop.permute.xlu1 %4919 }
 0x7f4   :  { %v4922_v0 = vunpack.i.h.bf16 %v4920_v54  ;;  %v4921_v62 = vunpack.i.l.bf16 %v4920_v54 }
 0x7f6   :  { %v1723_v49 = vsel %vm1720_vm7, %v1717_v47, %v4921_v62  ;;  %v1724_v37 = vsel %vm1720_vm7, %v1718_v59, %v4922_v0 }
 0x7f7   :  { %v1743_v16 = vpack.c.bf16 %v1724_v37, %v1723_v49  ;;  %v1663_v35 = vpop.permute.xlu1 %1662 }
 0x7f8   :  { %v1713_v5 = vsel %vm753_vm2, %v6059_v43, %v1663_v35 }
 0x7f9   :  { %4669 = vmatmul.mubr.bf16.gmra.mrb[76].mxu0 %v1743_v16 }
 0x7fa   :  { %4672 = vmatprep.mubr.msk.bf16.mxu0 %vm5322_vm0, %v5321_v51 }
 0x7fb   :  { %v1683_v39 = vpop.permute.xlu1 %1682 }
 0x7fc   :  { %v1719_v19 = vsel %vm1714_vm6, %v1713_v5, %v1683_v39  ;;  %v1916_v39 = vld [vmem:[#allocation7 + $0x48] sm:$0xff]  ;;  %v1918_v5 = vld [vmem:[#allocation7 + $0x58] sm:$0xff] }
 0x808   :  { %v1703_v55 = vpop.permute.xlu1 %1702 }
 0x809   :  { %v1725_v14 = vsel %vm1720_vm7, %v1719_v19, %v1703_v55  ;;  %v1947_v19 = vpack.c.bf16 %v1918_v5, %v1916_v39  ;;  %v1915_v55 = vld [vmem:[#allocation7 + $0x40] sm:$0xff] }
 0x80a   :  { %v1744_v17 = vpack.c.bf16 %v1725_v14, %v1725_v14  ;;  %v1917_v14 = vld [vmem:[#allocation7 + $0x50] sm:$0xff] }
 0x80c   :  { %4673 = vmatmul.mubr.bf16.gmra.mrb[80].mxu0 %v1744_v17  ;;  %v1946_v17 = vpack.c.bf16 %v1917_v14, %v1915_v55 }
 0x8c4   :  { %v1787_v12 = vpop.f32.mrb[72].mxu0 }
 0x8c5   :  { %v1809_v27 = vadd.f32 %v1787_v12, %v5565_v20  ;;  %v4666_v22 = vpop.f32.mrb[73].mxu0  ;;  %v1920_v12 = vld [vmem:[#allocation7 + $0x68] sm:$0xff] }
 0x8c6   :  { %v1790_v18 = vpop.f32.mrb[74].mxu0  ;;  %v1919_v22 = vld [vmem:[#allocation7 + $0x60] sm:$0xff] }
 0x8c7   :  { %v6161_v25 = vadd.f32 %v4103_v9, %v1809_v27  ;;  %v1810_v43 = vadd.f32 %v1790_v18, %v5571_v24  ;;  %v4667_v33 = vpop.f32.mrb[75].mxu0  ;;  %v1921_v18 = vld [vmem:[#allocation7 + $0x70] sm:$0xff] }
 0x8c9   :  { %v6164_v31 = vadd.f32 %v4103_v9, %v1810_v43  ;;  %1828 = vadd.xlane.f32.xlu1 %v6161_v25  ;;  %v1948_v43 = vpack.c.bf16 %v1921_v18, %v1919_v22  ;;  %v4105_v18 = vld [vmem:[%s7030_s11] ss:$0 sm:$0xff] }
 0x8cb   :  { %1830 = vadd.xlane.f32.xlu0 %v6164_v31 }
 0x8cc   :  { %v1795_v26 = vpop.f32.mrb[76].mxu0 }
 0x8cd   :  { %v1811_v53 = vadd.f32 %v1795_v26, %v5577_v30  ;;  %v4670_v13 = vpop.f32.mrb[77].mxu0 }
 0x8ce   :  { %v1798_v28 = vpop.f32.mrb[78].mxu0  ;;  %v1926_v13 = vld [vmem:[#allocation7 + $0x98] sm:$0xff] }
 0x8cf   :  { %v6169_v23 = vadd.f32 %v4103_v9, %v1811_v53  ;;  %v1812_v20 = vadd.f32 %v1798_v28, %v5583_v34  ;;  %v4671_v61 = vpop.f32.mrb[79].mxu0  ;;  %v1908_v34 = vld [vmem:[#allocation7 + $0x8] sm:$0xff] }
 0x8d0   :  { %v1943_v2 = vpack.c.bf16 %v1910_v45, %v1908_v34  ;;  %v1924_v53 = vld [vmem:[#allocation7 + $0x88] sm:$0xff]  ;;  %v1925_v61 = vld [vmem:[#allocation7 + $0x90] sm:$0xff]  ;;  %v1927_v34 = vld [vmem:[#allocation7 + $0xa0] sm:$0xff] }
 0x8d1   :  { %v6172_v6 = vadd.f32 %v4103_v9, %v1812_v20  ;;  %1832 = vadd.xlane.f32.xlu0 %v6169_v23  ;;  %v1951_v28 = vpack.c.bf16 %v1926_v13, %v1924_v53  ;;  %v1923_v20 = vld [vmem:[#allocation7 + $0x80] sm:$0xff]  ;;  %v1929_v45 = vld [vmem:[#allocation7 + $0xb0] sm:$0xff] }
 0x8d2   :  { %1970 = vmatprep.subr.bf16.mxu1 %v1943_v2  ;;  %v1952_v2 = vpack.c.bf16 %v1929_v45, %v1927_v34 }
 0x8d3   :  { %1834 = vadd.xlane.f32.xlu1 %v6172_v6  ;;  %1971 = vmatpush1.bf16.msra.mxu1 %v1942_v63  ;;  %v1931_v63 = vld [vmem:[#allocation7 + $0xc0] sm:$0xff] }
 0x8d4   :  { %1972 = vmatprep.subr.bf16.mxu1 %v1945_v50  ;;  %v1933_v50 = vld [vmem:[#allocation7 + $0xd0] sm:$0xff] }
 0x8df   :  { %v1803_v24 = vpop.f32.mrb[80].mxu0 }
 0x8e0   :  { %v1813_v38 = vadd.f32 %v1803_v24, %v5589_v40  ;;  %v4674_v42 = vpop.f32.mrb[81].mxu0  ;;  %v1913_v40 = vld [vmem:[#allocation7 + $0x30] sm:$0xff] }
 0x8e1   :  { %v1806_v48 = vpop.f32.mrb[82].mxu0  ;;  %v1944_v29 = vpack.c.bf16 %v1913_v40, %v1911_v57  ;;  %v1954_v57 = vpack.c.bf16 %v1933_v50, %v1931_v63  ;;  %v1936_v40 = vld [vmem:[#allocation7 + $0xe8] sm:$0xff]  ;;  %v2121_v63 = vld [vmem:[#allocation8] sm:$0xff] }
 0x8e2   :  { %v6177_v41 = vadd.f32 %v4103_v9, %v1813_v38  ;;  %v4675_v30 = vpop.f32.mrb[83].mxu0  ;;  %v1922_v9 = vld [vmem:[#allocation7 + $0x78] sm:$0xff]  ;;  %v1950_v38 = vpack.c.bf16 %v1925_v61, %v1923_v20  ;;  %v1928_v48 = vld [vmem:[#allocation7 + $0xa8] sm:$0xff] }
 0x8e3   :  { %1973 = vmatpush1.bf16.msra.mxu1 %v1944_v29  ;;  %v1949_v27 = vpack.c.bf16 %v1922_v9, %v1920_v12  ;;  %v1930_v30 = vld [vmem:[#allocation7 + $0xb8] sm:$0xff]  ;;  %v2122_v50 = vld [vmem:[#allocation8 + $0x8] sm:$0xff] }
 0x8e4   :  { %v1836_v52 = vsel %vm465_vm1, %v6177_v41, 0.0  ;;  %1974 = vmatprep.subr.bf16.mxu1 %v1947_v19  ;;  %v1938_v29 = vld [vmem:[#allocation7 + $0xf8] sm:$0xff] }
 0x8e5   :  { %1837 = vadd.xlane.f32.xlu0 %v1836_v52  ;;  %v1953_v52 = vpack.c.bf16 %v1930_v30, %v1928_v48 }
 0x8e7   :  { %1975 = vmatpush1.bf16.msra.mxu1 %v1946_v17  ;;  %v4104_v17 = vld [vmem:[%s7029_s10] ss:$0 sm:$0xff] }
 0x8e8   :  { %1976 = vmatprep.subr.bf16.mxu1 %v1949_v27 }
 0x8eb   :  { %1977 = vmatpush1.bf16.msra.mxu1 %v1948_v43 }
 0x8ec   :  { %1978 = vmatprep.subr.bf16.mxu1 %v1951_v28 }
 0x8ef   :  { %1979 = vmatpush1.bf16.msra.mxu1 %v1950_v38 }
 0x8f0   :  { %1980 = vmatprep.subr.bf16.mxu1 %v1953_v52 }
 0x8f3   :  { %1981 = vmatpush1.bf16.msra.mxu1 %v1952_v2 }
 0x8f4   :  { %1982 = vmatprep.subr.bf16.mxu1 %v1955_v11  ;;  %v2167_v11 = vpack.c.bf16 %v2138_v1, %v2137_v56 }
 0x8f6   :  { %4310 = vmatprep.subr.bf16.mxu0 %v2167_v11 }
 0x8f7   :  { %1983 = vmatpush1.bf16.msra.mxu1 %v1954_v57  ;;  %v2159_v57 = vpack.c.bf16 %v2122_v50, %v2121_v63 }
 0x8f9   :  { %4311 = vmatpush3.bf16.msra.mxu0 %v2159_v57 }
 0x956   :  { %v1829_v8 = vpop.xlane.xlu1 %1828 }
 0x957   :  { %v1839_v32 = vmul.f32 0.0078125, %v1829_v8  ;;  %v1935_v8 = vld [vmem:[#allocation7 + $0xe0] sm:$0xff] }
 0x958   :  { %v1831_v10 = vpop.xlane.xlu0 %1830 }
 0x959   :  { %v6182_v44 = vsub.f32 %v6161_v25, %v1839_v32  ;;  %v1840_v60 = vmul.f32 0.0078125, %v1831_v10  ;;  %v1957_v32 = vpack.c.bf16 %v1938_v29, %v1936_v40  ;;  %v1937_v10 = vld [vmem:[#allocation7 + $0xf0] sm:$0xff]  ;;  %v2140_v29 = vld [vmem:[#allocation8 + $0x98] sm:$0xff] }
 0x95a   :  { %v2139_v40 = vld [vmem:[#allocation8 + $0x90] sm:$0xff] }
 0x95b   :  { %v6185_v54 = vsub.f32 %v6164_v31, %v1840_v60  ;;  %v1849_v58 = vmul.f32 %v6182_v44, %v6182_v44  ;;  %v1956_v60 = vpack.c.bf16 %v1937_v10, %v1935_v8  ;;  %1984 = vmatprep.subr.bf16.mxu1 %v1957_v32  ;;  %v2168_v8 = vpack.c.bf16 %v2140_v29, %v2139_v40  ;;  %v2123_v32 = vld [vmem:[#allocation8 + $0x10] sm:$0xff]  ;;  %v2124_v10 = vld [vmem:[#allocation8 + $0x18] sm:$0xff] }
 0x95d   :  { %1854 = vadd.xlane.f32.xlu1 %v1849_v58  ;;  %v1850_v46 = vmul.f32 %v6185_v54, %v6185_v54  ;;  %1985 = vmatpush1.bf16.msra.mxu1 %v1956_v60  ;;  %v2141_v60 = vld [vmem:[#allocation8 + $0xa0] sm:$0xff] }
 0x95e   :  { %v1833_v0 = vpop.xlane.xlu0 %1832  ;;  %4312 = vmatprep.subr.bf16.mxu0 %v2168_v8 }
 0x95f   :  { %v1841_v62 = vmul.f32 0.0078125, %v1833_v0  ;;  %1856 = vadd.xlane.f32.xlu0 %v1850_v46 }
 0x960   :  { %v1835_v47 = vpop.xlane.xlu1 %1834 }
 0x961   :  { %v6192_v59 = vsub.f32 %v6169_v23, %v1841_v62  ;;  %v1842_v49 = vmul.f32 0.0078125, %v1835_v47 }
 0x963   :  { %v1851_v37 = vmul.f32 %v6192_v59, %v6192_v59  ;;  %v6197_v16 = vsub.f32 %v6172_v6, %v1842_v49 }
 0x965   :  { %1858 = vadd.xlane.f32.xlu1 %v1851_v37  ;;  %v1852_v35 = vmul.f32 %v6197_v16, %v6197_v16 }
 0x967   :  { %1860 = vadd.xlane.f32.xlu0 %v1852_v35 }
 0x972   :  { %v1838_v33 = vpop.xlane.xlu0 %1837 }
 0x973   :  { %v1843_v26 = vmul.f32 0.0078125, %v1838_v33 }
 0x975   :  { %v6202_v24 = vsub.f32 %v6177_v41, %v1843_v26 }
 0x977   :  { %v1853_v42 = vmul.f32 %v6202_v24, %v6202_v24 }
 0x979   :  { %v1862_v36 = vsel %vm465_vm1, %v1853_v42, 0.0 }
 0x97a   :  { %1863 = vadd.xlane.f32.xlu1 %v1862_v36 }
 0x9ea   :  { %v1855_v58 = vpop.xlane.xlu1 %1854 }
 0x9eb   :  { %v1865_v46 = vmul.f32 0.0078125, %v1855_v58  ;;  %v2142_v58 = vld [vmem:[#allocation8 + $0xa8] sm:$0xff] }
 0x9ec   :  { %v1857_v0 = vpop.xlane.xlu0 %1856 }
 0x9ed   :  { %v1870_v62 = vadd.f32 1e-05, %v1865_v46  ;;  %v1866_v47 = vmul.f32 0.0078125, %v1857_v0  ;;  %v2169_v46 = vpack.c.bf16 %v2142_v58, %v2141_v60  ;;  %v2125_v0 = vld [vmem:[#allocation8 + $0x20] sm:$0xff] }
 0x9ef   :  { %5043 = vrsqrt.f32 %v1870_v62  ;;  %v1871_v49 = vadd.f32 1e-05, %v1866_v47  ;;  %v2126_v62 = vld [vmem:[#allocation8 + $0x28] sm:$0xff] }
 0x9f0   :  { %v2161_v47 = vpack.c.bf16 %v2126_v62, %v2125_v0 }
 0x9f1   :  { %5045 = vrsqrt.f32 %v1871_v49  ;;  %v2143_v49 = vld [vmem:[#allocation8 + $0xb0] sm:$0xff] }
 0x9f2   :  { %v1859_v37 = vpop.xlane.xlu1 %1858 }
 0x9f3   :  { %v1867_v35 = vmul.f32 0.0078125, %v1859_v37  ;;  %v2144_v37 = vld [vmem:[#allocation8 + $0xb8] sm:$0xff] }
 0x9f4   :  { %v1861_v39 = vpop.xlane.xlu0 %1860 }
 0x9f5   :  { %v1872_v5 = vadd.f32 1e-05, %v1867_v35  ;;  %v1868_v19 = vmul.f32 0.0078125, %v1861_v39  ;;  %v2170_v35 = vpack.c.bf16 %v2144_v37, %v2143_v49  ;;  %v2127_v39 = vld [vmem:[#allocation8 + $0x30] sm:$0xff] }
 0x9f7   :  { %5047 = vrsqrt.f32 %v1872_v5  ;;  %v1873_v55 = vadd.f32 1e-05, %v1868_v19  ;;  %v2128_v5 = vld [vmem:[#allocation8 + $0x38] sm:$0xff] }
 0x9f8   :  { %v2162_v19 = vpack.c.bf16 %v2128_v5, %v2127_v39 }
 0x9f9   :  { %v5044_v14 = vpop.eup %5043  ;;  %5049 = vrsqrt.f32 %v1873_v55  ;;  %v2145_v55 = vld [vmem:[#allocation8 + $0xc0] sm:$0xff] }
 0x9fa   :  { %v1880_v12 = vmul.f32 %v5044_v14, %v6182_v44  ;;  %v2146_v14 = vld [vmem:[#allocation8 + $0xc8] sm:$0xff] }
 0x9fb   :  { %v5046_v9 = vpop.eup %5045 }
 0x9fc   :  { %v1891_v27 = vmul.f32 %v4104_v17, %v1880_v12  ;;  %v1881_v22 = vmul.f32 %v5046_v9, %v6185_v54  ;;  %v2129_v12 = vld [vmem:[#allocation8 + $0x40] sm:$0xff]  ;;  %v2130_v9 = vld [vmem:[#allocation8 + $0x48] sm:$0xff] }
 0x9fe   :  { %v1892_v43 = vmul.f32 %v4104_v17, %v1881_v22  ;;  %v1902_v33 = vadd.f32 %v4105_v18, %v1891_v27  ;;  %v2163_v27 = vpack.c.bf16 %v2130_v9, %v2129_v12  ;;  %v2147_v22 = vld [vmem:[#allocation8 + $0xd0] sm:$0xff] }
 0xa00   :  { %v1903_v26 = vadd.f32 %v4105_v18, %v1892_v43 }
 0xa01   :  { %v5048_v53 = vpop.eup %5047 }
 0xa02   :  { %v1939_v13 = vpack.c.bf16 %v1903_v26, %v1902_v33  ;;  %v1882_v28 = vmul.f32 %v5048_v53, %v6192_v59  ;;  %v2131_v33 = vld [vmem:[#allocation8 + $0x50] sm:$0xff]  ;;  %v2132_v26 = vld [vmem:[#allocation8 + $0x58] sm:$0xff] }
 0xa03   :  { %v5050_v20 = vpop.eup %5049  ;;  %v2164_v53 = vpack.c.bf16 %v2132_v26, %v2131_v33 }
 0xa04   :  { %2003 = vmatmul.mubr.bf16.vlgmr.msra.gmra.mrb[84].mxu1 %v1939_v13  ;;  %v1883_v61 = vmul.f32 %v5050_v20, %v6197_v16  ;;  %v1893_v44 = vmul.f32 %v4104_v17, %v1882_v28  ;;  %v2149_v13 = vld [vmem:[#allocation8 + $0xe0] sm:$0xff]  ;;  %v2150_v28 = vld [vmem:[#allocation8 + $0xe8] sm:$0xff] }
 0xa05   :  { %2012 = vmatprep.mubr.bf16.mxu1 %v5323_v21  ;;  %v2173_v20 = vpack.c.bf16 %v2150_v28, %v2149_v13 }
 0xa06   :  { %v1894_v38 = vmul.f32 %v4104_v17, %v1883_v61  ;;  %v1904_v48 = vadd.f32 %v4105_v18, %v1893_v44  ;;  %v2133_v61 = vld [vmem:[#allocation8 + $0x60] sm:$0xff]  ;;  %v2134_v44 = vld [vmem:[#allocation8 + $0x68] sm:$0xff] }
 0xa07   :  { %v1864_v54 = vpop.xlane.xlu1 %1863 }
 0xa08   :  { %v1869_v42 = vmul.f32 0.0078125, %v1864_v54  ;;  %v1905_v30 = vadd.f32 %v4105_v18, %v1894_v38  ;;  %v2165_v38 = vpack.c.bf16 %v2134_v44, %v2133_v61  ;;  %v2151_v54 = vld [vmem:[#allocation8 + $0xf0] sm:$0xff] }
 0xa0a   :  { %v1874_v52 = vadd.f32 1e-05, %v1869_v42  ;;  %v1940_v34 = vpack.c.bf16 %v1905_v30, %v1904_v48  ;;  %v2152_v42 = vld [vmem:[#allocation8 + $0xf8] sm:$0xff]  ;;  %v2135_v30 = vld [vmem:[#allocation8 + $0x70] sm:$0xff] }
 0xa0b   :  { %v2174_v48 = vpack.c.bf16 %v2152_v42, %v2151_v54 }
 0xa0c   :  { %5051 = vrsqrt.f32 %v1874_v52  ;;  %2013 = vmatmul.mubr.bf16.gmra.mrb[88].mxu1 %v1940_v34  ;;  %v2136_v52 = vld [vmem:[#allocation8 + $0x78] sm:$0xff] }
 0xa0d   :  { %2022 = vmatprep.mubr.bf16.mxu1 %v5323_v21  ;;  %v2166_v34 = vpack.c.bf16 %v2136_v52, %v2135_v30 }
 0xa16   :  { %v5052_v45 = vpop.eup %5051 }
 0xa17   :  { %v1884_v59 = vmul.f32 %v5052_v45, %v6202_v24  ;;  %v2160_v24 = vpack.c.bf16 %v2124_v10, %v2123_v32  ;;  %v1958_v45 = vld [vmem:[%s7032_s13] sm:$0x3] }
 0xa19   :  { %v1895_v36 = vmul.f32 %v4104_v17, %v1884_v59  ;;  %4313 = vmatpush3.bf16.msra.mxu0 %v2160_v24  ;;  %v2171_v17 = vpack.c.bf16 %v2146_v14, %v2145_v55  ;;  %v6226_v59 = vrot.slane %v1958_v45, %v5653_v3 }
 0xa1a   :  { %4314 = vmatprep.subr.bf16.mxu0 %v2169_v46 }
 0xa1b   :  { %v1906_v2 = vadd.f32 %v4105_v18, %v1895_v36  ;;  %v2148_v18 = vld [vmem:[#allocation8 + $0xd8] sm:$0xff]  ;;  %v6229_v36 = vrot.slane %v1958_v45, %v5660_v7 }
 0xa1c   :  { %v2172_v43 = vpack.c.bf16 %v2148_v18, %v2147_v22 }
 0xa1d   :  { %v1941_v16 = vpack.c.bf16 %v1906_v2, %v1906_v2  ;;  %4315 = vmatpush3.bf16.msra.mxu0 %v2161_v47 }
 0xa1e   :  { %4316 = vmatprep.subr.bf16.mxu0 %v2170_v35 }
 0xa1f   :  { %2023 = vmatmul.mubr.bf16.gmra.mrb[92].mxu1 %v1941_v16 }
 0xa20   :  { %2457 = vmatprep.mubr.bf16.mxu1 %v5323_v21 }
 0xa21   :  { %4317 = vmatpush3.bf16.msra.mxu0 %v2162_v19 }
 0xa22   :  { %4318 = vmatprep.subr.bf16.mxu0 %v2171_v17 }
 0xa25   :  { %4319 = vmatpush3.bf16.msra.mxu0 %v2163_v27 }
 0xa26   :  { %4320 = vmatprep.subr.bf16.mxu0 %v2172_v43 }
 0xa29   :  { %4321 = vmatpush3.bf16.msra.mxu0 %v2164_v53 }
 0xa2a   :  { %4322 = vmatprep.subr.bf16.mxu0 %v2173_v20 }
 0xa2d   :  { %4323 = vmatpush3.bf16.msra.mxu0 %v2165_v38 }
 0xa2e   :  { %4324 = vmatprep.subr.bf16.mxu0 %v2174_v48 }
 0xa31   :  { %4325 = vmatpush3.bf16.msra.mxu0 %v2166_v34 }
 0xa32   :  { %4676 = vmatprep.subr.bf16.mxu0 %v5321_v51 }
 0xad7   :  { %v2004_v2 = vpop.f32.mrb[84].mxu1 }
 0xad8   :  { %v6232_v16 = vadd.f32 %v2004_v2, %v6226_v59  ;;  %v2006_v56 = vpop.f32.mrb[85].mxu1 }
 0xad9   :  { %v6235_v1 = vadd.f32 %v2006_v56, %v6229_v36  ;;  %v2008_v11 = vpop.f32.mrb[86].mxu1 }
 0xada   :  { %v2031_v63 = vmul.f32 %v6232_v16, %v6232_v16  ;;  %v6240_v50 = vadd.f32 %v2008_v11, %v6226_v59  ;;  %v2010_v57 = vpop.f32.mrb[87].mxu1 }
 0xadb   :  { %v2032_v40 = vmul.f32 %v6235_v1, %v6235_v1  ;;  %v6245_v29 = vadd.f32 %v2010_v57, %v6229_v36 }
 0xadc   :  { %v2041_v8 = vmul.f32 %v2031_v63, %v6232_v16  ;;  %v2033_v32 = vmul.f32 %v6240_v50, %v6240_v50 }
 0xadd   :  { %v2042_v10 = vmul.f32 %v2032_v40, %v6235_v1  ;;  %v2034_v24 = vmul.f32 %v6245_v29, %v6245_v29 }
 0xade   :  { %v2051_v60 = vmul.f32 0.044715, %v2041_v8  ;;  %v2043_v58 = vmul.f32 %v2033_v32, %v6240_v50 }
 0xadf   :  { %v2052_v46 = vmul.f32 0.044715, %v2042_v10  ;;  %v2044_v0 = vmul.f32 %v2034_v24, %v6245_v29  ;;  %v2014_v62 = vpop.f32.mrb[88].mxu1 }
 0xae0   :  { %v2061_v47 = vadd.f32 %v2051_v60, %v6232_v16  ;;  %v2053_v49 = vmul.f32 0.044715, %v2043_v58  ;;  %v6257_v37 = vadd.f32 %v2014_v62, %v6226_v59  ;;  %v2016_v35 = vpop.f32.mrb[89].mxu1 }
 0xae1   :  { %v2062_v39 = vadd.f32 %v2052_v46, %v6235_v1  ;;  %v2054_v5 = vmul.f32 0.044715, %v2044_v0  ;;  %v6261_v19 = vadd.f32 %v2016_v35, %v6229_v36  ;;  %v2018_v55 = vpop.f32.mrb[90].mxu1 }
 0xae2   :  { %v2071_v14 = vmul.f32 0.7978846, %v2061_v47  ;;  %v2063_v17 = vadd.f32 %v2053_v49, %v6240_v50  ;;  %v2035_v12 = vmul.f32 %v6257_v37, %v6257_v37  ;;  %v6267_v9 = vadd.f32 %v2018_v55, %v6226_v59  ;;  %v2020_v27 = vpop.f32.mrb[91].mxu1 }
 0xae3   :  { %v2072_v22 = vmul.f32 0.7978846, %v2062_v39  ;;  %v2064_v18 = vadd.f32 %v2054_v5, %v6245_v29  ;;  %v2036_v43 = vmul.f32 %v6261_v19, %v6261_v19  ;;  %v6273_v33 = vadd.f32 %v2020_v27, %v6229_v36 }
 0xae4   :  { %5053 = vtanh.f32 %v2071_v14  ;;  %v2073_v26 = vmul.f32 0.7978846, %v2063_v17  ;;  %v2045_v53 = vmul.f32 %v2035_v12, %v6257_v37  ;;  %v2037_v13 = vmul.f32 %v6267_v9, %v6267_v9 }
 0xae5   :  { %5055 = vtanh.f32 %v2072_v22  ;;  %v2074_v28 = vmul.f32 0.7978846, %v2064_v18  ;;  %v2046_v20 = vmul.f32 %v2036_v43, %v6261_v19  ;;  %v2038_v61 = vmul.f32 %v6273_v33, %v6273_v33 }
 0xae6   :  { %5057 = vtanh.f32 %v2073_v26  ;;  %v2055_v44 = vmul.f32 0.044715, %v2045_v53  ;;  %v2047_v38 = vmul.f32 %v2037_v13, %v6267_v9 }
 0xae7   :  { %5059 = vtanh.f32 %v2074_v28  ;;  %v2056_v54 = vmul.f32 0.044715, %v2046_v20  ;;  %v2048_v42 = vmul.f32 %v2038_v61, %v6273_v33 }
 0xae8   :  { %v2065_v48 = vadd.f32 %v2055_v44, %v6257_v37  ;;  %v2057_v30 = vmul.f32 0.044715, %v2047_v38 }
 0xae9   :  { %v2066_v52 = vadd.f32 %v2056_v54, %v6261_v19  ;;  %v2058_v34 = vmul.f32 0.044715, %v2048_v42 }
 0xaea   :  { %v2075_v45 = vmul.f32 0.7978846, %v2065_v48  ;;  %v2067_v2 = vadd.f32 %v2057_v30, %v6267_v9 }
 0xaeb   :  { %v2076_v56 = vmul.f32 0.7978846, %v2066_v52  ;;  %v2068_v11 = vadd.f32 %v2058_v34, %v6273_v33 }
 0xaec   :  { %5061 = vtanh.f32 %v2075_v45  ;;  %v2077_v63 = vmul.f32 0.7978846, %v2067_v2 }
 0xaed   :  { %5063 = vtanh.f32 %v2076_v56  ;;  %v2078_v57 = vmul.f32 0.7978846, %v2068_v11 }
 0xaee   :  { %v5054_v40 = vpop.eup %5053  ;;  %5065 = vtanh.f32 %v2077_v63 }
 0xaef   :  { %v5056_v8 = vpop.eup %5055  ;;  %v2091_v32 = vadd.f32 1.0, %v5054_v40  ;;  %5067 = vtanh.f32 %v2078_v57 }
 0xaf0   :  { %v5058_v10 = vpop.eup %5057  ;;  %v2092_v24 = vadd.f32 1.0, %v5056_v8 }
 0xaf1   :  { %v5060_v60 = vpop.eup %5059  ;;  %v2101_v58 = vmul.f32 0.5, %v2091_v32  ;;  %v2093_v46 = vadd.f32 1.0, %v5058_v10 }
 0xaf2   :  { %v2024_v0 = vpop.f32.mrb[92].mxu1  ;;  %v2094_v62 = vadd.f32 1.0, %v5060_v60  ;;  %v2102_v47 = vmul.f32 0.5, %v2092_v24 }
 0xaf3   :  { %v2103_v49 = vmul.f32 0.5, %v2093_v46  ;;  %v2025_v35 = vadd.f32 %v2024_v0, %v6226_v59  ;;  %v2026_v39 = vpop.f32.mrb[93].mxu1  ;;  %v2111_v17 = vmul.f32 %v2101_v58, %v6232_v16 }
 0xaf4   :  { %v2027_v5 = vadd.f32 %v2026_v39, %v6229_v36  ;;  %v2028_v55 = vpop.f32.mrb[94].mxu1  ;;  %v2104_v14 = vmul.f32 0.5, %v2094_v62  ;;  %v2112_v26 = vmul.f32 %v2102_v47, %v6235_v1 }
 0xaf5   :  { %v2113_v12 = vmul.f32 %v2103_v49, %v6240_v50  ;;  %v2039_v27 = vmul.f32 %v2025_v35, %v2025_v35  ;;  %v2029_v22 = vpop.f32.mrb[95].mxu1 }
 0xaf6   :  { %v5062_v18 = vpop.eup %5061  ;;  %v2040_v43 = vmul.f32 %v2027_v5, %v2027_v5  ;;  %v2114_v53 = vmul.f32 %v2104_v14, %v6245_v29  ;;  %v4106_v14 = vld [vmem:[%s7034_s15] ss:$0 sm:$0xff] }
 0xaf7   :  { %v5064_v13 = vpop.eup %5063  ;;  %v2153_v28 = vpack.c.bf16 %v2113_v12, %v2111_v17  ;;  %v2049_v59 = vmul.f32 %v2039_v27, %v2025_v35  ;;  %v2095_v20 = vadd.f32 1.0, %v5062_v18 }
 0xaf8   :  { %v5066_v61 = vpop.eup %5065  ;;  %v2050_v36 = vmul.f32 %v2040_v43, %v2027_v5  ;;  %v2154_v44 = vpack.c.bf16 %v2114_v53, %v2112_v26  ;;  %v2096_v38 = vadd.f32 1.0, %v5064_v13 }
 0xaf9   :  { %v5068_v54 = vpop.eup %5067  ;;  %v2059_v16 = vmul.f32 0.044715, %v2049_v59  ;;  %v2097_v42 = vadd.f32 1.0, %v5066_v61  ;;  %v2105_v50 = vmul.f32 0.5, %v2095_v20 }
 0xafa   :  { %v2060_v48 = vmul.f32 0.044715, %v2050_v36  ;;  %2207 = vmatprep.mubr.bf16.mxu0 %v2154_v44  ;;  %v2098_v30 = vadd.f32 1.0, %v5068_v54  ;;  %v2106_v52 = vmul.f32 0.5, %v2096_v38 }
 0xafb   :  { %v2069_v34 = vadd.f32 %v2059_v16, %v2025_v35  ;;  %2208 = vmatmul.mubr.bf16.vlgmr.msra.gmra.mrb[84].mxu0 %v2153_v28  ;;  %v2107_v1 = vmul.f32 0.5, %v2097_v42  ;;  %v2115_v56 = vmul.f32 %v2105_v50, %v6257_v37  ;;  %v2336_v42 = vld [vmem:[#allocation5 + $0x1a0] sm:$0xff] }
 0xafc   :  { %v2070_v29 = vadd.f32 %v2060_v48, %v2027_v5  ;;  %v2108_v45 = vmul.f32 0.5, %v2098_v30  ;;  %v2116_v57 = vmul.f32 %v2106_v52, %v6261_v19  ;;  %v2332_v50 = vld [vmem:[#allocation5 + $0x180] sm:$0xff]  ;;  %v2335_v30 = vld [vmem:[#allocation5 + $0x198] sm:$0xff]  ;;  %v2334_v52 = vld [vmem:[#allocation5 + $0x190] sm:$0xff] }
 0xafd   :  { %v2079_v2 = vmul.f32 0.7978846, %v2069_v34  ;;  %v2117_v11 = vmul.f32 %v2107_v1, %v6267_v9  ;;  %v2337_v34 = vld [vmem:[#allocation5 + $0x1a8] sm:$0xff]  ;;  %v2383_v1 = vpack.c.bf16 %v2335_v30, %v2332_v50 }
 0xafe   :  { %v2080_v63 = vmul.f32 0.7978846, %v2070_v29  ;;  %v2118_v40 = vmul.f32 %v2108_v45, %v6273_v33  ;;  %v2385_v29 = vpack.c.bf16 %v2337_v34, %v2334_v52  ;;  %v2339_v45 = vld [vmem:[#allocation5 + $0x1b8] sm:$0xff]  ;;  %v2357_v50 = vld [vmem:[#allocation5 + $0x248] sm:$0xff]  ;;  %v2356_v52 = vld [vmem:[#allocation5 + $0x240] sm:$0xff] }
 0xaff   :  { %5069 = vtanh.f32 %v2079_v2  ;;  %v2155_v8 = vpack.c.bf16 %v2117_v11, %v2115_v56  ;;  %v2342_v2 = vld [vmem:[#allocation5 + $0x1d0] sm:$0xff]  ;;  %v2341_v11 = vld [vmem:[#allocation5 + $0x1c8] sm:$0xff]  ;;  %v2359_v34 = vld [vmem:[#allocation5 + $0x258] sm:$0xff] }
 0xb00   :  { %5071 = vtanh.f32 %v2080_v63  ;;  %v2156_v32 = vpack.c.bf16 %v2118_v40, %v2116_v57  ;;  %v2338_v56 = vld [vmem:[#allocation5 + $0x1b0] sm:$0xff]  ;;  %v2340_v63 = vld [vmem:[#allocation5 + $0x1c0] sm:$0xff]  ;;  %v2343_v57 = vld [vmem:[#allocation5 + $0x1d8] sm:$0xff]  ;;  %4677 = vmatpush3.bf16.msra.mxu0 %v2385_v29 }
 0xb01   :  { %v2386_v40 = vpack.c.bf16 %v2341_v11, %v2338_v56  ;;  %4678 = vmatprep.subr.bf16.mxu0 %v5321_v51  ;;  %v2363_v11 = vld [vmem:[#allocation5 + $0x278] sm:$0xff] }
 0xb02   :  { %2215 = vmatprep.mubr.bf16.mxu0 %v2156_v32 }
 0xb03   :  { %2216 = vmatmul.mubr.bf16.gmra.mrb[88].mxu0 %v2155_v8  ;;  %v2388_v8 = vpack.c.bf16 %v2343_v57, %v2340_v63  ;;  %v2366_v63 = vld [vmem:[#allocation5 + $0x290] sm:$0xff] }
 0xb04   :  { %v2399_v57 = vpack.c.bf16 %v2366_v63, %v2363_v11 }
 0xb05   :  { %4679 = vmatpush3.bf16.msra.mxu0 %v2388_v8  ;;  %v2365_v8 = vld [vmem:[#allocation5 + $0x288] sm:$0xff] }
 0xb06   :  { %4680 = vmatprep.subr.bf16.mxu0 %v5321_v51 }
 0xb09   :  { %v5070_v10 = vpop.eup %5069 }
 0xb0a   :  { %v5072_v24 = vpop.eup %5071  ;;  %v2099_v60 = vadd.f32 1.0, %v5070_v10 }
 0xb0b   :  { %v2100_v58 = vadd.f32 1.0, %v5072_v24 }
 0xb0c   :  { %v2109_v46 = vmul.f32 0.5, %v2099_v60 }
 0xb0d   :  { %v2110_v0 = vmul.f32 0.5, %v2100_v58 }
 0xb0e   :  { %v2119_v37 = vmul.f32 %v2109_v46, %v2025_v35 }
 0xb0f   :  { %v2120_v62 = vmul.f32 %v2110_v0, %v2027_v5 }
 0xb10   :  { %v2157_v47 = vpack.c.bf16 %v2119_v37, %v2119_v37 }
 0xb11   :  { %v2158_v9 = vpack.c.bf16 %v2120_v62, %v2120_v62 }
 0xb13   :  { %2223 = vmatprep.mubr.bf16.mxu0 %v2158_v9 }
 0xb14   :  { %2224 = vmatmul.mubr.bf16.gmra.mrb[92].mxu0 %v2157_v47 }
 0xb15   :  { %4692 = vmatprep.mubr.msk.bf16.mxu0 %vm5322_vm0, %v5321_v51 }
 0xbce   :  { %v4326_v19 = vpop.f32.mrb[84].mxu0 }
 0xbcf   :  { %v4327_v33 = vpop.f32.mrb[85].mxu0 }
 0xbd0   :  { %v4328_v49 = vadd.f32 %v4327_v33, %v4326_v19  ;;  %v4329_v39 = vpop.f32.mrb[86].mxu0 }
 0xbd1   :  { %v4330_v55 = vpop.f32.mrb[87].mxu0 }
 0xbd2   :  { %v2231_v17 = vadd.f32 %v4328_v49, %v6161_v25  ;;  %v4331_v35 = vadd.f32 %v4330_v55, %v4329_v39 }
 0xbd4   :  { %v2232_v5 = vadd.f32 %v4331_v35, %v6164_v31  ;;  %v6304_v12 = vadd.f32 %v4106_v14, %v2231_v17  ;;  %v2348_v17 = vld [vmem:[#allocation5 + $0x200] sm:$0xff] }
 0xbd6   :  { %v4332_v27 = vpop.f32.mrb[88].mxu0  ;;  %2252 = vadd.xlane.f32.xlu0 %v6304_v12  ;;  %v6307_v22 = vadd.f32 %v4106_v14, %v2232_v5  ;;  %v2344_v5 = vld [vmem:[#allocation5 + $0x1e0] sm:$0xff] }
 0xbd7   :  { %v4333_v18 = vpop.f32.mrb[89].mxu0 }
 0xbd8   :  { %v4334_v43 = vadd.f32 %v4333_v18, %v4332_v27  ;;  %v4335_v26 = vpop.f32.mrb[90].mxu0  ;;  %2254 = vadd.xlane.f32.xlu1 %v6307_v22  ;;  %v2347_v27 = vld [vmem:[#allocation5 + $0x1f8] sm:$0xff]  ;;  %v2346_v18 = vld [vmem:[#allocation5 + $0x1f0] sm:$0xff] }
 0xbd9   :  { %v4336_v53 = vpop.f32.mrb[91].mxu0 }
 0xbda   :  { %v2233_v13 = vadd.f32 %v4334_v43, %v6169_v23  ;;  %v4337_v28 = vadd.f32 %v4336_v53, %v4335_v26  ;;  %v2389_v43 = vpack.c.bf16 %v2347_v27, %v2344_v5  ;;  %v2349_v26 = vld [vmem:[#allocation5 + $0x208] sm:$0xff]  ;;  %v2374_v5 = vld [vmem:[#allocation5 + $0x2d0] sm:$0xff] }
 0xbdb   :  { %v2391_v53 = vpack.c.bf16 %v2349_v26, %v2346_v18  ;;  %v2377_v18 = vld [vmem:[#allocation5 + $0x2e8] sm:$0xff]  ;;  %v2379_v26 = vld [vmem:[#allocation5 + $0x2f8] sm:$0xff] }
 0xbdc   :  { %v2234_v25 = vadd.f32 %v4337_v28, %v6172_v6  ;;  %v6312_v59 = vadd.f32 %v4106_v14, %v2233_v13  ;;  %v2333_v6 = vld [vmem:[#allocation5 + $0x188] sm:$0xff]  ;;  %v2351_v13 = vld [vmem:[#allocation5 + $0x218] sm:$0xff]  ;;  %v2354_v28 = vld [vmem:[#allocation5 + $0x230] sm:$0xff] }
 0xbdd   :  { %v2384_v48 = vpack.c.bf16 %v2336_v42, %v2333_v6  ;;  %4681 = vmatpush3.bf16.msra.mxu0 %v2391_v53  ;;  %v2404_v53 = vpack.c.bf16 %v2377_v18, %v2374_v5 }
 0xbde   :  { %2256 = vadd.xlane.f32.xlu0 %v6312_v59  ;;  %v6315_v31 = vadd.f32 %v4106_v14, %v2234_v25  ;;  %4682 = vmatprep.subr.bf16.mxu0 %v5321_v51 }
 0xbdf   :  { %2425 = vmatprep.subr.bf16.mxu1 %v2384_v48  ;;  %v2360_v48 = vld [vmem:[#allocation5 + $0x260] sm:$0xff] }
 0xbe0   :  { %2258 = vadd.xlane.f32.xlu1 %v6315_v31  ;;  %2426 = vmatpush1.bf16.msra.mxu1 %v2383_v1  ;;  %v2396_v30 = vpack.c.bf16 %v2360_v48, %v2357_v50  ;;  %v2358_v1 = vld [vmem:[#allocation5 + $0x250] sm:$0xff] }
 0xbe7   :  { %v4338_v20 = vpop.f32.mrb[92].mxu0 }
 0xbe8   :  { %v4339_v61 = vpop.f32.mrb[93].mxu0 }
 0xbe9   :  { %v4340_v36 = vadd.f32 %v4339_v61, %v4338_v20  ;;  %v4341_v44 = vpop.f32.mrb[94].mxu0  ;;  %v2393_v20 = vpack.c.bf16 %v2354_v28, %v2351_v13  ;;  %v2350_v61 = vld [vmem:[#allocation5 + $0x210] sm:$0xff] }
 0xbea   :  { %v4342_v38 = vpop.f32.mrb[95].mxu0  ;;  %v2352_v44 = vld [vmem:[#allocation5 + $0x220] sm:$0xff] }
 0xbeb   :  { %v2235_v54 = vadd.f32 %v4340_v36, %v6177_v41  ;;  %v2387_v41 = vpack.c.bf16 %v2342_v2, %v2339_v45  ;;  %v2353_v36 = vld [vmem:[#allocation5 + $0x228] sm:$0xff]  ;;  %v2395_v45 = vpack.c.bf16 %v2359_v34, %v2356_v52  ;;  %v4109_v52 = vld [vmem:[%s7023_s4 + $0x1] ss:$0 sm:$0xff] }
 0xbec   :  { %v2361_v2 = vld [vmem:[#allocation5 + $0x268] sm:$0xff] }
 0xbed   :  { %v6319_v16 = vadd.f32 %v4106_v14, %v2235_v54  ;;  %2427 = vmatprep.subr.bf16.mxu1 %v2387_v41  ;;  %v2345_v14 = vld [vmem:[#allocation5 + $0x1e8] sm:$0xff]  ;;  %v2392_v54 = vpack.c.bf16 %v2353_v36, %v2350_v61  ;;  %v2397_v56 = vpack.c.bf16 %v2361_v2, %v2358_v1  ;;  %v4110_v2 = vld [vmem:[%s7024_s5 + $0x1] ss:$0 sm:$0xff] }
 0xbee   :  { %2428 = vmatpush1.bf16.msra.mxu1 %v2386_v40  ;;  %v2390_v35 = vpack.c.bf16 %v2348_v17, %v2345_v14  ;;  %v2362_v40 = vld [vmem:[#allocation5 + $0x270] sm:$0xff]  ;;  %v2375_v17 = vld [vmem:[#allocation5 + $0x2d8] sm:$0xff] }
 0xbef   :  { %v2260_v23 = vsel %vm465_vm1, %v6319_v16, 0.0 }
 0xbf0   :  { %2261 = vadd.xlane.f32.xlu0 %v2260_v23  ;;  %2429 = vmatprep.subr.bf16.mxu1 %v2390_v35  ;;  %v2355_v23 = vld [vmem:[#allocation5 + $0x238] sm:$0xff]  ;;  %v2378_v35 = vld [vmem:[#allocation5 + $0x2f0] sm:$0xff] }
 0xbf1   :  { %v2394_v6 = vpack.c.bf16 %v2355_v23, %v2352_v44  ;;  %v2405_v27 = vpack.c.bf16 %v2378_v35, %v2375_v17 }
 0xbf2   :  { %2430 = vmatpush1.bf16.msra.mxu1 %v2389_v43  ;;  %v2376_v43 = vld [vmem:[#allocation5 + $0x2e0] sm:$0xff] }
 0xbf3   :  { %2431 = vmatprep.subr.bf16.mxu1 %v2393_v20  ;;  %4683 = vmatpush3.bf16.msra.mxu0 %v2394_v6  ;;  %v2406_v13 = vpack.c.bf16 %v2379_v26, %v2376_v43 }
 0xbf4   :  { %4684 = vmatprep.subr.bf16.mxu0 %v5321_v51 }
 0xbf6   :  { %2432 = vmatpush1.bf16.msra.mxu1 %v2392_v54 }
 0xbf7   :  { %2433 = vmatprep.subr.bf16.mxu1 %v2396_v30  ;;  %4685 = vmatpush3.bf16.msra.mxu0 %v2397_v56 }
 0xbf8   :  { %4686 = vmatprep.subr.bf16.mxu0 %v5321_v51 }
 0xbfa   :  { %2434 = vmatpush1.bf16.msra.mxu1 %v2395_v45 }
 0xbfb   :  { %2435 = vmatprep.subr.bf16.mxu1 %v2399_v57 }
 0xc63   :  { %v2253_v32 = vpop.xlane.xlu0 %2252 }
 0xc64   :  { %v2263_v10 = vmul.f32 0.0078125, %v2253_v32  ;;  %v2364_v32 = vld [vmem:[#allocation5 + $0x280] sm:$0xff] }
 0xc65   :  { %v2255_v24 = vpop.xlane.xlu1 %2254 }
 0xc66   :  { %v6326_v60 = vsub.f32 %v6304_v12, %v2263_v10  ;;  %v2264_v58 = vmul.f32 0.0078125, %v2255_v24  ;;  %v2398_v10 = vpack.c.bf16 %v2365_v8, %v2362_v40  ;;  %v2367_v24 = vld [vmem:[#allocation5 + $0x298] sm:$0xff] }
 0xc68   :  { %v2273_v46 = vmul.f32 %v6326_v60, %v6326_v60  ;;  %v6331_v0 = vsub.f32 %v6307_v22, %v2264_v58  ;;  %v2400_v58 = vpack.c.bf16 %v2367_v24, %v2364_v32  ;;  %2436 = vmatpush1.bf16.msra.mxu1 %v2398_v10 }
 0xc6a   :  { %2278 = vadd.xlane.f32.xlu1 %v2273_v46  ;;  %v2274_v37 = vmul.f32 %v6331_v0, %v6331_v0  ;;  %v2369_v46 = vld [vmem:[#allocation5 + $0x2a8] sm:$0xff]  ;;  %4687 = vmatpush3.bf16.msra.mxu0 %v2400_v58 }
 0xc6b   :  { %v2257_v62 = vpop.xlane.xlu0 %2256  ;;  %4688 = vmatprep.subr.bf16.mxu0 %v5321_v51 }
 0xc6c   :  { %v2265_v9 = vmul.f32 0.0078125, %v2257_v62  ;;  %2280 = vadd.xlane.f32.xlu0 %v2274_v37  ;;  %v2372_v37 = vld [vmem:[#allocation5 + $0x2c0] sm:$0xff] }
 0xc6d   :  { %v2259_v47 = vpop.xlane.xlu1 %2258  ;;  %v2402_v62 = vpack.c.bf16 %v2372_v37, %v2369_v46 }
 0xc6e   :  { %v6336_v19 = vsub.f32 %v6312_v59, %v2265_v9  ;;  %v2266_v33 = vmul.f32 0.0078125, %v2259_v47  ;;  %v2368_v9 = vld [vmem:[#allocation5 + $0x2a0] sm:$0xff]  ;;  %v2371_v47 = vld [vmem:[#allocation5 + $0x2b8] sm:$0xff] }
 0xc6f   :  { %2437 = vmatprep.subr.bf16.mxu1 %v2402_v62 }
 0xc70   :  { %v2275_v49 = vmul.f32 %v6336_v19, %v6336_v19  ;;  %v6341_v39 = vsub.f32 %v6315_v31, %v2266_v33  ;;  %v2370_v33 = vld [vmem:[#allocation5 + $0x2b0] sm:$0xff] }
 0xc72   :  { %2282 = vadd.xlane.f32.xlu1 %v2275_v49  ;;  %v2276_v55 = vmul.f32 %v6341_v39, %v6341_v39  ;;  %v2401_v49 = vpack.c.bf16 %v2371_v47, %v2368_v9 }
 0xc74   :  { %2284 = vadd.xlane.f32.xlu0 %v2276_v55  ;;  %v2373_v55 = vld [vmem:[#allocation5 + $0x2c8] sm:$0xff]  ;;  %2438 = vmatpush1.bf16.msra.mxu1 %v2401_v49  ;;  %v4111_v49 = vld [vmem:[%s7026_s7 + $0x3] sm:$0x7] }
 0xc75   :  { %v2403_v14 = vpack.c.bf16 %v2373_v55, %v2370_v33  ;;  %2439 = vmatprep.subr.bf16.mxu1 %v2405_v27  ;;  %v2413_v55 = vrot.slane %v4111_v49, %v5653_v3  ;;  %v2417_v35 = vrot.slane %v4111_v49, %v5660_v7 }
 0xc77   :  { %4689 = vmatpush3.bf16.msra.mxu0 %v2403_v14 }
 0xc78   :  { %4690 = vmatprep.subr.bf16.mxu0 %v5321_v51  ;;  %2440 = vmatpush1.bf16.msra.mxu1 %v2404_v53 }
 0xc79   :  { %4704 = vmatprep.subr.bf16.mxu1 %v5321_v51 }
 0xc7b   :  { %4691 = vmatpush3.bf16.msra.mxu0 %v2406_v13 }
 0xc7c   :  { %4722 = vmatprep.subr.bf16.mxu0 %v5321_v51 }
 0xc7d   :  { %v2262_v25 = vpop.xlane.xlu0 %2261 }
 0xc7e   :  { %v2267_v38 = vmul.f32 0.0078125, %v2262_v25 }
 0xc80   :  { %v6347_v42 = vsub.f32 %v6319_v16, %v2267_v38 }
 0xc82   :  { %v2277_v29 = vmul.f32 %v6347_v42, %v6347_v42 }
 0xc84   :  { %v2286_v41 = vsel %vm465_vm1, %v2277_v29, 0.0 }
 0xc85   :  { %2287 = vadd.xlane.f32.xlu1 %v2286_v41 }
 0xcf7   :  { %v2279_v28 = vpop.xlane.xlu1 %2278 }
 0xcf8   :  { %v2289_v25 = vmul.f32 0.0078125, %v2279_v28 }
 0xcf9   :  { %v2281_v20 = vpop.xlane.xlu0 %2280 }
 0xcfa   :  { %v2294_v61 = vadd.f32 1e-05, %v2289_v25  ;;  %v2290_v36 = vmul.f32 0.0078125, %v2281_v20 }
 0xcfc   :  { %5073 = vrsqrt.f32 %v2294_v61  ;;  %v2295_v44 = vadd.f32 1e-05, %v2290_v36 }
 0xcfe   :  { %5075 = vrsqrt.f32 %v2295_v44 }
 0xcff   :  { %v2283_v38 = vpop.xlane.xlu1 %2282 }
 0xd00   :  { %v2291_v54 = vmul.f32 0.0078125, %v2283_v38 }
 0xd01   :  { %v2285_v23 = vpop.xlane.xlu0 %2284 }
 0xd02   :  { %v2296_v6 = vadd.f32 1e-05, %v2291_v54  ;;  %v2292_v50 = vmul.f32 0.0078125, %v2285_v23 }
 0xd04   :  { %5077 = vrsqrt.f32 %v2296_v6  ;;  %v2297_v48 = vadd.f32 1e-05, %v2292_v50 }
 0xd06   :  { %v5074_v30 = vpop.eup %5073  ;;  %5079 = vrsqrt.f32 %v2297_v48 }
 0xd07   :  { %v2304_v34 = vmul.f32 %v5074_v30, %v6326_v60 }
 0xd08   :  { %v5076_v1 = vpop.eup %5075 }
 0xd09   :  { %v2315_v29 = vmul.f32 %v4109_v52, %v2304_v34  ;;  %v2305_v45 = vmul.f32 %v5076_v1, %v6331_v0 }
 0xd0b   :  { %v2316_v56 = vmul.f32 %v4109_v52, %v2305_v45  ;;  %v2326_v41 = vadd.f32 %v4110_v2, %v2315_v29 }
 0xd0d   :  { %v2327_v11 = vadd.f32 %v4110_v2, %v2316_v56 }
 0xd0e   :  { %v5078_v63 = vpop.eup %5077 }
 0xd0f   :  { %v2380_v57 = vpack.c.bf16 %v2327_v11, %v2326_v41  ;;  %v2306_v40 = vmul.f32 %v5078_v63, %v6336_v19 }
 0xd10   :  { %v5080_v8 = vpop.eup %5079 }
 0xd11   :  { %2458 = vmatmul.mubr.bf16.vlgmr.msra.gmra.mrb[96].mxu1 %v2380_v57  ;;  %4693 = vmatmul.mubr.bf16.vlgmr.msra.gmra.mrb[96].mxu0 %v2380_v57  ;;  %v2307_v60 = vmul.f32 %v5080_v8, %v6341_v39  ;;  %v2317_v32 = vmul.f32 %v4109_v52, %v2306_v40 }
 0xd12   :  { %v2288_v10 = vpop.xlane.xlu1 %2287  ;;  %2467 = vmatprep.mubr.bf16.mxu1 %v5323_v21  ;;  %4696 = vmatprep.mubr.msk.bf16.mxu0 %vm5322_vm0, %v5321_v51 }
 0xd13   :  { %v2293_v0 = vmul.f32 0.0078125, %v2288_v10  ;;  %v2318_v24 = vmul.f32 %v4109_v52, %v2307_v60  ;;  %v2328_v46 = vadd.f32 %v4110_v2, %v2317_v32 }
 0xd15   :  { %v2298_v58 = vadd.f32 1e-05, %v2293_v0  ;;  %v2329_v37 = vadd.f32 %v4110_v2, %v2318_v24 }
 0xd17   :  { %5081 = vrsqrt.f32 %v2298_v58  ;;  %v2381_v62 = vpack.c.bf16 %v2329_v37, %v2328_v46 }
 0xd19   :  { %2468 = vmatmul.mubr.bf16.gmra.mrb[100].mxu1 %v2381_v62  ;;  %4697 = vmatmul.mubr.bf16.gmra.mrb[100].mxu0 %v2381_v62 }
 0xd1a   :  { %2477 = vmatprep.mubr.bf16.mxu1 %v5323_v21  ;;  %4700 = vmatprep.mubr.msk.bf16.mxu0 %vm5322_vm0, %v5321_v51 }
 0xd21   :  { %v5082_v19 = vpop.eup %5081 }
 0xd22   :  { %v2308_v39 = vmul.f32 %v5082_v19, %v6347_v42  ;;  %v2421_v42 = vrot.slane %v4111_v49, %v625_v4 }
 0xd24   :  { %v2319_v9 = vmul.f32 %v4109_v52, %v2308_v39 }
 0xd26   :  { %v2330_v47 = vadd.f32 %v4110_v2, %v2319_v9 }
 0xd28   :  { %v2382_v33 = vpack.c.bf16 %v2330_v47, %v2330_v47 }
 0xd2a   :  { %2478 = vmatmul.mubr.bf16.gmra.mrb[104].mxu1 %v2382_v33  ;;  %4701 = vmatmul.mubr.bf16.gmra.mrb[104].mxu0 %v2382_v33 }
 0xd2b   :  { %4710 = vmatprep.mubr.msk.bf16.mxu1 %vm5322_vm0, %v5321_v51  ;;  %4728 = vmatprep.mubr.msk.bf16.mxu0 %vm5322_vm0, %v5321_v51 }
 0xde4   :  { %v2459_v14 = vpop.f32.mrb[96].mxu1  ;;  %v2520_v17 = vpop.f32.mrb[96].mxu0 }
 0xde5   :  { %v2461_v5 = vpop.f32.mrb[97].mxu1  ;;  %v4694_v27 = vpop.f32.mrb[97].mxu0  ;;  %v2460_v26 = vadd.f32 %v2459_v14, %v2413_v55  ;;  %v2521_v53 = vadd.f32 %v2520_v17, %v2421_v42 }
 0xde6   :  { %v2463_v18 = vpop.f32.mrb[98].mxu1  ;;  %v2523_v43 = vpop.f32.mrb[98].mxu0  ;;  %v2462_v61 = vadd.f32 %v2461_v5, %v2417_v35 }
 0xde7   :  { %v2464_v13 = vadd.f32 %v2463_v18, %v2413_v55  ;;  %v2524_v28 = vadd.f32 %v2523_v43, %v2421_v42  ;;  %v2465_v25 = vpop.f32.mrb[99].mxu1  ;;  %v4695_v20 = vpop.f32.mrb[99].mxu0 }
 0xde8   :  { %v2466_v36 = vadd.f32 %v2465_v25, %v2417_v35 }
 0xde9   :  { %v6386_v44 = vpack.c.bf16 %v2464_v13, %v2460_v26  ;;  %v6388_v15 = vpack.c.bf16 %v2524_v28, %v2521_v53 }
 0xdea   :  { %v2545_v4 = vpack.c.bf16 %v2466_v36, %v2462_v61 }
 0xdeb   :  { %4723 = vmatpush3.bf16.msra.mxu0 %v6388_v15 }
 0xdec   :  { %2768 = vrot.lane.b32.xlu0 %v2545_v4, %s5324_s25  ;;  %v2469_v38 = vpop.f32.mrb[100].mxu1  ;;  %v2528_v54 = vpop.f32.mrb[100].mxu0  ;;  %v2558_v23 = vsel %vm753_vm2, %v2545_v4, 0  ;;  %4724 = vmatprep.subr.bf16.mxu0 %v5321_v51 }
 0xded   :  { %v2471_v6 = vpop.f32.mrb[101].mxu1  ;;  %v4698_v50 = vpop.f32.mrb[101].mxu0  ;;  %4705 = vmatpush3.bf16.xpose.msra.mxu1 %v2558_v23  ;;  %v2470_v52 = vadd.f32 %v2469_v38, %v2413_v55  ;;  %v2529_v34 = vadd.f32 %v2528_v54, %v2421_v42 }
 0xdee   :  { %v2473_v48 = vpop.f32.mrb[102].mxu1  ;;  %v2531_v30 = vpop.f32.mrb[102].mxu0  ;;  %4706 = vmatprep.subr.bf16.mxu1 %v5321_v51  ;;  %v2472_v56 = vadd.f32 %v2471_v6, %v2417_v35 }
 0xdef   :  { %v2474_v1 = vadd.f32 %v2473_v48, %v2413_v55  ;;  %v2532_v29 = vadd.f32 %v2531_v30, %v2421_v42  ;;  %v2475_v45 = vpop.f32.mrb[103].mxu1  ;;  %v4699_v2 = vpop.f32.mrb[103].mxu0 }
 0xdf0   :  { %v2476_v41 = vadd.f32 %v2475_v45, %v2417_v35  ;;  %2759 = vrot.lane.b32.xlu0 %v6386_v44, %s5324_s25 }
 0xdf1   :  { %v2543_v11 = vpack.c.bf16 %v2474_v1, %v2470_v52  ;;  %v6397_v63 = vpack.c.bf16 %v2532_v29, %v2529_v34 }
 0xdf2   :  { %v2546_v57 = vpack.c.bf16 %v2476_v41, %v2472_v56 }
 0xdf3   :  { %4725 = vmatpush3.bf16.msra.mxu0 %v6397_v63 }
 0xdf4   :  { %2770 = vrot.lane.b32.xlu1 %v2546_v57, %s5324_s25  ;;  %2761 = vrot.lane.b32.xlu0 %v2543_v11, %s5324_s25  ;;  %v2561_v40 = vsel %vm753_vm2, %v2546_v57, 0 }
 0xdf5   :  { %4707 = vmatpush3.bf16.xpose.msra.mxu1 %v2561_v40  ;;  %4726 = vmatprep.subr.bf16.mxu0 %v5321_v51 }
 0xdf6   :  { %4708 = vmatprep.subr.bf16.mxu1 %v5321_v51 }
 0xdfd   :  { %v2479_v8 = vpop.f32.mrb[104].mxu1  ;;  %v2536_v60 = vpop.f32.mrb[104].mxu0 }
 0xdfe   :  { %v2480_v32 = vadd.f32 %v2479_v8, %v2413_v55  ;;  %v2537_v10 = vadd.f32 %v2536_v60, %v2421_v42  ;;  %v2481_v0 = vpop.f32.mrb[105].mxu1  ;;  %v4702_v24 = vpop.f32.mrb[105].mxu0 }
 0xdff   :  { %v2482_v58 = vadd.f32 %v2481_v0, %v2417_v35  ;;  %v2483_v46 = vpop.f32.mrb[106].mxu1  ;;  %v2539_v37 = vpop.f32.mrb[106].mxu0 }
 0xe00   :  { %v2544_v62 = vpack.c.bf16 %v2480_v32, %v2480_v32  ;;  %v6405_v19 = vpack.c.bf16 %v2537_v10, %v2537_v10  ;;  %v2484_v39 = vpop.f32.mrb[107].mxu1  ;;  %v4703_v9 = vpop.f32.mrb[107].mxu0 }
 0xe01   :  { %v2547_v47 = vpack.c.bf16 %v2482_v58, %v2482_v58 }
 0xe02   :  { %2763 = vrot.lane.b32.xlu0 %v2544_v62, %s5324_s25  ;;  %v2698_v33 = vsel %vm905_vm3, %v6405_v19, 0 }
 0xe03   :  { %4727 = vmatpush3.bf16.msra.mxu0 %v2698_v33  ;;  %2772 = vrot.lane.b32.xlu1 %v2547_v47, %s5324_s25  ;;  %v2564_v49 = vsel %vm753_vm2, %v2547_v47, 0 }
 0xe04   :  { %4709 = vmatpush3.bf16.xpose.msra.mxu1 %v2564_v49  ;;  %4758 = vmatprep.subr.bf16.mxu0 %v5321_v51 }
 0xe05   :  { %4740 = vmatprep.subr.bf16.mxu1 %v5321_v51 }
 0xe06   :  { %2990 = vrot.lane.b32.xlu0 %v6386_v44, %s5325_s26 }
 0xe07   :  { %2996 = vrot.lane.b32.xlu1 %v2545_v4, %s5325_s26 }
 0xe0a   :  { %2992 = vrot.lane.b32.xlu0 %v2543_v11, %s5325_s26 }
 0xe0b   :  { %2998 = vrot.lane.b32.xlu1 %v2546_v57, %s5325_s26  ;;  %4711 = vmatmul.mubr.msk.bf16.vlgmr.msra.gmra.mrb[108].mxu1 %vm753_vm2, %v6386_v44 }
 0xe0c   :  { %4714 = vmatprep.mubr.msk.bf16.mxu1 %vm5322_vm0, %v5321_v51 }
 0xe0e   :  { %2994 = vrot.lane.b32.xlu0 %v2544_v62, %s5325_s26 }
 0xe0f   :  { %3000 = vrot.lane.b32.xlu1 %v2547_v47, %s5325_s26 }
 0xe12   :  { %3215 = vrot.lane.b32.xlu0 %v6386_v44, %s5326_s27 }
 0xe13   :  { %3221 = vrot.lane.b32.xlu1 %v2545_v4, %s5326_s27  ;;  %4715 = vmatmul.mubr.msk.bf16.gmra.mrb[112].mxu1 %vm753_vm2, %v2543_v11 }
 0xe14   :  { %4718 = vmatprep.mubr.msk.bf16.mxu1 %vm5322_vm0, %v5321_v51 }
 0xe16   :  { %3219 = vrot.lane.b32.xlu0 %v2544_v62, %s5326_s27 }
 0xe17   :  { %3223 = vrot.lane.b32.xlu1 %v2546_v57, %s5326_s27 }
 0xe1a   :  { %2914 = vrot.lane.b32.xlu0 %v6388_v15, %s5324_s25 }
 0xe1b   :  { %3225 = vrot.lane.b32.xlu1 %v2547_v47, %s5326_s27  ;;  %4719 = vmatmul.mubr.msk.bf16.gmra.mrb[116].mxu1 %vm753_vm2, %v2544_v62 }
 0xe1c   :  { %4746 = vmatprep.mubr.msk.bf16.mxu1 %vm5322_vm0, %v5321_v51 }
 0xe1f   :  { %3217 = vrot.lane.b32.xlu1 %v2543_v11, %s5326_s27 }
 0xe23   :  { %2916 = vrot.lane.b32.xlu1 %v6397_v63, %s5324_s25 }
 0xe5e   :  { %v2769_v55 = vpop.permute.xlu0 %2768 }
 0xe5f   :  { %v2784_v42 = vsel %vm753_vm2, %v2769_v55, 0 }
 0xe60   :  { %4741 = vmatpush3.bf16.xpose.msra.mxu1 %v2784_v42 }
 0xe61   :  { %4742 = vmatprep.subr.bf16.mxu1 %v5321_v51 }
 0xe62   :  { %v2760_v18 = vpop.permute.xlu0 %2759 }
 0xe66   :  { %v2771_v14 = vpop.permute.xlu1 %2770  ;;  %v2762_v53 = vpop.permute.xlu0 %2761 }
 0xe67   :  { %v2787_v17 = vsel %vm753_vm2, %v2771_v14, 0 }
 0xe68   :  { %4743 = vmatpush3.bf16.xpose.msra.mxu1 %v2787_v17 }
 0xe69   :  { %4744 = vmatprep.subr.bf16.mxu1 %v5321_v51 }
 0xe74   :  { %v2764_v25 = vpop.permute.xlu0 %2763 }
 0xe75   :  { %v2773_v35 = vpop.permute.xlu1 %2772 }
 0xe76   :  { %v2790_v5 = vsel %vm753_vm2, %v2773_v35, 0 }
 0xe77   :  { %4745 = vmatpush3.bf16.xpose.msra.mxu1 %v2790_v5 }
 0xe78   :  { %4776 = vmatprep.subr.bf16.mxu1 %v5321_v51  ;;  %v2991_v36 = vpop.permute.xlu0 %2990 }
 0xe79   :  { %v2997_v27 = vpop.permute.xlu1 %2996 }
 0xe7a   :  { %v3012_v43 = vsel %vm753_vm2, %v2997_v27, 0 }
 0xe7c   :  { %v2993_v38 = vpop.permute.xlu0 %2992 }
 0xe7d   :  { %v2999_v26 = vpop.permute.xlu1 %2998 }
 0xe7e   :  { %4747 = vmatmul.mubr.msk.bf16.vlgmr.msra.gmra.mrb[120].mxu1 %vm753_vm2, %v2760_v18  ;;  %v3015_v13 = vsel %vm753_vm2, %v2999_v26, 0 }
 0xe7f   :  { %4777 = vmatpush3.bf16.xpose.msra.mxu1 %v3012_v43  ;;  %4750 = vmatprep.mubr.msk.bf16.mxu1 %vm5322_vm0, %v5321_v51 }
 0xe80   :  { %4778 = vmatprep.subr.bf16.mxu1 %v5321_v51  ;;  %v2995_v6 = vpop.permute.xlu0 %2994 }
 0xe81   :  { %v3001_v28 = vpop.permute.xlu1 %3000 }
 0xe82   :  { %v3018_v20 = vsel %vm753_vm2, %v3001_v28, 0 }
 0xe84   :  { %v3216_v48 = vpop.permute.xlu0 %3215 }
 0xe85   :  { %v3222_v61 = vpop.permute.xlu1 %3221 }
 0xe86   :  { %4751 = vmatmul.mubr.msk.bf16.gmra.mrb[124].mxu1 %vm753_vm2, %v2762_v53  ;;  %v3237_v44 = vsel %vm753_vm2, %v3222_v61, 0 }
 0xe87   :  { %4779 = vmatpush3.bf16.xpose.msra.mxu1 %v3015_v13  ;;  %4754 = vmatprep.mubr.msk.bf16.mxu1 %vm5322_vm0, %v5321_v51 }
 0xe88   :  { %4780 = vmatprep.subr.bf16.mxu1 %v5321_v51  ;;  %v3220_v52 = vpop.permute.xlu0 %3219 }
 0xe89   :  { %v3224_v4 = vpop.permute.xlu1 %3223 }
 0xe8a   :  { %v3240_v54 = vsel %vm753_vm2, %v3224_v4, 0 }
 0xe8d   :  { %v3226_v23 = vpop.permute.xlu1 %3225 }
 0xe8e   :  { %4755 = vmatmul.mubr.msk.bf16.gmra.mrb[128].mxu1 %vm753_vm2, %v2764_v25  ;;  %v3243_v50 = vsel %vm753_vm2, %v3226_v23, 0 }
 0xe8f   :  { %4781 = vmatpush3.bf16.xpose.msra.mxu1 %v3018_v20  ;;  %4782 = vmatprep.mubr.msk.bf16.mxu1 %vm5322_vm0, %v5321_v51 }
 0xe90   :  { %4812 = vmatprep.subr.bf16.mxu1 %v5321_v51 }
 0xe91   :  { %v3218_v30 = vpop.permute.xlu1 %3217 }
 0xe96   :  { %4783 = vmatmul.mubr.msk.bf16.vlgmr.msra.gmra.mrb[132].mxu1 %vm753_vm2, %v2991_v36 }
 0xe97   :  { %4813 = vmatpush3.bf16.xpose.msra.mxu1 %v3237_v44  ;;  %4786 = vmatprep.mubr.msk.bf16.mxu1 %vm5322_vm0, %v5321_v51 }
 0xe98   :  { %4814 = vmatprep.subr.bf16.mxu1 %v5321_v51 }
 0xe9e   :  { %4787 = vmatmul.mubr.msk.bf16.gmra.mrb[136].mxu1 %vm753_vm2, %v2993_v38 }
 0xe9f   :  { %4815 = vmatpush3.bf16.xpose.msra.mxu1 %v3240_v54  ;;  %4790 = vmatprep.mubr.msk.bf16.mxu1 %vm5322_vm0, %v5321_v51 }
 0xea0   :  { %4816 = vmatprep.subr.bf16.mxu1 %v5321_v51 }
 0xea6   :  { %4791 = vmatmul.mubr.msk.bf16.gmra.mrb[140].mxu1 %vm753_vm2, %v2995_v6 }
 0xea7   :  { %4817 = vmatpush3.bf16.xpose.msra.mxu1 %v3243_v50  ;;  %4818 = vmatprep.mubr.msk.bf16.mxu1 %vm5322_vm0, %v5321_v51 }
 0xea8   :  { %4848 = vmatprep.subr.bf16.mxu1 %v5321_v51 }
 0xeae   :  { %4819 = vmatmul.mubr.msk.bf16.vlgmr.msra.gmra.mrb[144].mxu1 %vm753_vm2, %v3216_v48 }
 0xeaf   :  { %4822 = vmatprep.mubr.msk.bf16.mxu1 %vm5322_vm0, %v5321_v51 }
 0xeb6   :  { %4823 = vmatmul.mubr.msk.bf16.gmra.mrb[148].mxu1 %vm753_vm2, %v3218_v30  ;;  %v6519_v30 = vpop.permute.xlu1 %2916 }
 0xeb7   :  { %4826 = vmatprep.mubr.msk.bf16.mxu1 %vm5322_vm0, %v5321_v51 }
 0xebe   :  { %4827 = vmatmul.mubr.msk.bf16.gmra.mrb[152].mxu1 %vm753_vm2, %v3220_v52  ;;  %v6521_v52 = vpop.permute.xlu0 %2914 }
 0xebf   :  { %4864 = vmatprep.mubr.msk.bf16.mxu1 %vm5322_vm0, %v5321_v51 }
 0xede   :  { %v2600_v34 = vpop.f32.mrb[108].mxu1 }
 0xedf   :  { %v6487_v1 = vmul.f32 0.17677669, %v2600_v34  ;;  %v4712_v29 = vpop.f32.mrb[109].mxu1 }
 0xee0   :  { %v2603_v45 = vpop.f32.mrb[110].mxu1 }
 0xee1   :  { %v6489_v2 = vmul.f32 0.17677669, %v2603_v45  ;;  %v4713_v56 = vpop.f32.mrb[111].mxu1  ;;  %v2627_v41 = vsel %vm833_vm4, %v6487_v1, -inf }
 0xee2   :  { %2628 = vmax.xlane.f32.xlu1 %v2627_v41 }
 0xee3   :  { %v2630_v11 = vsel %vm833_vm4, %v6489_v2, -inf }
 0xee4   :  { %2631 = vmax.xlane.f32.xlu0 %v2630_v11 }
 0xee6   :  { %v2608_v57 = vpop.f32.mrb[112].mxu1 }
 0xee7   :  { %v6495_v40 = vmul.f32 0.17677669, %v2608_v57  ;;  %v4716_v8 = vpop.f32.mrb[113].mxu1 }
 0xee8   :  { %v2611_v60 = vpop.f32.mrb[114].mxu1 }
 0xee9   :  { %v6497_v32 = vmul.f32 0.17677669, %v2611_v60  ;;  %v4717_v10 = vpop.f32.mrb[115].mxu1  ;;  %v2633_v0 = vsel %vm833_vm4, %v6495_v40, -inf }
 0xeea   :  { %2634 = vmax.xlane.f32.xlu0 %v2633_v0 }
 0xeeb   :  { %v2636_v24 = vsel %vm833_vm4, %v6497_v32, -inf }
 0xeec   :  { %2637 = vmax.xlane.f32.xlu1 %v2636_v24 }
 0xeee   :  { %v2616_v58 = vpop.f32.mrb[116].mxu1 }
 0xeef   :  { %v6503_v46 = vmul.f32 0.17677669, %v2616_v58  ;;  %v4720_v37 = vpop.f32.mrb[117].mxu1 }
 0xef0   :  { %v2619_v62 = vpop.f32.mrb[118].mxu1 }
 0xef1   :  { %v4721_v39 = vpop.f32.mrb[119].mxu1  ;;  %v2639_v9 = vsel %vm846_vm5, %v6503_v46, -inf }
 0xef2   :  { %2640 = vmax.xlane.f32.xlu0 %v2639_v9 }
 0xf51   :  { %v2826_v47 = vpop.f32.mrb[120].mxu1 }
 0xf52   :  { %v6507_v33 = vmul.f32 0.17677669, %v2826_v47  ;;  %v4748_v49 = vpop.f32.mrb[121].mxu1 }
 0xf53   :  { %v2829_v55 = vpop.f32.mrb[122].mxu1 }
 0xf54   :  { %v6509_v42 = vmul.f32 0.17677669, %v2829_v55  ;;  %v4749_v14 = vpop.f32.mrb[123].mxu1  ;;  %v2853_v17 = vsel %vm833_vm4, %v6507_v33, -inf }
 0xf55   :  { %2854 = vmax.xlane.f32.xlu1 %v2853_v17 }
 0xf56   :  { %v2856_v35 = vsel %vm833_vm4, %v6509_v42, -inf }
 0xf57   :  { %2857 = vmax.xlane.f32.xlu0 %v2856_v35 }
 0xf59   :  { %v2834_v5 = vpop.f32.mrb[124].mxu1 }
 0xf5a   :  { %v4752_v27 = vpop.f32.mrb[125].mxu1  ;;  %v6524_v8 = vmul.f32 0.17677669, %v2834_v5 }
 0xf5b   :  { %v2837_v18 = vpop.f32.mrb[126].mxu1 }
 0xf5c   :  { %v4753_v43 = vpop.f32.mrb[127].mxu1  ;;  %v6527_v10 = vmul.f32 0.17677669, %v2837_v18  ;;  %v2859_v62 = vsel %vm833_vm4, %v6524_v8, -inf }
 0xf61   :  { %v2842_v26 = vpop.f32.mrb[128].mxu1 }
 0xf62   :  { %v4756_v53 = vpop.f32.mrb[129].mxu1  ;;  %v6529_v24 = vmul.f32 0.17677669, %v2842_v26 }
 0xf63   :  { %v2845_v13 = vpop.f32.mrb[130].mxu1 }
 0xf64   :  { %v4757_v28 = vpop.f32.mrb[131].mxu1  ;;  %v2865_v35 = vsel %vm846_vm5, %v6529_v24, -inf }
 0xf66   :  { %3139 = vrot.lane.b32.xlu1 %v6388_v15, %s5325_s26 }
 0xf69   :  { %v3054_v25 = vpop.f32.mrb[132].mxu1 }
 0xf6a   :  { %v4784_v20 = vpop.f32.mrb[133].mxu1  ;;  %v6533_v47 = vmul.f32 0.17677669, %v3054_v25 }
 0xf6b   :  { %v3057_v61 = vpop.f32.mrb[134].mxu1 }
 0xf6c   :  { %v4785_v36 = vpop.f32.mrb[135].mxu1  ;;  %v6538_v17 = vmul.f32 0.17677669, %v3057_v61  ;;  %v3081_v18 = vsel %vm833_vm4, %v6533_v47, -inf }
 0xf6d   :  { %2918 = vrot.lane.b32.xlu0 %v6405_v19, %s5324_s25 }
 0xf6e   :  { %v3084_v53 = vsel %vm833_vm4, %v6538_v17, -inf }
 0xf6f   :  { %v2629_v34 = vpop.xlane.xlu1 %2628 }
 0xf70   :  { %v2642_v11 = vsub.f32 %v6487_v1, %v2629_v34 }
 0xf71   :  { %v3062_v44 = vpop.f32.mrb[136].mxu1  ;;  %v2632_v56 = vpop.xlane.xlu0 %2631 }
 0xf72   :  { %v4788_v4 = vpop.f32.mrb[137].mxu1  ;;  %v2643_v60 = vsub.f32 %v6489_v2, %v2632_v56  ;;  %v2647_v0 = vmul.f32 1.442695, %v2642_v11  ;;  %v2862_v2 = vsel %vm833_vm4, %v6527_v10, -inf  ;;  %v6543_v27 = vmul.f32 0.17677669, %v3062_v44 }
 0xf73   :  { %v3065_v38 = vpop.f32.mrb[138].mxu1 }
 0xf74   :  { %v4789_v54 = vpop.f32.mrb[139].mxu1  ;;  %v2649_v39 = vmul.f32 1.442695, %v2643_v60  ;;  %5083 = vpow2.f32 %v2647_v0  ;;  %v6547_v26 = vmul.f32 0.17677669, %v3065_v38  ;;  %v3087_v61 = vsel %vm833_vm4, %v6543_v27, -inf }
 0xf76   :  { %5085 = vpow2.f32 %v2649_v39  ;;  %v3090_v44 = vsel %vm833_vm4, %v6547_v26, -inf }
 0xf77   :  { %v2635_v1 = vpop.xlane.xlu0 %2634 }
 0xf78   :  { %v2644_v5 = vsub.f32 %v6495_v40, %v2635_v1 }
 0xf79   :  { %v3070_v23 = vpop.f32.mrb[140].mxu1  ;;  %v2638_v58 = vpop.xlane.xlu1 %2637 }
 0xf7a   :  { %v4792_v6 = vpop.f32.mrb[141].mxu1  ;;  %v2645_v55 = vsub.f32 %v6497_v32, %v2638_v58  ;;  %v2651_v13 = vmul.f32 1.442695, %v2644_v5  ;;  %v6551_v25 = vmul.f32 0.17677669, %v3070_v23 }
 0xf7b   :  { %v3073_v50 = vpop.f32.mrb[142].mxu1 }
 0xf7c   :  { %v4793_v48 = vpop.f32.mrb[143].mxu1  ;;  %v2653_v43 = vmul.f32 1.442695, %v2645_v55  ;;  %v3093_v54 = vsel %vm846_vm5, %v6551_v25, -inf }
 0xf7e   :  { %5087 = vpow2.f32 %v2653_v43  ;;  %v6557_v4 = vpop.eup %5083 }
 0xf7f   :  { %v2641_v40 = vpop.xlane.xlu0 %2640  ;;  %5089 = vpow2.f32 %v2651_v13  ;;  %v2657_v50 = vsel %vm833_vm4, %v6557_v4, 0.0 }
 0xf80   :  { %v2646_v38 = vsub.f32 %v6503_v46, %v2641_v40  ;;  %v6562_v23 = vpop.eup %5085 }
 0xf81   :  { %v3279_v29 = vpop.f32.mrb[144].mxu1 }
 0xf82   :  { %v4820_v45 = vpop.f32.mrb[145].mxu1  ;;  %v6564_v6 = vmul.f32 0.17677669, %v3279_v29  ;;  %v2655_v48 = vmul.f32 1.442695, %v2646_v38 }
 0xf83   :  { %v3282_v41 = vpop.f32.mrb[146].mxu1  ;;  %v2660_v45 = vsel %vm833_vm4, %v6562_v23, 0.0 }
 0xf84   :  { %v4821_v57 = vpop.f32.mrb[147].mxu1  ;;  %v6568_v34 = vmul.f32 0.17677669, %v3282_v41  ;;  %v3306_v46 = vsel %vm833_vm4, %v6564_v6, -inf  ;;  %5091 = vpow2.f32 %v2655_v48 }
 0xf86   :  { %v3309_v29 = vsel %vm833_vm4, %v6568_v34, -inf }
 0xf88   :  { %v6574_v56 = vpop.eup %5087 }
 0xf89   :  { %v3287_v37 = vpop.f32.mrb[148].mxu1  ;;  %v6578_v11 = vpop.eup %5089  ;;  %v2666_v41 = vsel %vm833_vm4, %v6574_v56, 0.0 }
 0xf8a   :  { %2860 = vmax.xlane.f32.xlu1 %v2859_v62  ;;  %v4824_v9 = vpop.f32.mrb[149].mxu1  ;;  %v6580_v57 = vmul.f32 0.17677669, %v3287_v37  ;;  %v2663_v0 = vsel %vm833_vm4, %v6578_v11, 0.0 }
 0xf8b   :  { %v3290_v49 = vpop.f32.mrb[150].mxu1 }
 0xf8c   :  { %2863 = vmax.xlane.f32.xlu0 %v2862_v2  ;;  %v4825_v14 = vpop.f32.mrb[151].mxu1  ;;  %v6584_v60 = vmul.f32 0.17677669, %v3290_v49  ;;  %v3312_v62 = vsel %vm833_vm4, %v6580_v57, -inf }
 0xf8e   :  { %2866 = vmax.xlane.f32.xlu1 %v2865_v35  ;;  %v3315_v37 = vsel %vm833_vm4, %v6584_v60, -inf  ;;  %v6594_v39 = vpop.eup %5091 }
 0xf8f   :  { %v2669_v1 = vsel %vm846_vm5, %v6594_v39, 0.0 }
 0xf90   :  { %3082 = vmax.xlane.f32.xlu0 %v3081_v18 }
 0xf91   :  { %v3295_v32 = vpop.f32.mrb[152].mxu1 }
 0xf92   :  { %3085 = vmax.xlane.f32.xlu1 %v3084_v53  ;;  %v4828_v28 = vpop.f32.mrb[153].mxu1  ;;  %v6588_v58 = vmul.f32 0.17677669, %v3295_v32 }
 0xf93   :  { %v3298_v20 = vpop.f32.mrb[154].mxu1 }
 0xf94   :  { %3088 = vmax.xlane.f32.xlu0 %v3087_v61  ;;  %v4829_v36 = vpop.f32.mrb[155].mxu1  ;;  %v3318_v9 = vsel %vm846_vm5, %v6588_v58, -inf }
 0xf96   :  { %3091 = vmax.xlane.f32.xlu1 %v3090_v44 }
 0xf98   :  { %3094 = vmax.xlane.f32.xlu0 %v3093_v54 }
 0xf9a   :  { %2658 = vadd.xlane.f32.xlu1 %v2657_v50 }
 0xf9c   :  { %2661 = vadd.xlane.f32.xlu0 %v2660_v45 }
 0xf9e   :  { %3307 = vmax.xlane.f32.xlu1 %v3306_v46 }
 0xfa0   :  { %3310 = vmax.xlane.f32.xlu0 %v3309_v29 }
 0xfa2   :  { %2667 = vadd.xlane.f32.xlu1 %v2666_v41 }
 0xfa4   :  { %2664 = vadd.xlane.f32.xlu0 %v2663_v0 }
 0xfa6   :  { %3313 = vmax.xlane.f32.xlu1 %v3312_v62 }
 0xfa8   :  { %3316 = vmax.xlane.f32.xlu0 %v3315_v37 }
 0xfaa   :  { %3319 = vmax.xlane.f32.xlu1 %v3318_v9 }
 0xfac   :  { %2670 = vadd.xlane.f32.xlu0 %v2669_v1 }
 0xfe2   :  { %v2855_v49 = vpop.xlane.xlu1 %2854 }
 0xfe3   :  { %v2868_v2 = vsub.f32 %v6507_v33, %v2855_v49 }
 0xfe4   :  { %v2858_v55 = vpop.xlane.xlu0 %2857 }
 0xfe5   :  { %v2873_v14 = vmul.f32 1.442695, %v2868_v2  ;;  %v2869_v35 = vsub.f32 %v6509_v42, %v2858_v55 }
 0xfe6   :  { %v6612_v33 = vpop.permute.xlu1 %3139 }
 0xfe7   :  { %5093 = vpow2.f32 %v2873_v14  ;;  %v2875_v5 = vmul.f32 1.442695, %v2869_v35 }
 0xfe8   :  { %v6614_v42 = vpop.permute.xlu0 %2918 }
 0xfe9   :  { %5095 = vpow2.f32 %v2875_v5 }
 0xff1   :  { %v6602_v18 = vpop.eup %5093 }
 0xff2   :  { %v2883_v43 = vsel %vm833_vm4, %v6602_v18, 0.0 }
 0xff3   :  { %v6606_v32 = vpop.eup %5095  ;;  %2884 = vadd.xlane.f32.xlu1 %v2883_v43 }
 0xff4   :  { %v2886_v53 = vsel %vm833_vm4, %v6606_v32, 0.0 }
 0xff5   :  { %2887 = vadd.xlane.f32.xlu0 %v2886_v53 }
0x100b   :  { %3141 = vrot.lane.b32.xlu0 %v6397_v63, %s5325_s26 }
0x1017   :  { %v2861_v13 = vpop.xlane.xlu1 %2860 }
0x1018   :  { %v2870_v28 = vsub.f32 %v6524_v8, %v2861_v13 }
0x1019   :  { %v2864_v40 = vpop.xlane.xlu0 %2863 }
0x101a   :  { %v2877_v20 = vmul.f32 1.442695, %v2870_v28  ;;  %v2871_v61 = vsub.f32 %v6527_v10, %v2864_v40 }
0x101b   :  { %v2867_v36 = vpop.xlane.xlu1 %2866 }
0x101c   :  { %5097 = vpow2.f32 %v2877_v20  ;;  %v2879_v44 = vmul.f32 1.442695, %v2871_v61  ;;  %v2872_v38 = vsub.f32 %v6529_v24, %v2867_v36 }
0x101d   :  { %v3083_v54 = vpop.xlane.xlu0 %3082 }
0x101e   :  { %5099 = vpow2.f32 %v2879_v44  ;;  %v2881_v50 = vmul.f32 1.442695, %v2872_v38  ;;  %v3096_v48 = vsub.f32 %v6533_v47, %v3083_v54 }
0x101f   :  { %v3086_v45 = vpop.xlane.xlu1 %3085 }
0x1020   :  { %5101 = vpow2.f32 %v2881_v50  ;;  %v3101_v46 = vmul.f32 1.442695, %v3096_v48  ;;  %v3097_v29 = vsub.f32 %v6538_v17, %v3086_v45 }
0x1021   :  { %v3089_v8 = vpop.xlane.xlu0 %3088 }
0x1022   :  { %5103 = vpow2.f32 %v3101_v46  ;;  %v3103_v41 = vmul.f32 1.442695, %v3097_v29  ;;  %v3098_v10 = vsub.f32 %v6543_v27, %v3089_v8 }
0x1023   :  { %v3092_v0 = vpop.xlane.xlu1 %3091 }
0x1024   :  { %5105 = vpow2.f32 %v3103_v41  ;;  %v3105_v62 = vmul.f32 1.442695, %v3098_v10  ;;  %v3099_v24 = vsub.f32 %v6547_v26, %v3092_v0 }
0x1025   :  { %v3095_v37 = vpop.xlane.xlu0 %3094 }
0x1026   :  { %v6623_v9 = vpop.eup %5097  ;;  %5107 = vpow2.f32 %v3105_v62  ;;  %v3107_v47 = vmul.f32 1.442695, %v3099_v24  ;;  %v3100_v1 = vsub.f32 %v6551_v25, %v3095_v37 }
0x1027   :  { %v2659_v49 = vpop.xlane.xlu1 %2658  ;;  %v2889_v17 = vsel %vm833_vm4, %v6623_v9, 0.0 }
0x1028   :  { %v6628_v2 = vpop.eup %5099  ;;  %2890 = vadd.xlane.f32.xlu1 %v2889_v17  ;;  %5109 = vrcp.f32 %v2659_v49  ;;  %v3109_v14 = vmul.f32 1.442695, %v3100_v1  ;;  %v2932_v1 = vsel %vm905_vm3, %v6614_v42, 0 }
0x1029   :  { %v2662_v27 = vpop.xlane.xlu0 %2661  ;;  %v2892_v55 = vsel %vm833_vm4, %v6628_v2, 0.0  ;;  %5111 = vpow2.f32 %v3107_v47 }
0x102a   :  { %v6632_v26 = vpop.eup %5101  ;;  %2893 = vadd.xlane.f32.xlu0 %v2892_v55  ;;  %5113 = vrcp.f32 %v2662_v27 }
0x102b   :  { %v3308_v35 = vpop.xlane.xlu1 %3307  ;;  %v2895_v25 = vsel %vm846_vm5, %v6632_v26, 0.0  ;;  %5115 = vpow2.f32 %v3109_v14 }
0x102c   :  { %v6636_v5 = vpop.eup %5103  ;;  %v3321_v43 = vsub.f32 %v6564_v6, %v3308_v35  ;;  %2896 = vadd.xlane.f32.xlu1 %v2895_v25 }
0x102d   :  { %v3311_v53 = vpop.xlane.xlu0 %3310  ;;  %v3111_v61 = vsel %vm833_vm4, %v6636_v5, 0.0 }
0x102e   :  { %v6639_v13 = vpop.eup %5105  ;;  %v3326_v28 = vmul.f32 1.442695, %v3321_v43  ;;  %v3322_v17 = vsub.f32 %v6568_v34, %v3311_v53 }
0x102f   :  { %v2668_v40 = vpop.xlane.xlu1 %2667  ;;  %v3114_v20 = vsel %vm833_vm4, %v6639_v13, 0.0 }
0x1030   :  { %v6645_v36 = vpop.eup %5107  ;;  %5117 = vpow2.f32 %v3326_v28  ;;  %3115 = vadd.xlane.f32.xlu0 %v3114_v20  ;;  %3112 = vadd.xlane.f32.xlu1 %v3111_v61  ;;  %v3328_v55 = vmul.f32 1.442695, %v3322_v17 }
0x1031   :  { %5119 = vrcp.f32 %v2668_v40  ;;  %v2665_v6 = vpop.xlane.xlu0 %2664  ;;  %v3117_v38 = vsel %vm833_vm4, %v6645_v36, 0.0 }
0x1032   :  { %v5110_v44 = vpop.eup %5109  ;;  %5121 = vrcp.f32 %v2665_v6 }
0x1033   :  { %v6649_v54 = vpop.eup %5111  ;;  %v2677_v45 = vmul.f32 %v5110_v44, %v6557_v4 }
0x1034   :  { %3118 = vadd.xlane.f32.xlu1 %v3117_v38  ;;  %v5114_v50 = vpop.eup %5113  ;;  %v3120_v29 = vsel %vm833_vm4, %v6649_v54, 0.0 }
0x1035   :  { %v3317_v48 = vpop.xlane.xlu0 %3316  ;;  %v2678_v46 = vmul.f32 %v5114_v50, %v6562_v23  ;;  %v6655_v8 = vpop.eup %5115 }
0x1036   :  { %v3123_v23 = vsel %vm846_vm5, %v6655_v8, 0.0  ;;  %v3324_v25 = vsub.f32 %v6584_v60, %v3317_v48 }
0x1037   :  { %v2682_v41 = vpack.c.bf16 %v2678_v46, %v2677_v45 }
0x1038   :  { %3121 = vadd.xlane.f32.xlu1 %v3120_v29 }
0x1039   :  { %v2671_v10 = vpop.xlane.xlu0 %2670  ;;  %4729 = vmatmul.mubr.msk.bf16.vlgmr.msra.gmra.mrb[108].mxu0 %vm833_vm4, %v2682_v41 }
0x103a   :  { %v6657_v0 = vpop.eup %5117  ;;  %4759 = vmatpush3.bf16.msra.mxu0 %v6521_v52  ;;  %5123 = vrcp.f32 %v2671_v10  ;;  %4732 = vmatprep.mubr.msk.bf16.mxu0 %vm5322_vm0, %v5321_v51 }
0x103b   :  { %v5120_v62 = vpop.eup %5119  ;;  %v3336_v4 = vsel %vm833_vm4, %v6657_v0, 0.0  ;;  %4760 = vmatprep.subr.bf16.mxu0 %v5321_v51  ;;  %5125 = vpow2.f32 %v3328_v55 }
0x103c   :  { %3337 = vadd.xlane.f32.xlu0 %v3336_v4  ;;  %3124 = vadd.xlane.f32.xlu1 %v3123_v23  ;;  %v5122_v24 = vpop.eup %5121  ;;  %v2680_v47 = vmul.f32 %v5120_v62, %v6574_v56 }
0x103d   :  { %v2679_v37 = vmul.f32 %v5122_v24, %v6578_v11 }
0x103e   :  { %4761 = vmatpush3.bf16.msra.mxu0 %v6519_v30  ;;  %v3314_v30 = vpop.xlane.xlu1 %3313 }
0x103f   :  { %4762 = vmatprep.subr.bf16.mxu0 %v5321_v51  ;;  %v2683_v52 = vpack.c.bf16 %v2680_v47, %v2679_v37 }
0x1041   :  { %4733 = vmatmul.mubr.msk.bf16.gmra.mrb[112].mxu0 %vm833_vm4, %v2683_v52 }
0x1042   :  { %4763 = vmatpush3.bf16.msra.mxu0 %v2932_v1  ;;  %4736 = vmatprep.mubr.msk.bf16.mxu0 %vm5322_vm0, %v5321_v51  ;;  %v3320_v42 = vpop.xlane.xlu1 %3319 }
0x1043   :  { %4794 = vmatprep.subr.bf16.mxu0 %v5321_v51  ;;  %v3325_v27 = vsub.f32 %v6588_v58, %v3320_v42 }
0x1044   :  { %v5124_v49 = vpop.eup %5123 }
0x1045   :  { %v2681_v11 = vmul.f32 %v5124_v49, %v6594_v39  ;;  %v3323_v39 = vsub.f32 %v6580_v57, %v3314_v30  ;;  %v3334_v14 = vmul.f32 1.442695, %v3325_v27  ;;  %v6690_v43 = vpop.eup %5125 }
0x1046   :  { %v3339_v58 = vsel %vm833_vm4, %v6690_v43, 0.0 }
0x1047   :  { %v2684_v56 = vpack.c.bf16 %v2681_v11, %v2681_v11  ;;  %v3330_v35 = vmul.f32 1.442695, %v3323_v39  ;;  %5127 = vpow2.f32 %v3334_v14 }
0x1049   :  { %4737 = vmatmul.mubr.msk.bf16.gmra.mrb[116].mxu0 %vm833_vm4, %v2684_v56  ;;  %5129 = vpow2.f32 %v3330_v35 }
0x104a   :  { %4764 = vmatprep.mubr.msk.bf16.mxu0 %vm5322_vm0, %v5321_v51 }
0x104d   :  { %3364 = vrot.lane.b32.xlu1 %v6388_v15, %s5326_s27  ;;  %v3332_v15 = vmul.f32 1.442695, %v3324_v25 }
0x104f   :  { %5131 = vpow2.f32 %v3332_v15 }
0x1051   :  { %v6692_v28 = vpop.eup %5127 }
0x1052   :  { %3143 = vrot.lane.b32.xlu0 %v6405_v19, %s5325_s26  ;;  %v3348_v34 = vsel %vm846_vm5, %v6692_v28, 0.0 }
0x1053   :  { %v6698_v57 = vpop.eup %5129 }
0x1054   :  { %v3342_v60 = vsel %vm833_vm4, %v6698_v57, 0.0 }
0x1059   :  { %v6702_v53 = vpop.eup %5131 }
0x105a   :  { %v3345_v40 = vsel %vm833_vm4, %v6702_v53, 0.0 }
0x1071   :  { %3349 = vadd.xlane.f32.xlu0 %v3348_v34  ;;  %3340 = vadd.xlane.f32.xlu1 %v3339_v58 }
0x1075   :  { %3343 = vadd.xlane.f32.xlu1 %v3342_v60 }
0x1079   :  { %3346 = vadd.xlane.f32.xlu1 %v3345_v40 }
0x1080   :  { %v2885_v20 = vpop.xlane.xlu1 %2884 }
0x1081   :  { %5133 = vrcp.f32 %v2885_v20 }
0x1082   :  { %v2888_v61 = vpop.xlane.xlu0 %2887 }
0x1083   :  { %5135 = vrcp.f32 %v2888_v61 }
0x108a   :  { %3366 = vrot.lane.b32.xlu1 %v6397_v63, %s5326_s27  ;;  %v3142_v63 = vpop.permute.xlu0 %3141 }
0x108b   :  { %v5134_v6 = vpop.eup %5133 }
0x108c   :  { %v2903_v38 = vmul.f32 %v5134_v6, %v6602_v18 }
0x108d   :  { %v5136_v44 = vpop.eup %5135 }
0x108e   :  { %v2904_v50 = vmul.f32 %v5136_v44, %v6606_v32  ;;  %3368 = vrot.lane.b32.xlu1 %v6405_v19, %s5326_s27 }
0x1090   :  { %v2908_v48 = vpack.c.bf16 %v2904_v50, %v2903_v38 }
0x1092   :  { %4765 = vmatmul.mubr.msk.bf16.vlgmr.msra.gmra.mrb[120].mxu0 %vm833_vm4, %v2908_v48 }
0x1093   :  { %4795 = vmatpush3.bf16.msra.mxu0 %v6612_v33  ;;  %4768 = vmatprep.mubr.msk.bf16.mxu0 %vm5322_vm0, %v5321_v51 }
0x1094   :  { %4796 = vmatprep.subr.bf16.mxu0 %v5321_v51 }
0x1097   :  { %4797 = vmatpush3.bf16.msra.mxu0 %v3142_v63 }
0x1098   :  { %4798 = vmatprep.subr.bf16.mxu0 %v5321_v51 }
0x10b5   :  { %v2891_v18 = vpop.xlane.xlu1 %2890 }
0x10b6   :  { %5137 = vrcp.f32 %v2891_v18 }
0x10b7   :  { %v2894_v32 = vpop.xlane.xlu0 %2893 }
0x10b8   :  { %5139 = vrcp.f32 %v2894_v32 }
0x10b9   :  { %v2897_v45 = vpop.xlane.xlu1 %2896 }
0x10ba   :  { %5141 = vrcp.f32 %v2897_v45 }
0x10bd   :  { %v3113_v19 = vpop.xlane.xlu1 %3112  ;;  %v3116_v29 = vpop.xlane.xlu0 %3115 }
0x10be   :  { %5143 = vrcp.f32 %v3113_v19 }
0x10bf   :  { %5145 = vrcp.f32 %v3116_v29 }
0x10c0   :  { %v5138_v46 = vpop.eup %5137 }
0x10c1   :  { %v3119_v33 = vpop.xlane.xlu1 %3118  ;;  %v2905_v10 = vmul.f32 %v5138_v46, %v6623_v9 }
0x10c2   :  { %v5140_v41 = vpop.eup %5139 }
0x10c3   :  { %v2906_v62 = vmul.f32 %v5140_v41, %v6628_v2 }
0x10c4   :  { %v5142_v23 = vpop.eup %5141 }
0x10c5   :  { %v2909_v4 = vpack.c.bf16 %v2906_v62, %v2905_v10  ;;  %v3122_v24 = vpop.xlane.xlu1 %3121  ;;  %v2907_v47 = vmul.f32 %v5142_v23, %v6632_v26 }
0x10c6   :  { %5147 = vrcp.f32 %v3122_v24 }
0x10c7   :  { %4769 = vmatmul.mubr.msk.bf16.gmra.mrb[124].mxu0 %vm833_vm4, %v2909_v4  ;;  %v2910_v49 = vpack.c.bf16 %v2907_v47, %v2907_v47  ;;  %5149 = vrcp.f32 %v3119_v33 }
0x10c8   :  { %4772 = vmatprep.mubr.msk.bf16.mxu0 %vm5322_vm0, %v5321_v51  ;;  %v5144_v52 = vpop.eup %5143 }
0x10c9   :  { %v3338_v37 = vpop.xlane.xlu0 %3337  ;;  %v5146_v11 = vpop.eup %5145  ;;  %v3131_v2 = vmul.f32 %v5144_v52, %v6636_v5 }
0x10ca   :  { %v3132_v56 = vmul.f32 %v5146_v11, %v6639_v13  ;;  %v3125_v30 = vpop.xlane.xlu1 %3124 }
0x10cb   :  { %5151 = vrcp.f32 %v3125_v30 }
0x10cc   :  { %v3136_v26 = vpack.c.bf16 %v3132_v56, %v3131_v2 }
0x10cd   :  { %v3144_v1 = vpop.permute.xlu0 %3143 }
0x10ce   :  { %v3157_v9 = vsel %vm905_vm3, %v3144_v1, 0  ;;  %v3365_v17 = vpop.permute.xlu1 %3364 }
0x10cf   :  { %4773 = vmatmul.mubr.msk.bf16.gmra.mrb[128].mxu0 %vm833_vm4, %v2910_v49 }
0x10d0   :  { %4799 = vmatpush3.bf16.msra.mxu0 %v3157_v9  ;;  %4800 = vmatprep.mubr.msk.bf16.mxu0 %vm5322_vm0, %v5321_v51  ;;  %v5148_v42 = vpop.eup %5147 }
0x10d1   :  { %4830 = vmatprep.subr.bf16.mxu0 %v5321_v51  ;;  %v5150_v27 = vpop.eup %5149  ;;  %v3134_v55 = vmul.f32 %v5148_v42, %v6649_v54  ;;  %v4137_v42 = vld [vmem:[%s7027_s8 + $0x88] sm:$0xff] }
0x10d2   :  { %v3133_v5 = vmul.f32 %v5150_v27, %v6645_v36 }
0x10d4   :  { %v3137_v13 = vpack.c.bf16 %v3134_v55, %v3133_v5  ;;  %v4139_v5 = vld [vmem:[%s7027_s8 + $0x98] sm:$0xff] }
0x10d5   :  { %v5152_v39 = vpop.eup %5151 }
0x10d6   :  { %v3135_v14 = vmul.f32 %v5152_v39, %v6655_v8  ;;  %v4140_v39 = vld [vmem:[%s7027_s8 + $0xa0] sm:$0xff] }
0x10d7   :  { %4801 = vmatmul.mubr.msk.bf16.vlgmr.msra.gmra.mrb[132].mxu0 %vm833_vm4, %v3136_v26  ;;  %v4136_v26 = vld [vmem:[%s7027_s8 + $0x80] sm:$0xff] }
0x10d8   :  { %4831 = vmatpush3.bf16.msra.mxu0 %v3365_v17  ;;  %4804 = vmatprep.mubr.msk.bf16.mxu0 %vm5322_vm0, %v5321_v51  ;;  %v3138_v35 = vpack.c.bf16 %v3135_v14, %v3135_v14  ;;  %v4138_v17 = vld [vmem:[%s7027_s8 + $0x90] sm:$0xff]  ;;  %v3535_v55 = vpack.c.bf16 %v4137_v42, %v4136_v26  ;;  %v4141_v14 = vld [vmem:[%s7027_s8 + $0xa8] sm:$0xff] }
0x10d9   :  { %4832 = vmatprep.subr.bf16.mxu0 %v5321_v51 }
0x10da   :  { %4849 = vmatpush3.bf16.msra.mxu1 %v3535_v55 }
0x10db   :  { %4850 = vmatprep.subr.bf16.mxu1 %v5321_v51 }
0x10df   :  { %4805 = vmatmul.mubr.msk.bf16.gmra.mrb[136].mxu0 %vm833_vm4, %v3137_v13  ;;  %v3536_v13 = vpack.c.bf16 %v4139_v5, %v4138_v17 }
0x10e0   :  { %4808 = vmatprep.mubr.msk.bf16.mxu0 %vm5322_vm0, %v5321_v51 }
0x10e1   :  { %4851 = vmatpush3.bf16.msra.mxu1 %v3536_v13 }
0x10e2   :  { %4852 = vmatprep.subr.bf16.mxu1 %v5321_v51 }
0x10e7   :  { %4809 = vmatmul.mubr.msk.bf16.gmra.mrb[140].mxu0 %vm833_vm4, %v3138_v35 }
0x10e8   :  { %4836 = vmatprep.mubr.msk.bf16.mxu0 %vm5322_vm0, %v5321_v51 }
0x10fe   :  { %v3341_v54 = vpop.xlane.xlu1 %3340  ;;  %v3350_v60 = vpop.xlane.xlu0 %3349 }
0x10ff   :  { %5153 = vrcp.f32 %v3341_v54 }
0x1100   :  { %5155 = vrcp.f32 %v3338_v37 }
0x1102   :  { %v3344_v25 = vpop.xlane.xlu1 %3343 }
0x1106   :  { %v3347_v36 = vpop.xlane.xlu1 %3346 }
0x1107   :  { %5157 = vrcp.f32 %v3347_v36 }
0x1108   :  { %5159 = vrcp.f32 %v3344_v25  ;;  %v3537_v25 = vpack.c.bf16 %v4141_v14, %v4140_v39 }
0x1109   :  { %v5154_v15 = vpop.eup %5153  ;;  %5161 = vrcp.f32 %v3350_v60 }
0x110a   :  { %v3367_v34 = vpop.permute.xlu1 %3366  ;;  %v5156_v58 = vpop.eup %5155  ;;  %v3357_v8 = vmul.f32 %v5154_v15, %v6690_v43  ;;  %v4142_v15 = vld [vmem:[%s7027_s8 + $0xb0] sm:$0xff]  ;;  %4853 = vmatpush3.bf16.msra.mxu1 %v3537_v25 }
0x110b   :  { %4833 = vmatpush3.bf16.msra.mxu0 %v3367_v34  ;;  %v3356_v6 = vmul.f32 %v5156_v58, %v6657_v0  ;;  %v4143_v34 = vld [vmem:[%s7027_s8 + $0xb8] sm:$0xff]  ;;  %4854 = vmatprep.subr.bf16.mxu1 %v5321_v51 }
0x110c   :  { %4834 = vmatprep.subr.bf16.mxu0 %v5321_v51  ;;  %v6746_v40 = vpop.f32.mrb[108].mxu0  ;;  %v3538_v60 = vpack.c.bf16 %v4143_v34, %v4142_v15 }
0x110d   :  { %v4730_v20 = vpop.f32.mrb[109].mxu0  ;;  %v3361_v48 = vpack.c.bf16 %v3357_v8, %v3356_v6 }
0x110e   :  { %v3369_v61 = vpop.permute.xlu1 %3368  ;;  %v6749_v44 = vpop.f32.mrb[110].mxu0  ;;  %v4144_v20 = vld [vmem:[%s7027_s8 + $0xc0] sm:$0xff]  ;;  %4855 = vmatpush3.bf16.msra.mxu1 %v3538_v60 }
0x110f   :  { %v3382_v38 = vsel %vm905_vm3, %v3369_v61, 0  ;;  %v4731_v50 = vpop.f32.mrb[111].mxu0  ;;  %v4145_v61 = vld [vmem:[%s7027_s8 + $0xc8] sm:$0xff]  ;;  %4856 = vmatprep.subr.bf16.mxu1 %v5321_v51 }
0x1110   :  { %4835 = vmatpush3.bf16.msra.mxu0 %v3382_v38  ;;  %v3539_v50 = vpack.c.bf16 %v4145_v61, %v4144_v20 }
0x1111   :  { %v5158_v63 = vpop.eup %5157 }
0x1112   :  { %v5160_v18 = vpop.eup %5159  ;;  %v3359_v32 = vmul.f32 %v5158_v63, %v6702_v53  ;;  %v4146_v63 = vld [vmem:[%s7027_s8 + $0xd0] sm:$0xff]  ;;  %4857 = vmatpush3.bf16.msra.mxu1 %v3539_v50 }
0x1113   :  { %4837 = vmatmul.mubr.msk.bf16.vlgmr.msra.gmra.mrb[144].mxu0 %vm833_vm4, %v3361_v48  ;;  %v3358_v19 = vmul.f32 %v5160_v18, %v6698_v57  ;;  %v5162_v41 = vpop.eup %5161  ;;  %v4147_v18 = vld [vmem:[%s7027_s8 + $0xd8] sm:$0xff]  ;;  %4858 = vmatprep.subr.bf16.mxu1 %v5321_v51 }
0x1114   :  { %4840 = vmatprep.mubr.msk.bf16.mxu0 %vm5322_vm0, %v5321_v51  ;;  %v6755_v43 = vpop.f32.mrb[112].mxu0  ;;  %v3360_v10 = vmul.f32 %v5162_v41, %v6692_v28 }
0x1115   :  { %v4734_v0 = vpop.f32.mrb[113].mxu0  ;;  %v3362_v29 = vpack.c.bf16 %v3359_v32, %v3358_v19  ;;  %v3540_v19 = vpack.c.bf16 %v4147_v18, %v4146_v63 }
0x1116   :  { %v6758_v45 = vpop.f32.mrb[114].mxu0  ;;  %v3363_v23 = vpack.c.bf16 %v3360_v10, %v3360_v10 }
0x1117   :  { %v4735_v46 = vpop.f32.mrb[115].mxu0  ;;  %4859 = vmatpush3.bf16.msra.mxu1 %v3540_v19 }
0x1118   :  { %v4148_v46 = vld [vmem:[%s7027_s8 + $0xe0] sm:$0xff]  ;;  %4860 = vmatprep.subr.bf16.mxu1 %v5321_v51 }
0x111b   :  { %4841 = vmatmul.mubr.msk.bf16.gmra.mrb[148].mxu0 %vm833_vm4, %v3362_v29  ;;  %v4149_v29 = vld [vmem:[%s7027_s8 + $0xe8] sm:$0xff] }
0x111c   :  { %4844 = vmatprep.mubr.msk.bf16.mxu0 %vm5322_vm0, %v5321_v51  ;;  %v6764_v33 = vpop.f32.mrb[116].mxu0 }
0x111d   :  { %v4738_v62 = vpop.f32.mrb[117].mxu0 }
0x111e   :  { %v2753_v4 = vpop.f32.mrb[118].mxu0  ;;  %v3541_v62 = vpack.c.bf16 %v4149_v29, %v4148_v46 }
0x111f   :  { %v4739_v53 = vpop.f32.mrb[119].mxu0 }
0x1120   :  { %4861 = vmatpush3.bf16.msra.mxu1 %v3541_v62 }
0x1121   :  { %4862 = vmatprep.subr.bf16.mxu1 %v5321_v51 }
0x1123   :  { %4845 = vmatmul.mubr.msk.bf16.gmra.mrb[152].mxu0 %vm833_vm4, %v3363_v23  ;;  %v4150_v23 = vld [vmem:[%s7027_s8 + $0xf0] sm:$0xff] }
0x1124   :  { %3797 = vmatprep.mubr.bf16.mxu0 %v5323_v21 }
0x1165   :  { %v2968_v57 = vpop.f32.mrb[120].mxu0 }
0x1166   :  { %v4766_v24 = vpop.f32.mrb[121].mxu0 }
0x1167   :  { %v2971_v37 = vpop.f32.mrb[122].mxu0 }
0x1168   :  { %v4923_v47 = vpack.i.bf16 %v2971_v37, %v2968_v57  ;;  %v4767_v52 = vpop.f32.mrb[123].mxu0  ;;  %v4151_v57 = vld [vmem:[%s7027_s8 + $0xf8] sm:$0xff] }
0x1169   :  { %v3542_v24 = vpack.c.bf16 %v4151_v57, %v4150_v23 }
0x116a   :  { %4924 = vrot.lane.b32.xlu1 %v4923_v47, %s5326_s27 }
0x116b   :  { %4863 = vmatpush3.bf16.msra.mxu1 %v3542_v24 }
0x119a   :  { %v2976_v1 = vpop.f32.mrb[124].mxu0 }
0x119b   :  { %v4770_v49 = vpop.f32.mrb[125].mxu0 }
0x119c   :  { %v2979_v11 = vpop.f32.mrb[126].mxu0 }
0x119d   :  { %v4928_v9 = vpack.i.bf16 %v2979_v11, %v2976_v1  ;;  %v4771_v28 = vpop.f32.mrb[127].mxu0 }
0x119f   :  { %4929 = vrot.lane.b32.xlu0 %v4928_v9, %s5326_s27 }
0x11a2   :  { %v6771_v2 = vpop.f32.mrb[128].mxu0 }
0x11a3   :  { %v4774_v56 = vpop.f32.mrb[129].mxu0 }
0x11a4   :  { %v2987_v30 = vpop.f32.mrb[130].mxu0 }
0x11a5   :  { %v4775_v27 = vpop.f32.mrb[131].mxu0 }
0x11aa   :  { %v3193_v35 = vpop.f32.mrb[132].mxu0 }
0x11ab   :  { %v4802_v54 = vpop.f32.mrb[133].mxu0 }
0x11ac   :  { %v3196_v36 = vpop.f32.mrb[134].mxu0 }
0x11ad   :  { %v4933_v58 = vpack.i.bf16 %v3196_v36, %v3193_v35  ;;  %v4803_v8 = vpop.f32.mrb[135].mxu0 }
0x11af   :  { %4934 = vrot.lane.b32.xlu1 %v4933_v58, %s5325_s26 }
0x11b2   :  { %v3201_v6 = vpop.f32.mrb[136].mxu0 }
0x11b3   :  { %v4806_v38 = vpop.f32.mrb[137].mxu0 }
0x11b4   :  { %v3204_v48 = vpop.f32.mrb[138].mxu0 }
0x11b5   :  { %v4943_v32 = vpack.i.bf16 %v3204_v48, %v3201_v6  ;;  %v4807_v0 = vpop.f32.mrb[139].mxu0 }
0x11ba   :  { %v3209_v41 = vpop.f32.mrb[140].mxu0 }
0x11bb   :  { %v4810_v10 = vpop.f32.mrb[141].mxu0 }
0x11bc   :  { %v3212_v4 = vpop.f32.mrb[142].mxu0 }
0x11bd   :  { %v4811_v53 = vpop.f32.mrb[143].mxu0 }
0x11dc   :  { %v4925_v55 = vpop.permute.xlu1 %4924 }
0x11dd   :  { %v4927_v13 = vunpack.i.h.bf16 %v4925_v55  ;;  %v4926_v39 = vunpack.i.l.bf16 %v4925_v55 }
0x11df   :  { %v3501_v25 = vsel %vm753_vm2, %v6749_v44, %v4927_v13 }
0x11e6   :  { %v3418_v37 = vpop.f32.mrb[144].mxu0 }
0x11e7   :  { %v4838_v47 = vpop.f32.mrb[145].mxu0 }
0x11e8   :  { %v3421_v52 = vpop.f32.mrb[146].mxu0 }
0x11e9   :  { %v4938_v1 = vpack.i.bf16 %v3421_v52, %v3418_v37  ;;  %v4839_v49 = vpop.f32.mrb[147].mxu0  ;;  %v4153_v37 = vld [vmem:[%s7028_s9 + $0x1] ss:$0 sm:$0xff] }
0x11eb   :  { %4939 = vrot.lane.b32.xlu1 %v4938_v1, %s5324_s25 }
0x11ee   :  { %v3426_v11 = vpop.f32.mrb[148].mxu0 }
0x11ef   :  { %4944 = vrot.lane.b32.xlu1 %v4943_v32, %s5325_s26  ;;  %v4842_v9 = vpop.f32.mrb[149].mxu0 }
0x11f0   :  { %v3429_v28 = vpop.f32.mrb[150].mxu0 }
0x11f1   :  { %v4948_v56 = vpack.i.bf16 %v3429_v28, %v3426_v11  ;;  %v4843_v30 = vpop.f32.mrb[151].mxu0 }
0x11f3   :  { %4949 = vrot.lane.b32.xlu1 %v4948_v56, %s5324_s25 }
0x11f6   :  { %v3434_v26 = vpop.f32.mrb[152].mxu0 }
0x11f7   :  { %3453 = vrot.lane.b32.xlu1 %v6771_v2, %s5326_s27  ;;  %v4846_v42 = vpop.f32.mrb[153].mxu0  ;;  %v3500_v2 = vsel %vm753_vm2, %v6746_v40, %v4926_v39 }
0x11f8   :  { %v3437_v17 = vpop.f32.mrb[154].mxu0 }
0x11f9   :  { %v4847_v27 = vpop.f32.mrb[155].mxu0 }
0x11fb   :  { %3473 = vrot.lane.b32.xlu1 %v3209_v41, %s5325_s26 }
0x11ff   :  { %3493 = vrot.lane.b32.xlu1 %v3434_v26, %s5324_s25 }
0x1211   :  { %v4930_v34 = vpop.permute.xlu0 %4929 }
0x1212   :  { %v4932_v38 = vunpack.i.h.bf16 %v4930_v34  ;;  %v4931_v50 = vunpack.i.l.bf16 %v4930_v34 }
0x1214   :  { %v3503_v63 = vsel %vm753_vm2, %v6758_v45, %v4932_v38  ;;  %v3502_v18 = vsel %vm753_vm2, %v6755_v43, %v4931_v50 }
0x1221   :  { %v4935_v5 = vpop.permute.xlu1 %4934 }
0x1222   :  { %v4937_v14 = vunpack.i.h.bf16 %v4935_v5  ;;  %v4936_v35 = vunpack.i.l.bf16 %v4935_v5 }
0x1224   :  { %v3506_v58 = vsel %vm1714_vm6, %v3501_v25, %v4937_v14  ;;  %v3505_v8 = vsel %vm1714_vm6, %v3500_v2, %v4936_v35  ;;  %v3704_v14 = vld [vmem:[#allocation7 + $0x118] sm:$0xff]  ;;  %v3701_v35 = vld [vmem:[#allocation7 + $0x100] sm:$0xff]  ;;  %v3703_v25 = vld [vmem:[#allocation7 + $0x110] sm:$0xff] }
0x1225   :  { %v3706_v2 = vld [vmem:[#allocation7 + $0x128] sm:$0xff] }
0x125d   :  { %v4940_v54 = vpop.permute.xlu1 %4939 }
0x125e   :  { %v4942_v36 = vunpack.i.h.bf16 %v4940_v54  ;;  %v4941_v15 = vunpack.i.l.bf16 %v4940_v54 }
0x1260   :  { %v3511_v60 = vsel %vm1720_vm7, %v3506_v58, %v4942_v36  ;;  %v3510_v20 = vsel %vm1720_vm7, %v3505_v8, %v4941_v15  ;;  %v3708_v36 = vld [vmem:[#allocation7 + $0x138] sm:$0xff]  ;;  %v3736_v15 = vpack.c.bf16 %v3703_v25, %v3701_v35  ;;  %v3705_v58 = vld [vmem:[#allocation7 + $0x120] sm:$0xff] }
0x1261   :  { %v3532_v61 = vpack.c.bf16 %v3511_v60, %v3510_v20  ;;  %v4945_v6 = vpop.permute.xlu1 %4944  ;;  %v3739_v34 = vpack.c.bf16 %v3708_v36, %v3706_v2  ;;  %v3728_v35 = vld [vmem:[#allocation7 + $0x1d8] sm:$0xff]  ;;  %v3725_v25 = vld [vmem:[#allocation7 + $0x1c0] sm:$0xff]  ;;  %v3727_v2 = vld [vmem:[#allocation7 + $0x1d0] sm:$0xff] }
0x1262   :  { %v4947_v48 = vunpack.i.h.bf16 %v4945_v6  ;;  %v4946_v44 = vunpack.i.l.bf16 %v4945_v6  ;;  %v3748_v36 = vpack.c.bf16 %v3727_v2, %v3725_v25  ;;  %v3935_v25 = vld [vmem:[#allocation8 + $0x190] sm:$0xff]  ;;  %v3936_v2 = vld [vmem:[#allocation8 + $0x198] sm:$0xff] }
0x1263   :  { %4865 = vmatmul.mubr.bf16.vlgmr.msra.gmra.mrb[156].mxu1 %v3532_v61 }
0x1264   :  { %4868 = vmatprep.mubr.msk.bf16.mxu1 %vm5322_vm0, %v5321_v51  ;;  %v3507_v19 = vsel %vm1714_vm6, %v3502_v18, %v4946_v44  ;;  %v3508_v46 = vsel %vm1714_vm6, %v3503_v63, %v4947_v48 }
0x1265   :  { %v4950_v40 = vpop.permute.xlu1 %4949 }
0x1266   :  { %v4952_v32 = vunpack.i.h.bf16 %v4950_v40  ;;  %v4951_v0 = vunpack.i.l.bf16 %v4950_v40 }
0x1268   :  { %v3512_v29 = vsel %vm1720_vm7, %v3507_v19, %v4951_v0  ;;  %v3513_v41 = vsel %vm1720_vm7, %v3508_v46, %v4952_v32 }
0x1269   :  { %v3454_v10 = vpop.permute.xlu1 %3453  ;;  %v3533_v62 = vpack.c.bf16 %v3513_v41, %v3512_v29 }
0x126a   :  { %v3504_v43 = vsel %vm753_vm2, %v6764_v33, %v3454_v10 }
0x126b   :  { %4869 = vmatmul.mubr.bf16.gmra.mrb[160].mxu1 %v3533_v62  ;;  %v3710_v62 = vld [vmem:[#allocation7 + $0x148] sm:$0xff] }
0x126c   :  { %4872 = vmatprep.mubr.msk.bf16.mxu1 %vm5322_vm0, %v5321_v51 }
0x126d   :  { %v3474_v45 = vpop.permute.xlu1 %3473 }
0x126e   :  { %v3509_v4 = vsel %vm1714_vm6, %v3504_v43, %v3474_v45  ;;  %v3712_v45 = vld [vmem:[#allocation7 + $0x158] sm:$0xff] }
0x1271   :  { %v3494_v53 = vpop.permute.xlu1 %3493 }
0x1272   :  { %v3514_v23 = vsel %vm1720_vm7, %v3509_v4, %v3494_v53  ;;  %v3741_v4 = vpack.c.bf16 %v3712_v45, %v3710_v62  ;;  %v3709_v53 = vld [vmem:[#allocation7 + $0x140] sm:$0xff] }
0x1273   :  { %v3534_v57 = vpack.c.bf16 %v3514_v23, %v3514_v23  ;;  %v3711_v23 = vld [vmem:[#allocation7 + $0x150] sm:$0xff] }
0x1275   :  { %4873 = vmatmul.mubr.bf16.gmra.mrb[164].mxu1 %v3534_v57  ;;  %v3740_v57 = vpack.c.bf16 %v3711_v23, %v3709_v53 }
0x1336   :  { %v3577_v24 = vpop.f32.mrb[156].mxu1 }
0x1337   :  { %v3599_v47 = vadd.f32 %v3577_v24, %v6304_v12  ;;  %v4866_v52 = vpop.f32.mrb[157].mxu1 }
0x1338   :  { %v3580_v51 = vpop.f32.mrb[158].mxu1 }
0x1339   :  { %v6864_v1 = vadd.f32 %v4153_v37, %v3599_v47  ;;  %v3600_v33 = vadd.f32 %v3580_v51, %v6307_v22  ;;  %v4867_v49 = vpop.f32.mrb[159].mxu1  ;;  %v3716_v47 = vld [vmem:[#allocation7 + $0x178] sm:$0xff] }
0x133a   :  { %v3715_v49 = vld [vmem:[#allocation7 + $0x170] sm:$0xff] }
0x133b   :  { %v6867_v11 = vadd.f32 %v4153_v37, %v3600_v33  ;;  %3621 = vadd.xlane.f32.xlu0 %v6864_v1  ;;  %v3713_v33 = vld [vmem:[#allocation7 + $0x160] sm:$0xff] }
0x133d   :  { %3623 = vadd.xlane.f32.xlu1 %v6867_v11 }
0x133e   :  { %v3585_v9 = vpop.f32.mrb[160].mxu1 }
0x133f   :  { %v3601_v28 = vadd.f32 %v3585_v9, %v6312_v59  ;;  %v4870_v56 = vpop.f32.mrb[161].mxu1  ;;  %v3742_v9 = vpack.c.bf16 %v3715_v49, %v3713_v33 }
0x1340   :  { %v3588_v30 = vpop.f32.mrb[162].mxu1  ;;  %v3720_v56 = vld [vmem:[#allocation7 + $0x198] sm:$0xff] }
0x1341   :  { %v6872_v26 = vadd.f32 %v4153_v37, %v3601_v28  ;;  %v3602_v12 = vadd.f32 %v3588_v30, %v6315_v31  ;;  %v4871_v42 = vpop.f32.mrb[163].mxu1  ;;  %v3702_v31 = vld [vmem:[#allocation7 + $0x108] sm:$0xff] }
0x1342   :  { %v3737_v54 = vpack.c.bf16 %v3704_v14, %v3702_v31  ;;  %v3718_v28 = vld [vmem:[#allocation7 + $0x188] sm:$0xff]  ;;  %v3719_v42 = vld [vmem:[#allocation7 + $0x190] sm:$0xff] }
0x1343   :  { %3625 = vadd.xlane.f32.xlu0 %v6872_v26  ;;  %v6876_v22 = vadd.f32 %v4153_v37, %v3602_v12  ;;  %v3745_v30 = vpack.c.bf16 %v3720_v56, %v3718_v28  ;;  %v3717_v12 = vld [vmem:[#allocation7 + $0x180] sm:$0xff]  ;;  %v3726_v14 = vld [vmem:[#allocation7 + $0x1c8] sm:$0xff] }
0x1344   :  { %3765 = vmatprep.subr.bf16.mxu0 %v3737_v54  ;;  %v3749_v54 = vpack.c.bf16 %v3728_v35, %v3726_v14  ;;  %v3917_v35 = vld [vmem:[#allocation8 + $0x100] sm:$0xff] }
0x1345   :  { %3766 = vmatpush1.bf16.msra.mxu0 %v3736_v15  ;;  %v3730_v15 = vld [vmem:[#allocation7 + $0x1e8] sm:$0xff] }
0x1346   :  { %3767 = vmatprep.subr.bf16.mxu0 %v3739_v34  ;;  %v3732_v34 = vld [vmem:[#allocation7 + $0x1f8] sm:$0xff] }
0x1347   :  { %3627 = vadd.xlane.f32.xlu0 %v6876_v22 }
0x1348   :  { %v3593_v17 = vpop.f32.mrb[164].mxu1 }
0x1349   :  { %v3603_v27 = vadd.f32 %v3593_v17, %v6319_v16  ;;  %v4874_v55 = vpop.f32.mrb[165].mxu1  ;;  %v3707_v16 = vld [vmem:[#allocation7 + $0x130] sm:$0xff]  ;;  %v3744_v17 = vpack.c.bf16 %v3719_v42, %v3717_v12 }
0x134a   :  { %v3596_v5 = vpop.f32.mrb[166].mxu1  ;;  %v3738_v8 = vpack.c.bf16 %v3707_v16, %v3705_v58  ;;  %v3724_v55 = vld [vmem:[#allocation7 + $0x1b8] sm:$0xff]  ;;  %v3751_v58 = vpack.c.bf16 %v3732_v34, %v3730_v15  ;;  %v3729_v16 = vld [vmem:[#allocation7 + $0x1e0] sm:$0xff]  ;;  %v3919_v15 = vld [vmem:[#allocation8 + $0x110] sm:$0xff] }
0x134b   :  { %v6880_v13 = vadd.f32 %v4153_v37, %v3603_v27  ;;  %v4875_v59 = vpop.f32.mrb[167].mxu1  ;;  %v3714_v37 = vld [vmem:[#allocation7 + $0x168] sm:$0xff]  ;;  %v3920_v34 = vld [vmem:[#allocation8 + $0x118] sm:$0xff] }
0x134c   :  { %3768 = vmatpush1.bf16.msra.mxu0 %v3738_v8  ;;  %v3743_v51 = vpack.c.bf16 %v3716_v47, %v3714_v37  ;;  %v3722_v27 = vld [vmem:[#allocation7 + $0x1a8] sm:$0xff]  ;;  %v3721_v59 = vld [vmem:[#allocation7 + $0x1a0] sm:$0xff]  ;;  %v3731_v8 = vld [vmem:[#allocation7 + $0x1f0] sm:$0xff] }
0x134d   :  { %v3629_v39 = vsel %vm465_vm1, %v6880_v13, 0.0  ;;  %3769 = vmatprep.subr.bf16.mxu0 %v3741_v4  ;;  %v3747_v5 = vpack.c.bf16 %v3724_v55, %v3722_v27 }
0x134e   :  { %3630 = vadd.xlane.f32.xlu1 %v3629_v39  ;;  %v3723_v39 = vld [vmem:[#allocation7 + $0x1b0] sm:$0xff] }
0x134f   :  { %v3746_v31 = vpack.c.bf16 %v3723_v39, %v3721_v59  ;;  %v3933_v39 = vld [vmem:[#allocation8 + $0x180] sm:$0xff] }
0x1350   :  { %3770 = vmatpush1.bf16.msra.mxu0 %v3740_v57  ;;  %v4157_v57 = vld [vmem:[%s7030_s11 + $0x1] ss:$0 sm:$0xff] }
0x1351   :  { %3771 = vmatprep.subr.bf16.mxu0 %v3743_v51 }
0x1354   :  { %3772 = vmatpush1.bf16.msra.mxu0 %v3742_v9 }
0x1355   :  { %3773 = vmatprep.subr.bf16.mxu0 %v3745_v30 }
0x1358   :  { %3774 = vmatpush1.bf16.msra.mxu0 %v3744_v17 }
0x1359   :  { %3775 = vmatprep.subr.bf16.mxu0 %v3747_v5 }
0x135c   :  { %3776 = vmatpush1.bf16.msra.mxu0 %v3746_v31  ;;  %v3934_v31 = vld [vmem:[#allocation8 + $0x188] sm:$0xff] }
0x135d   :  { %3777 = vmatprep.subr.bf16.mxu0 %v3749_v54  ;;  %v3963_v14 = vpack.c.bf16 %v3934_v31, %v3933_v39 }
0x135f   :  { %4414 = vmatprep.subr.bf16.mxu1 %v3963_v14 }
0x1360   :  { %3778 = vmatpush1.bf16.msra.mxu0 %v3748_v36  ;;  %v3964_v36 = vpack.c.bf16 %v3936_v2, %v3935_v25 }
0x1361   :  { %3779 = vmatprep.subr.bf16.mxu0 %v3751_v58  ;;  %v3938_v58 = vld [vmem:[#allocation8 + $0x1a8] sm:$0xff] }
0x13c8   :  { %v3622_v60 = vpop.xlane.xlu0 %3621 }
0x13c9   :  { %v3632_v20 = vmul.f32 0.0078125, %v3622_v60  ;;  %v3750_v60 = vpack.c.bf16 %v3731_v8, %v3729_v16  ;;  %v3921_v8 = vld [vmem:[#allocation8 + $0x120] sm:$0xff] }
0x13ca   :  { %v3624_v61 = vpop.xlane.xlu1 %3623 }
0x13cb   :  { %v6885_v6 = vsub.f32 %v6864_v1, %v3632_v20  ;;  %v3633_v38 = vmul.f32 0.0078125, %v3624_v61  ;;  %3780 = vmatpush1.bf16.msra.mxu0 %v3750_v60  ;;  %v3922_v60 = vld [vmem:[#allocation8 + $0x128] sm:$0xff] }
0x13cd   :  { %v6888_v50 = vsub.f32 %v6867_v11, %v3633_v38  ;;  %v3642_v48 = vmul.f32 %v6885_v6, %v6885_v6 }
0x13cf   :  { %3647 = vadd.xlane.f32.xlu0 %v3642_v48  ;;  %v3643_v44 = vmul.f32 %v6888_v50, %v6888_v50 }
0x13d0   :  { %v3626_v40 = vpop.xlane.xlu0 %3625 }
0x13d1   :  { %v3634_v63 = vmul.f32 0.0078125, %v3626_v40  ;;  %3649 = vadd.xlane.f32.xlu1 %v3643_v44 }
0x13d3   :  { %v6895_v18 = vsub.f32 %v6872_v26, %v3634_v63 }
0x13d4   :  { %v3628_v32 = vpop.xlane.xlu0 %3627 }
0x13d5   :  { %v3635_v0 = vmul.f32 0.0078125, %v3628_v32  ;;  %v3644_v19 = vmul.f32 %v6895_v18, %v6895_v18 }
0x13d7   :  { %v6900_v46 = vsub.f32 %v6876_v22, %v3635_v0  ;;  %3651 = vadd.xlane.f32.xlu0 %v3644_v19 }
0x13d9   :  { %v3645_v29 = vmul.f32 %v6900_v46, %v6900_v46 }
0x13db   :  { %3653 = vadd.xlane.f32.xlu1 %v3645_v29  ;;  %v3631_v41 = vpop.xlane.xlu1 %3630 }
0x13dc   :  { %v3636_v10 = vmul.f32 0.0078125, %v3631_v41 }
0x13de   :  { %v6905_v43 = vsub.f32 %v6880_v13, %v3636_v10  ;;  %v4156_v10 = vld [vmem:[%s7029_s10 + $0x1] ss:$0 sm:$0xff] }
0x13e0   :  { %v3646_v24 = vmul.f32 %v6905_v43, %v6905_v43 }
0x13e2   :  { %v3655_v52 = vsel %vm465_vm1, %v3646_v24, 0.0 }
0x13e3   :  { %3656 = vadd.xlane.f32.xlu0 %v3655_v52 }
0x145c   :  { %v3648_v20 = vpop.xlane.xlu0 %3647 }
0x145d   :  { %v3658_v61 = vmul.f32 0.0078125, %v3648_v20  ;;  %v3957_v20 = vpack.c.bf16 %v3922_v60, %v3921_v8 }
0x145e   :  { %v3650_v38 = vpop.xlane.xlu1 %3649 }
0x145f   :  { %v3663_v48 = vadd.f32 1e-05, %v3658_v61  ;;  %v3659_v44 = vmul.f32 0.0078125, %v3650_v38  ;;  %v3939_v61 = vld [vmem:[#allocation8 + $0x1b0] sm:$0xff]  ;;  %v3940_v38 = vld [vmem:[#allocation8 + $0x1b8] sm:$0xff] }
0x1461   :  { %5163 = vrsqrt.f32 %v3663_v48  ;;  %v3664_v40 = vadd.f32 1e-05, %v3659_v44  ;;  %v3966_v48 = vpack.c.bf16 %v3940_v38, %v3939_v61  ;;  %v3923_v44 = vld [vmem:[#allocation8 + $0x130] sm:$0xff] }
0x1463   :  { %5165 = vrsqrt.f32 %v3664_v40  ;;  %v3924_v40 = vld [vmem:[#allocation8 + $0x138] sm:$0xff] }
0x1464   :  { %v3652_v63 = vpop.xlane.xlu0 %3651 }
0x1465   :  { %v3660_v32 = vmul.f32 0.0078125, %v3652_v63  ;;  %v3958_v63 = vpack.c.bf16 %v3924_v40, %v3923_v44 }
0x1467   :  { %v3665_v0 = vadd.f32 1e-05, %v3660_v32  ;;  %v3941_v32 = vld [vmem:[#allocation8 + $0x1c0] sm:$0xff] }
0x1468   :  { %v3654_v19 = vpop.xlane.xlu1 %3653 }
0x1469   :  { %5167 = vrsqrt.f32 %v3665_v0  ;;  %v3661_v29 = vmul.f32 0.0078125, %v3654_v19  ;;  %v3942_v0 = vld [vmem:[#allocation8 + $0x1c8] sm:$0xff] }
0x146a   :  { %v3967_v19 = vpack.c.bf16 %v3942_v0, %v3941_v32 }
0x146b   :  { %v5164_v41 = vpop.eup %5163  ;;  %v3666_v62 = vadd.f32 1e-05, %v3661_v29  ;;  %v3925_v29 = vld [vmem:[#allocation8 + $0x140] sm:$0xff] }
0x146c   :  { %v3673_v45 = vmul.f32 %v5164_v41, %v6885_v6  ;;  %v3926_v41 = vld [vmem:[#allocation8 + $0x148] sm:$0xff] }
0x146d   :  { %v5166_v4 = vpop.eup %5165  ;;  %5169 = vrsqrt.f32 %v3666_v62  ;;  %v3943_v62 = vld [vmem:[#allocation8 + $0x1d0] sm:$0xff] }
0x146e   :  { %v3684_v53 = vmul.f32 %v4156_v10, %v3673_v45  ;;  %v3674_v23 = vmul.f32 %v5166_v4, %v6888_v50  ;;  %v3944_v45 = vld [vmem:[#allocation8 + $0x1d8] sm:$0xff] }
0x146f   :  { %v3968_v4 = vpack.c.bf16 %v3944_v45, %v3943_v62 }
0x1470   :  { %v3685_v24 = vmul.f32 %v4156_v10, %v3674_v23  ;;  %v3657_v37 = vpop.xlane.xlu0 %3656  ;;  %v3695_v52 = vadd.f32 %v4157_v57, %v3684_v53  ;;  %v3927_v53 = vld [vmem:[#allocation8 + $0x150] sm:$0xff]  ;;  %v3928_v23 = vld [vmem:[#allocation8 + $0x158] sm:$0xff] }
0x1471   :  { %v3662_v47 = vmul.f32 0.0078125, %v3657_v37  ;;  %v3946_v37 = vld [vmem:[#allocation8 + $0x1e8] sm:$0xff] }
0x1472   :  { %v3696_v51 = vadd.f32 %v4157_v57, %v3685_v24  ;;  %v3945_v24 = vld [vmem:[#allocation8 + $0x1e0] sm:$0xff] }
0x1473   :  { %v5168_v33 = vpop.eup %5167  ;;  %v3667_v49 = vadd.f32 1e-05, %v3662_v47  ;;  %v3969_v47 = vpack.c.bf16 %v3946_v37, %v3945_v24 }
0x1474   :  { %v3733_v9 = vpack.c.bf16 %v3696_v51, %v3695_v52  ;;  %v3675_v28 = vmul.f32 %v5168_v33, %v6895_v18  ;;  %v3929_v52 = vld [vmem:[#allocation8 + $0x160] sm:$0xff]  ;;  %v3930_v51 = vld [vmem:[#allocation8 + $0x168] sm:$0xff] }
0x1475   :  { %5171 = vrsqrt.f32 %v3667_v49  ;;  %v3961_v33 = vpack.c.bf16 %v3930_v51, %v3929_v52  ;;  %v3947_v49 = vld [vmem:[#allocation8 + $0x1f0] sm:$0xff] }
0x1476   :  { %3798 = vmatmul.mubr.bf16.vlgmr.msra.gmra.mrb[156].mxu0 %v3733_v9  ;;  %v3686_v56 = vmul.f32 %v4156_v10, %v3675_v28  ;;  %v3948_v9 = vld [vmem:[#allocation8 + $0x1f8] sm:$0xff] }
0x1477   :  { %v5170_v6 = vpop.eup %5169  ;;  %3807 = vmatprep.mubr.bf16.mxu0 %v5323_v21  ;;  %v3970_v28 = vpack.c.bf16 %v3948_v9, %v3947_v49 }
0x1478   :  { %v3676_v50 = vmul.f32 %v5170_v6, %v6900_v46  ;;  %v3697_v12 = vadd.f32 %v4157_v57, %v3686_v56  ;;  %v3918_v46 = vld [vmem:[#allocation8 + $0x108] sm:$0xff]  ;;  %v3931_v6 = vld [vmem:[#allocation8 + $0x170] sm:$0xff] }
0x1479   :  { %v3955_v54 = vpack.c.bf16 %v3918_v46, %v3917_v35 }
0x147a   :  { %v3687_v30 = vmul.f32 %v4156_v10, %v3676_v50  ;;  %v3932_v50 = vld [vmem:[#allocation8 + $0x178] sm:$0xff] }
0x147b   :  { %4415 = vmatpush3.bf16.msra.mxu1 %v3955_v54  ;;  %v3962_v56 = vpack.c.bf16 %v3932_v50, %v3931_v6 }
0x147c   :  { %v3698_v42 = vadd.f32 %v4157_v57, %v3687_v30  ;;  %4416 = vmatprep.subr.bf16.mxu1 %v3964_v36  ;;  %v4158_v30 = vld [vmem:[%s7032_s13 + $0x2] sm:$0x3] }
0x147e   :  { %v3734_v17 = vpack.c.bf16 %v3698_v42, %v3697_v12  ;;  %v3758_v12 = vrot.slane %v4158_v30, %v5653_v3  ;;  %v3762_v42 = vrot.slane %v4158_v30, %v5660_v7 }
0x147f   :  { %v5172_v27 = vpop.eup %5171 }
0x1480   :  { %3808 = vmatmul.mubr.bf16.gmra.mrb[160].mxu0 %v3734_v17  ;;  %v3677_v55 = vmul.f32 %v5172_v27, %v6905_v43  ;;  %v3956_v43 = vpack.c.bf16 %v3920_v34, %v3919_v15 }
0x1481   :  { %3817 = vmatprep.mubr.bf16.mxu0 %v5323_v21  ;;  %v3937_v21 = vld [vmem:[#allocation8 + $0x1a0] sm:$0xff] }
0x1482   :  { %v3688_v5 = vmul.f32 %v4156_v10, %v3677_v55  ;;  %4417 = vmatpush3.bf16.msra.mxu1 %v3956_v43  ;;  %v3965_v16 = vpack.c.bf16 %v3938_v58, %v3937_v21  ;;  %v3959_v10 = vpack.c.bf16 %v3926_v41, %v3925_v29 }
0x1484   :  { %v3699_v18 = vadd.f32 %v4157_v57, %v3688_v5  ;;  %4418 = vmatprep.subr.bf16.mxu1 %v3965_v16  ;;  %v3960_v57 = vpack.c.bf16 %v3928_v23, %v3927_v53 }
0x1486   :  { %v3735_v59 = vpack.c.bf16 %v3699_v18, %v3699_v18  ;;  %4419 = vmatpush3.bf16.msra.mxu1 %v3957_v20 }
0x1487   :  { %4420 = vmatprep.subr.bf16.mxu1 %v3966_v48 }
0x1488   :  { %3818 = vmatmul.mubr.bf16.gmra.mrb[164].mxu0 %v3735_v59 }
0x148a   :  { %4421 = vmatpush3.bf16.msra.mxu1 %v3958_v63 }
0x148b   :  { %4422 = vmatprep.subr.bf16.mxu1 %v3967_v19 }
0x148e   :  { %4423 = vmatpush3.bf16.msra.mxu1 %v3959_v10 }
0x148f   :  { %4424 = vmatprep.subr.bf16.mxu1 %v3968_v4 }
0x1492   :  { %4425 = vmatpush3.bf16.msra.mxu1 %v3960_v57 }
0x1493   :  { %4426 = vmatprep.subr.bf16.mxu1 %v3969_v47 }
0x1496   :  { %4427 = vmatpush3.bf16.msra.mxu1 %v3961_v33 }
0x1497   :  { %4428 = vmatprep.subr.bf16.mxu1 %v3970_v28 }
0x149a   :  { %4429 = vmatpush3.bf16.msra.mxu1 %v3962_v56 }
0x1549   :  { %v3799_v17 = vpop.f32.mrb[156].mxu0 }
0x154a   :  { %v6928_v27 = vadd.f32 %v3799_v17, %v3758_v12  ;;  %v3801_v55 = vpop.f32.mrb[157].mxu0 }
0x154b   :  { %v6930_v5 = vadd.f32 %v3801_v55, %v3762_v42  ;;  %v3803_v18 = vpop.f32.mrb[158].mxu0 }
0x154c   :  { %v3826_v59 = vmul.f32 %v6928_v27, %v6928_v27  ;;  %v6934_v39 = vadd.f32 %v3803_v18, %v3758_v12  ;;  %v3805_v31 = vpop.f32.mrb[159].mxu0 }
0x154d   :  { %v3827_v14 = vmul.f32 %v6930_v5, %v6930_v5  ;;  %v6938_v35 = vadd.f32 %v3805_v31, %v3762_v42 }
0x154e   :  { %v3836_v3 = vmul.f32 %v3826_v59, %v6928_v27  ;;  %v3828_v7 = vmul.f32 %v6934_v39, %v6934_v39 }
0x154f   :  { %v3837_v46 = vmul.f32 %v3827_v14, %v6930_v5  ;;  %v3829_v54 = vmul.f32 %v6938_v35, %v6938_v35 }
0x1550   :  { %v3846_v25 = vmul.f32 0.044715, %v3836_v3  ;;  %v3838_v2 = vmul.f32 %v3828_v7, %v6934_v39 }
0x1551   :  { %v3847_v36 = vmul.f32 0.044715, %v3837_v46  ;;  %v3839_v15 = vmul.f32 %v3829_v54, %v6938_v35 }
0x1552   :  { %v3856_v34 = vadd.f32 %v3846_v25, %v6928_v27  ;;  %v3848_v43 = vmul.f32 0.044715, %v3838_v2 }
0x1553   :  { %v3857_v21 = vadd.f32 %v3847_v36, %v6930_v5  ;;  %v3849_v58 = vmul.f32 0.044715, %v3839_v15  ;;  %v3809_v16 = vpop.f32.mrb[160].mxu0 }
0x1554   :  { %v3866_v8 = vmul.f32 0.7978846, %v3856_v34  ;;  %v3858_v60 = vadd.f32 %v3848_v43, %v6934_v39  ;;  %v6951_v20 = vadd.f32 %v3809_v16, %v3758_v12  ;;  %v3811_v61 = vpop.f32.mrb[161].mxu0 }
0x1555   :  { %v3867_v38 = vmul.f32 0.7978846, %v3857_v21  ;;  %v3859_v48 = vadd.f32 %v3849_v58, %v6938_v35  ;;  %v6954_v44 = vadd.f32 %v3811_v61, %v3762_v42  ;;  %v3813_v40 = vpop.f32.mrb[162].mxu0 }
0x1556   :  { %5173 = vtanh.f32 %v3866_v8  ;;  %v3868_v63 = vmul.f32 0.7978846, %v3858_v60  ;;  %v3830_v32 = vmul.f32 %v6951_v20, %v6951_v20  ;;  %v6958_v0 = vadd.f32 %v3813_v40, %v3758_v12  ;;  %v3815_v19 = vpop.f32.mrb[163].mxu0 }
0x1557   :  { %5175 = vtanh.f32 %v3867_v38  ;;  %v3869_v29 = vmul.f32 0.7978846, %v3859_v48  ;;  %v3831_v41 = vmul.f32 %v6954_v44, %v6954_v44  ;;  %v6962_v10 = vadd.f32 %v3815_v19, %v3762_v42 }
0x1558   :  { %5177 = vtanh.f32 %v3868_v63  ;;  %v3840_v62 = vmul.f32 %v3830_v32, %v6951_v20  ;;  %v3832_v45 = vmul.f32 %v6958_v0, %v6958_v0 }
0x1559   :  { %5179 = vtanh.f32 %v3869_v29  ;;  %v3841_v4 = vmul.f32 %v3831_v41, %v6954_v44  ;;  %v3833_v53 = vmul.f32 %v6962_v10, %v6962_v10 }
0x155a   :  { %v3850_v23 = vmul.f32 0.044715, %v3840_v62  ;;  %v3842_v57 = vmul.f32 %v3832_v45, %v6958_v0 }
0x155b   :  { %v3851_v24 = vmul.f32 0.044715, %v3841_v4  ;;  %v3843_v37 = vmul.f32 %v3833_v53, %v6962_v10  ;;  %v3819_v47 = vpop.f32.mrb[164].mxu0 }
0x155c   :  { %v3860_v52 = vadd.f32 %v3850_v23, %v6951_v20  ;;  %v3852_v51 = vmul.f32 0.044715, %v3842_v57  ;;  %v6973_v33 = vadd.f32 %v3819_v47, %v3758_v12  ;;  %v3821_v49 = vpop.f32.mrb[165].mxu0 }
0x155d   :  { %v3861_v9 = vadd.f32 %v3851_v24, %v6954_v44  ;;  %v3853_v28 = vmul.f32 0.044715, %v3843_v37  ;;  %v6976_v6 = vadd.f32 %v3821_v49, %v3762_v42  ;;  %v3823_v50 = vpop.f32.mrb[166].mxu0 }
0x155e   :  { %v3870_v56 = vmul.f32 0.7978846, %v3860_v52  ;;  %v3862_v30 = vadd.f32 %v3852_v51, %v6958_v0  ;;  %v3834_v17 = vmul.f32 %v6973_v33, %v6973_v33  ;;  %v3824_v55 = vpop.f32.mrb[167].mxu0 }
0x155f   :  { %v3871_v18 = vmul.f32 0.7978846, %v3861_v9  ;;  %v3863_v59 = vadd.f32 %v3853_v28, %v6962_v10  ;;  %v3835_v12 = vmul.f32 %v6976_v6, %v6976_v6 }
0x1560   :  { %v5174_v31 = vpop.eup %5173  ;;  %5181 = vtanh.f32 %v3870_v56  ;;  %v3872_v14 = vmul.f32 0.7978846, %v3862_v30  ;;  %v3844_v42 = vmul.f32 %v3834_v17, %v6973_v33 }
0x1561   :  { %v5176_v3 = vpop.eup %5175  ;;  %v3886_v7 = vadd.f32 1.0, %v5174_v31  ;;  %5183 = vtanh.f32 %v3871_v18  ;;  %v3873_v46 = vmul.f32 0.7978846, %v3863_v59  ;;  %v3845_v54 = vmul.f32 %v3835_v12, %v6976_v6 }
0x1562   :  { %v5178_v25 = vpop.eup %5177  ;;  %5185 = vtanh.f32 %v3872_v14  ;;  %v3854_v2 = vmul.f32 0.044715, %v3844_v42  ;;  %v3887_v36 = vadd.f32 1.0, %v5176_v3 }
0x1563   :  { %v5180_v15 = vpop.eup %5179  ;;  %v3896_v34 = vmul.f32 0.5, %v3886_v7  ;;  %v3888_v43 = vadd.f32 1.0, %v5178_v25  ;;  %5187 = vtanh.f32 %v3873_v46  ;;  %v3855_v21 = vmul.f32 0.044715, %v3845_v54  ;;  %v4160_v54 = vld [vmem:[%s7034_s15 + $0x1] ss:$0 sm:$0xff] }
0x1564   :  { %v3864_v58 = vadd.f32 %v3854_v2, %v6973_v33  ;;  %v3889_v16 = vadd.f32 1.0, %v5180_v15  ;;  %v3897_v8 = vmul.f32 0.5, %v3887_v36  ;;  %s5327_s15 = smov [#allocation10]  }
0x1565   :  { %v3898_v60 = vmul.f32 0.5, %v3888_v43  ;;  %v3865_v61 = vadd.f32 %v3855_v21, %v6976_v6  ;;  %v3906_v40 = vmul.f32 %v3896_v34, %v6928_v27  ;;  %s4065_s12 = sshll.u32 %s5327_s15, 4  ;;  %s4066_s12 = int_to_ptr.vmem [resolvable:$true] %s4065_s12 }
0x1566   :  { %v3874_v38 = vmul.f32 0.7978846, %v3864_v58  ;;  %v3899_v48 = vmul.f32 0.5, %v3889_v16  ;;  %v3907_v19 = vmul.f32 %v3897_v8, %v6930_v5  ;;  %s5281_s19 = scalar_lea.vmem %s4066_s12, 16  ;;  %s5285_s14 = scalar_lea.vmem %s4066_s12, 32 }
0x1567   :  { %v3908_v63 = vmul.f32 %v3898_v60, %v6934_v39  ;;  %v3875_v32 = vmul.f32 0.7978846, %v3865_v61  ;;  %p5282_p4 = scmp.ne.s32.totalorder %s4066_s12, %s5281_s19  ;;  %p5286_p5 = scmp.lt.s32.totalorder %s4066_s12, %s4066_s12 }
0x1568   :  { %5189 = vtanh.f32 %v3874_v38  ;;  %v3909_v29 = vmul.f32 %v3899_v48, %v6938_v35  ;;  %p5287_p6 = scmp.lt.s32.totalorder %s5285_s14, %s5281_s19 }
0x1569   :  { %v3949_v41 = vpack.c.bf16 %v3908_v63, %v3906_v40  ;;  %5191 = vtanh.f32 %v3875_v32 }
0x156a   :  { %v5182_v62 = vpop.eup %5181  ;;  %v3950_v45 = vpack.c.bf16 %v3909_v29, %v3907_v19  ;;  %p5288_p7 = por %p5287_p6, %p5286_p5 }
0x156b   :  { %v5184_v4 = vpop.eup %5183  ;;  %v3890_v53 = vadd.f32 1.0, %v5182_v62 }
0x156c   :  { %v5186_v23 = vpop.eup %5185  ;;  %4003 = vmatprep.mubr.bf16.mxu1 %v3950_v45  ;;  %v3891_v57 = vadd.f32 1.0, %v5184_v4  ;;  %p5289_p8 = pnand %p5288_p7, %p5282_p4 }
0x156d   :  { %v5188_v24 = vpop.eup %5187  ;;  %4004 = vmatmul.mubr.bf16.vlgmr.msra.gmra.mrb[168].mxu1 %v3949_v41  ;;  %v3892_v27 = vadd.f32 1.0, %v5186_v23  ;;  %v3900_v37 = vmul.f32 0.5, %v3890_v53 }
0x156e   :  { %v3893_v39 = vadd.f32 1.0, %v5188_v24  ;;  %v3901_v47 = vmul.f32 0.5, %v3891_v57 }
0x156f   :  { %v3902_v52 = vmul.f32 0.5, %v3892_v27  ;;  %v3910_v5 = vmul.f32 %v3900_v37, %v6951_v20 }
0x1570   :  { %v3903_v51 = vmul.f32 0.5, %v3893_v39  ;;  %v3911_v9 = vmul.f32 %v3901_v47, %v6954_v44 }
0x1571   :  { %v3912_v35 = vmul.f32 %v3902_v52, %v6958_v0 }
0x1572   :  { %v5190_v49 = vpop.eup %5189  ;;  %v3913_v28 = vmul.f32 %v3903_v51, %v6962_v10 }
0x1573   :  { %v5192_v50 = vpop.eup %5191  ;;  %v3951_v56 = vpack.c.bf16 %v3912_v35, %v3910_v5  ;;  %v3894_v30 = vadd.f32 1.0, %v5190_v49 }
0x1574   :  { %v3952_v17 = vpack.c.bf16 %v3913_v28, %v3911_v9  ;;  %v3895_v55 = vadd.f32 1.0, %v5192_v50 }
0x1575   :  { %v3904_v18 = vmul.f32 0.5, %v3894_v30 }
0x1576   :  { %4011 = vmatprep.mubr.bf16.mxu1 %v3952_v17  ;;  %v3905_v59 = vmul.f32 0.5, %v3895_v55 }
0x1577   :  { %4012 = vmatmul.mubr.bf16.gmra.mrb[172].mxu1 %v3951_v56  ;;  %v3914_v20 = vmul.f32 %v3904_v18, %v6973_v33 }
0x1578   :  { %v3915_v12 = vmul.f32 %v3905_v59, %v6976_v6 }
0x1579   :  { %v3953_v0 = vpack.c.bf16 %v3914_v20, %v3914_v20 }
0x157a   :  { %v3954_v31 = vpack.c.bf16 %v3915_v12, %v3915_v12 }
0x157c   :  { %4019 = vmatprep.mubr.bf16.mxu1 %v3954_v31 }
0x157f   :  { %4020 = vmatmul.mubr.bf16.gmra.mrb[176].mxu1 %v3953_v0 }
0x1640   :  { %v4430_v44 = vpop.f32.mrb[168].mxu1 }
0x1641   :  { %v4431_v14 = vpop.f32.mrb[169].mxu1 }
0x1642   :  { %v4432_v10 = vadd.f32 %v4431_v14, %v4430_v44  ;;  %v4433_v42 = vpop.f32.mrb[170].mxu1 }
0x1643   :  { %v4434_v3 = vpop.f32.mrb[171].mxu1 }
0x1644   :  { %v4027_v7 = vadd.f32 %v4432_v10, %v6864_v1  ;;  %v4435_v46 = vadd.f32 %v4434_v3, %v4433_v42 }
0x1646   :  { %v4028_v6 = vadd.f32 %v4435_v46, %v6867_v11  ;;  %v4040_v25 = vadd.f32 %v4160_v54, %v4027_v7 }
0x1648   :  { %v4041_v33 = vadd.f32 %v4160_v54, %v4028_v6 }
0x164a   :  { %v4045_v2 = vadd.f32 %v4041_v33, %v4040_v25  ;;  %v4436_v36 = vpop.f32.mrb[172].mxu1 }
0x164b   :  { %v4437_v15 = vpop.f32.mrb[173].mxu1 }
0x164c   :  { %v4438_v34 = vadd.f32 %v4437_v15, %v4436_v36  ;;  %v4439_v43 = vpop.f32.mrb[174].mxu1 }
0x164d   :  { %v4440_v21 = vpop.f32.mrb[175].mxu1 }
0x164e   :  { %v4029_v58 = vadd.f32 %v4438_v34, %v6872_v26  ;;  %v4441_v16 = vadd.f32 %v4440_v21, %v4439_v43 }
0x1650   :  { %v4042_v8 = vadd.f32 %v4160_v54, %v4029_v58  ;;  %v4030_v1 = vadd.f32 %v4441_v16, %v6876_v22 }
0x1652   :  { %v4046_v60 = vadd.f32 %v4045_v2, %v4042_v8  ;;  %v4043_v61 = vadd.f32 %v4160_v54, %v4030_v1  ;;  %v4442_v38 = vpop.f32.mrb[176].mxu1 }
0x1653   :  { %v4443_v48 = vpop.f32.mrb[177].mxu1 }
0x1654   :  { %v4047_v40 = vadd.f32 %v4046_v60, %v4043_v61  ;;  %v4444_v11 = vadd.f32 %v4443_v48, %v4442_v38  ;;  %v4445_v63 = vpop.f32.mrb[178].mxu1 }
0x1655   :  { %v4446_v32 = vpop.f32.mrb[179].mxu1 }
0x1656   :  { %v4031_v19 = vadd.f32 %v4444_v11, %v6880_v13 }
0x1658   :  { %v4044_v29 = vadd.f32 %v4160_v54, %v4031_v19 }
0x165a   :  { %v4048_v41 = vsel %vm465_vm1, %v4044_v29, 0.0 }
0x165b   :  { %v4049_v62 = vadd.f32 %v4048_v41, %v4047_v40 }
0x165d   :  { %v4050_v45 = vrot.slane %v4049_v62, 4 }
0x165f   :  { %v4051_v26 = vadd.f32 %v4050_v45, %v4049_v62 }
0x1661   :  { %v4052_v4 = vrot.slane %v4051_v26, 2 }
0x1663   :  { %v4053_v53 = vadd.f32 %v4052_v4, %v4051_v26 }
0x1665   :  { %v4054_v23 = vrot.slane %v4053_v53, 1 }
0x1667   :  { %v4055_v22 = vadd.f32 %v4054_v23, %v4053_v53 }
0x1669   :  { %v4057_v57 = vmul.f32 0.027777778, %v4055_v22 }
0x166b   :  { %4058 = vst [vmem:[#allocation10] sm:$0x1] %v4057_v57 }
0x166c   :  { %5292 = shalt.err (!%p5289_p8)
}
0x166d   :  { %s5293_s21 = scalar_lea.hbm %s7035_s16, 16 }
0x166e   :  { %p5294_p9 = scmp.ne.s32.totalorder %s7035_s16, %s5293_s21  ;;  %p5297_p10 = scmp.lt.u32.totalorder %s5293_s21, %s7035_s16 }
0x1670   :  { %p5299_p11 = pnand %p5297_p10, %p5294_p9 }
0x1672   :  { %5302 = shalt.err (!%p5299_p11)
}
0x1673   :  { %4068 = dma.vmem_to_hbm [thread:$0]  %s4066_s12, 16, %s7035_s16, [#allocation4]  }
0x1674   :  { %5309 = dma.done.wait [#allocation4], 16  }
0x1675   :  { %5310 = vsyncadd [#allocation4], 4294967280 }
0x1676   :  { %4072 = vsyncpa [#allocation3], 1 }
0x1677   :  { %4073 = vsyncpa [#allocation6], 1 }
0x1678   :  { %4074 = vsyncpa [#allocation9], 1 }
0x1679   :  { %4075 = vsyncpa [#allocation4], 1 }

</bundles_post_ra>
